<compile_context>
chip_gen: v7x
topology: tpu7x:2x2x1
jax: 0.10.0
libtpu: 0.0.40
codegen_flags: <defaults>
</compile_context>

<pallas_src>
import numpy as np
import jax
import jax.numpy as jnp
from jax.experimental import pallas as pl
from jax.experimental.pallas import tpu as pltpu


# ----------------------------------------------------------------------------
# Static weight-matrix builders (host-side, tiny).
# ----------------------------------------------------------------------------
def bilinear_weight_matrix(in_size: int, out_size: int) -> jnp.ndarray:
    """Row-resize matrix W (out, in) reproducing F.interpolate(mode='bilinear',
    align_corners=False) along one axis:  y = W @ x."""
    scale = in_size / out_size
    W = np.zeros((out_size, in_size), dtype=np.float32)
    for i in range(out_size):
        s = (i + 0.5) * scale - 0.5
        if s < 0.0:
            s = 0.0
        if s > in_size - 1:
            s = float(in_size - 1)
        i0 = int(np.floor(s))
        i0 = min(i0, in_size - 1)
        i1 = min(i0 + 1, in_size - 1)
        w1 = s - i0
        w0 = 1.0 - w1
        W[i, i0] += w0
        W[i, i1] += w1
    return jnp.asarray(W)


def adaptive_avg_pool_matrix(in_size: int, out_size: int) -> jnp.ndarray:
    """Pooling matrix P (out, in) reproducing nn.AdaptiveAvgPool along one axis."""
    P = np.zeros((out_size, in_size), dtype=np.float32)
    for i in range(out_size):
        start = (i * in_size) // out_size
        end = -(-((i + 1) * in_size) // out_size)  # ceil
        P[i, start:end] = 1.0 / (end - start)
    return jnp.asarray(P)


def _vmem_capacity_bytes() -> int:
    """Per-core VMEM capacity; conservative fallback if the query is unavailable."""
    try:
        info = pltpu.get_tpu_info()
        for name in ("vmem_capacity_bytes", "vmem_size_bytes", "vmem_bytes"):
            v = getattr(info, name, None)
            if v:
                return int(v)
    except Exception:
        pass
    return 64 * 1024 * 1024  # v7x per-core VMEM; safe lower bound everywhere


# ----------------------------------------------------------------------------
# Fused Pallas kernel: B batch elements per grid step, everything on-chip.
# ----------------------------------------------------------------------------
def _rkd_fused_kernel(x_ref,
                      rlwt_ref, rlh_ref,     # image bilinear resize (H,W)->(lh,lw)
                      plwt_ref, plh_ref,     # student adaptive pool (lh,lw)->(fh,fw)
                      phwt_ref, phh_ref,     # teacher adaptive pool (H,W)->(gh,gw)
                      wlo_ref, blo_ref,      # student 1x1 conv weight/bias (SMEM)
                      whi_ref, bhi_ref,      # teacher 1x1 conv weight/bias (SMEM)
                      feat_ref, high_ref):
    bsz, c_in, h, w = x_ref.shape
    c_out = feat_ref.shape[1]
    mm_dtype = x_ref.dtype  # bf16 matmul inputs (f32 accumulation) by default

    def sep(t, wt_ref, lhs_ref):
        # Separable spatial transform out[b,c] = A @ t[b,c] @ Bt for every
        # (batch, channel) plane:
        #   * W step: fold (bsz * c * rows) into the MXU M dim -> ONE 2-D matmul.
        #   * H step: batched MXU matmul against the VMEM-resident broadcast of
        #     A (shape (bsz*c, ho, rows)); no in-kernel broadcast_to.
        # Leading-dim collapses/splits keep the minor (lane) dim fixed and the
        # row counts (h, lh) are multiples of the sublane tiling, so the
        # reshapes are layout no-ops.
        b_, c_, hi_, wi_ = t.shape
        wo_ = wt_ref.shape[1]
        ho_ = lhs_ref.shape[1]
        tm = t.astype(mm_dtype)
        u = jnp.dot(tm.reshape(b_ * c_ * hi_, wi_), wt_ref[...],
                    preferred_element_type=jnp.float32)        # (b*c*hi, wo) f32
        u = u.reshape(b_ * c_, hi_, wo_).astype(mm_dtype)
        out = jnp.einsum('xij,xjk->xik', lhs_ref[...], u,
                         preferred_element_type=jnp.float32)   # (b*c, ho, wo) f32
        return out.reshape(b_, c_, ho_, wo_)

    def conv1x1_relu(t, w_s, b_s):
        # 1x1 conv over channels + bias + ReLU.  Scalar weights live in SMEM,
        # so this is a short unrolled sum of scaled slabs on the VPU in f32.
        # TODO(synk): for real backbones with >=32 channels move this onto the
        # MXU (dot_general with VMEM-resident weights), per the perf review.
        ci = t.shape[1]
        outs = []
        for o in range(c_out):
            acc = t[:, 0] * w_s[o, 0]
            for c in range(1, ci):
                acc = acc + t[:, c] * w_s[o, c]
            outs.append(jnp.maximum(acc + b_s[o], 0.0))
        return jnp.stack(outs, axis=1)            # (bsz, c_out, ., .) float32

    x = x_ref[...]                                # (bsz, c_in, h, w)

    # ---- student (low-res) path --------------------------------------------
    x_low = sep(x, rlwt_ref, rlh_ref)             # (bsz, c_in, lh, lw) f32
    y_low = conv1x1_relu(x_low, wlo_ref, blo_ref)            # (bsz, c_out, lh, lw)
    feat_ref[...] = sep(y_low, plwt_ref, plh_ref).astype(feat_ref.dtype)

    # ---- teacher (high-res) path (detached in the wrapper) ------------------
    y_hi = conv1x1_relu(x, whi_ref, bhi_ref)                 # (bsz, c_out, h, w)
    high_ref[...] = sep(y_hi, phwt_ref, phh_ref).astype(high_ref.dtype)


# ----------------------------------------------------------------------------
# Wrapper mirroring RKD.forward_train
# ----------------------------------------------------------------------------
def rkd_forward_train(x, params,
                      low_img_res=(112, 112),
                      low_feat_size=(4, 4),
                      high_feat_size=(7, 7),
                      *,
                      matmul_dtype=jnp.bfloat16,
                      max_block_b=16):
    """Returns (x_low_feat, rebuild_out, x_high_feat)."""
    # TODO(synk): original RKD builds arbitrary backbones via build_backbone(cfg)
    # (+ optional pretrained teacher checkpoint); a deterministic synthetic
    # 1x1-conv + ReLU + adaptive-avg-pool backbone is used for both paths.
    # TODO(synk): the fused pallas_call has no autodiff rule; training gradients
    # through the student path need a custom_vjp (teacher branch excluded).
    x_shape = x.shape
    x4 = x.reshape((-1,) + x_shape[2:]) if len(x_shape) == 5 else x
    x4 = x4.astype(jnp.float32)
    n, c_in, h, w = x4.shape
    c_out = params["w_low"].shape[0]
    lh, lw = low_img_res
    fh, fw = low_feat_size
    gh, gw = high_feat_size

    # ---- static separable transform matrices (tiny, f32 on host) -----------
    rlh32 = bilinear_weight_matrix(h, lh)          # (lh, h)
    rlw32 = bilinear_weight_matrix(w, lw)          # (lw, w)
    plh32 = adaptive_avg_pool_matrix(lh, fh)       # (fh, lh)
    plw32 = adaptive_avg_pool_matrix(lw, fw)       # (fw, lw)
    rbh32 = bilinear_weight_matrix(fh, gh)         # (gh, fh)
    rbw32 = bilinear_weight_matrix(fw, gw)         # (gw, fw)
    phh32 = adaptive_avg_pool_matrix(h, gh)        # (gh, h)
    phw32 = adaptive_avg_pool_matrix(w, gw)        # (gw, w)

    # ---- choose the batch block B from the per-generation VMEM budget ------
    esz = 4  # size everything as f32 for a conservative estimate
    per_elem = esz * (2 * c_in * h * w              # x block (double-buffered)
                      + c_in * h * lw               # resize W-step intermediate
                      + 2 * c_in * lh * lw          # x_low (+ bf16 copy)
                      + 2 * c_out * lh * lw         # y_low (+ bf16 copy)
                      + c_out * lh * fw
                      + 2 * c_out * h * w           # y_hi (+ bf16 copy)
                      + c_out * h * gw
                      + c_in * lh * h               # per-element share of the
                      + c_out * fh * lh             # resident broadcast
                      + c_out * gh * h)             # H-transform matrices
    per_elem = int(per_elem * 1.5)                  # headroom for temporaries
    vmem_cap = _vmem_capacity_bytes()
    budget = int(0.45 * vmem_cap)
    b_vmem = max(1, budget // per_elem)
    b_par = pl.cdiv(n, 2) if n > 1 else 1           # keep grid >= 2 for v7x 2 TCs
    blk_b = int(max(1, min(b_vmem, b_par, max_block_b, n)))
    n_pad = pl.cdiv(n, blk_b) * blk_b
    grid = (n_pad // blk_b,)

    if n_pad != n:
        x4 = jnp.pad(x4, ((0, n_pad - n), (0, 0), (0, 0), (0, 0)))
    x_in = x4.astype(matmul_dtype)

    md = matmul_dtype
    # Right-hand (lane / W-direction) matrices, plus VMEM-resident host
    # broadcasts of the left-hand (sublane / H-direction) matrices -- broadcast
    # on the host so the kernel never materializes them per grid step.
    m_rlwt = rlw32.T.astype(md)                                     # (w, lw)
    m_rlh = jnp.broadcast_to(rlh32.astype(md), (blk_b * c_in, lh, h))
    m_plwt = plw32.T.astype(md)                                     # (lw, fw)
    m_plh = jnp.broadcast_to(plh32.astype(md), (blk_b * c_out, fh, lh))
    m_phwt = phw32.T.astype(md)                                     # (w, gw)
    m_phh = jnp.broadcast_to(phh32.astype(md), (blk_b * c_out, gh, h))

    w_low = params["w_low"].astype(jnp.float32)
    b_low = params["b_low"].astype(jnp.float32)
    w_high = params["w_high"].astype(jnp.float32)
    b_high = params["b_high"].astype(jnp.float32)

    def _const(a):
        zeros = (0,) * a.ndim
        return pl.BlockSpec(a.shape, lambda i, _z=zeros: _z)

    smem_spec = pl.BlockSpec(memory_space=pltpu.MemorySpace.SMEM)

    # Advisory cost estimate so XLA schedules the fused call sensibly.
    def _sep_flops(nb, hi, wi, ho, wo):
        return 2 * nb * (hi * wi * wo + ho * hi * wo)

    flops = n_pad * (_sep_flops(c_in, h, w, lh, lw)
                     + 2 * c_in * c_out * lh * lw
                     + _sep_flops(c_out, lh, lw, fh, fw)
                     + 2 * c_in * c_out * h * w
                     + _sep_flops(c_out, h, w, gh, gw))
    const_bytes = sum(int(a.size) * a.dtype.itemsize
                      for a in (m_rlwt, m_rlh, m_plwt, m_plh, m_phwt, m_phh))
    bytes_accessed = (int(x_in.size) * x_in.dtype.itemsize + const_bytes
                      + 4 * n_pad * c_out * (fh * fw + gh * gw)
                      + 4 * int(w_low.size + b_low.size
                                + w_high.size + b_high.size))

    feat_pad, high_pad = pl.pallas_call(
        _rkd_fused_kernel,
        out_shape=(
            jax.ShapeDtypeStruct((n_pad, c_out, fh, fw), jnp.float32),
            jax.ShapeDtypeStruct((n_pad, c_out, gh, gw), jnp.float32),
        ),
        grid=grid,
        in_specs=[
            pl.BlockSpec((blk_b, c_in, h, w), lambda i: (i, 0, 0, 0)),
            _const(m_rlwt), _const(m_rlh),
            _const(m_plwt), _const(m_plh),
            _const(m_phwt), _const(m_phh),
            smem_spec, smem_spec, smem_spec, smem_spec,
        ],
        out_specs=(
            pl.BlockSpec((blk_b, c_out, fh, fw), lambda i: (i, 0, 0, 0)),
            pl.BlockSpec((blk_b, c_out, gh, gw), lambda i: (i, 0, 0, 0)),
        ),
        compiler_params=pltpu.CompilerParams(
            dimension_semantics=("parallel",),
            vmem_limit_bytes=int(min(0.85 * vmem_cap, 100 * 2**20))),
        cost_estimate=pl.CostEstimate(flops=int(flops), transcendentals=0,
                                      bytes_accessed=int(bytes_accessed)),
    )(x_in, m_rlwt, m_rlh, m_plwt, m_plh, m_phwt, m_phh,
      w_low, b_low, w_high, b_high)

    feat = feat_pad[:n]
    high = high_pad[:n]

    # 4x4 -> 7x7 "rebuild" bilinear resize: only n*c_out*16 floats are involved,
    # so it is applied as a plain XLA einsum (per review: not worth MXU-starving
    # tiny in-kernel matmuls and a third masked output stream).
    rebuild = jnp.einsum('ah,nohw,bw->noab', rbh32, feat, rbw32)

    if len(x_shape) == 5:
        nt = tuple(x_shape[:2])
        feat = feat.reshape(nt + feat.shape[1:])
        rebuild = rebuild.reshape(nt + rebuild.shape[1:])
        high = high.reshape(nt + high.shape[1:])

    # Teacher path is produced under torch.no_grad() + .detach() in the original.
    return feat, rebuild, jax.lax.stop_gradient(high)


# ----------------------------------------------------------------------------
# Pure-numpy float64 reference (correctness check only)
# ----------------------------------------------------------------------------
def _reference_forward(x, params, low_img_res, low_feat_size, high_feat_size):
    x64 = np.asarray(x, dtype=np.float64)
    n, c, h, w = x64.shape
    lh, lw = low_img_res
    fh, fw = low_feat_size
    gh, gw = high_feat_size
    rlh = np.asarray(bilinear_weight_matrix(h, lh), np.float64)
    rlw = np.asarray(bilinear_weight_matrix(w, lw), np.float64)
    plh = np.asarray(adaptive_avg_pool_matrix(lh, fh), np.float64)
    plw = np.asarray(adaptive_avg_pool_matrix(lw, fw), np.float64)
    rbh = np.asarray(bilinear_weight_matrix(fh, gh), np.float64)
    rbw = np.asarray(bilinear_weight_matrix(fw, gw), np.float64)
    phh = np.asarray(adaptive_avg_pool_matrix(h, gh), np.float64)
    phw = np.asarray(adaptive_avg_pool_matrix(w, gw), np.float64)
    wl = np.asarray(params["w_low"], np.float64)
    bl = np.asarray(params["b_low"], np.float64)
    wh = np.asarray(params["w_high"], np.float64)
    bh = np.asarray(params["b_high"], np.float64)

    x_low = np.einsum('ah,nchw,bw->ncab', rlh, x64, rlw)
    y_low = np.maximum(np.einsum('oc,nchw->nohw', wl, x_low)
                       + bl[None, :, None, None], 0.0)
    feat = np.einsum('ah,nohw,bw->noab', plh, y_low, plw)
    reb = np.einsum('ah,nohw,bw->noab', rbh, feat, rbw)
    y_hi = np.maximum(np.einsum('oc,nchw->nohw', wh, x64)
                      + bh[None, :, None, None], 0.0)
    high = np.einsum('ah,nohw,bw->noab', phh, y_hi, phw)
    return feat, reb, high


# ----------------------------------------------------------------------------
# Example run
# ----------------------------------------------------------------------------
if __name__ == "__main__":
    key = jax.random.PRNGKey(0)
    k_x, k_wl, k_bl, k_wh, k_bh = jax.random.split(key, 5)

    N, C_IN, H, W = 2, 4, 16, 16
    C_OUT = 8

    x = jax.random.normal(k_x, (N, C_IN, H, W), dtype=jnp.float32)
    params = {
        "w_low": 0.1 * jax.random.normal(k_wl, (C_OUT, C_IN), dtype=jnp.float32),
        "b_low": 0.1 * jax.random.normal(k_bl, (C_OUT,), dtype=jnp.float32),
        "w_high": 0.1 * jax.random.normal(k_wh, (C_OUT, C_IN), dtype=jnp.float32),
        "b_high": 0.1 * jax.random.normal(k_bh, (C_OUT,), dtype=jnp.float32),
    }

    x_low_feat, rebuild_out, x_high_feat = rkd_forward_train(x, params)
    jax.block_until_ready((x_low_feat, rebuild_out, x_high_feat))

    assert x_low_feat.shape == (N, C_OUT, 4, 4)
    assert rebuild_out.shape == (N, C_OUT, 7, 7)
    assert x_high_feat.shape == (N, C_OUT, 7, 7)

    # Correctness check vs. float64 numpy reference.  Tolerance is set for the
    # bf16-input / f32-accumulation MXU path (deliberately looser than pure-f32).
    ref_feat, ref_reb, ref_high = _reference_forward(
        x, params, (112, 112), (4, 4), (7, 7))
    np.testing.assert_allclose(np.asarray(x_low_feat), ref_feat,
                               rtol=3e-2, atol=3e-2)
    np.testing.assert_allclose(np.asarray(rebuild_out), ref_reb,
                               rtol=3e-2, atol=3e-2)
    np.testing.assert_allclose(np.asarray(x_high_feat), ref_high,
                               rtol=3e-2, atol=3e-2)

    print("KERNEL_OK")
</pallas_src>

<mosaic_0001>
module attributes {stable_mosaic.version = 11 : i64} {
  func.func @_rkd_fused_kernel(%arg0: i32, %arg1: memref<1x4x16x16xbf16, #tpu.memory_space<vmem>>, %arg2: memref<16x112xbf16, #tpu.memory_space<vmem>>, %arg3: memref<4x112x16xbf16, #tpu.memory_space<vmem>>, %arg4: memref<112x4xbf16, #tpu.memory_space<vmem>>, %arg5: memref<8x4x112xbf16, #tpu.memory_space<vmem>>, %arg6: memref<16x7xbf16, #tpu.memory_space<vmem>>, %arg7: memref<8x7x16xbf16, #tpu.memory_space<vmem>>, %arg8: memref<8x4xf32, #tpu.memory_space<smem>>, %arg9: memref<8xf32, #tpu.memory_space<smem>>, %arg10: memref<8x4xf32, #tpu.memory_space<smem>>, %arg11: memref<8xf32, #tpu.memory_space<smem>>, %arg12: memref<1x8x4x4xf32, #tpu.memory_space<vmem>>, %arg13: memref<1x8x7x7xf32, #tpu.memory_space<vmem>>) attributes {dimension_semantics = [#tpu.dimension_semantics<parallel>], iteration_bounds = array<i64: 2>, scalar_prefetch = 0 : i64, scratch_operands = 0 : i64, tpu.core_type = #tpu.core_type<tc>, window_params = [{transform_indices = @transform_0, window_bounds = array<i64: 1, 4, 16, 16>}, {pipeline_mode = #tpu.pipeline_mode<synchronous>, transform_indices = @transform_1, window_bounds = array<i64: 16, 112>}, {pipeline_mode = #tpu.pipeline_mode<synchronous>, transform_indices = @transform_2, window_bounds = array<i64: 4, 112, 16>}, {pipeline_mode = #tpu.pipeline_mode<synchronous>, transform_indices = @transform_3, window_bounds = array<i64: 112, 4>}, {pipeline_mode = #tpu.pipeline_mode<synchronous>, transform_indices = @transform_4, window_bounds = array<i64: 8, 4, 112>}, {pipeline_mode = #tpu.pipeline_mode<synchronous>, transform_indices = @transform_5, window_bounds = array<i64: 16, 7>}, {pipeline_mode = #tpu.pipeline_mode<synchronous>, transform_indices = @transform_6, window_bounds = array<i64: 8, 7, 16>}, {transform_indices = @transform_7, window_bounds = array<i64: 8, 4>}, {transform_indices = @transform_8, window_bounds = array<i64: 8>}, {transform_indices = @transform_9, window_bounds = array<i64: 8, 4>}, {transform_indices = @transform_10, window_bounds = array<i64: 8>}, {transform_indices = @transform_11, window_bounds = array<i64: 1, 8, 4, 4>}, {transform_indices = @transform_12, window_bounds = array<i64: 1, 8, 7, 7>}]} {
    %c0 = arith.constant 0 : index
    %c0_0 = arith.constant 0 : index
    %c0_1 = arith.constant 0 : index
    %c0_2 = arith.constant 0 : index
    %0 = vector.load %arg1[%c0, %c0_0, %c0_1, %c0_2] : memref<1x4x16x16xbf16, #tpu.memory_space<vmem>>, vector<1x4x16x16xbf16>
    %1 = vector.shape_cast %0 : vector<1x4x16x16xbf16> to vector<64x16xbf16>
    %c0_3 = arith.constant 0 : index
    %c0_4 = arith.constant 0 : index
    %2 = vector.load %arg2[%c0_3, %c0_4] : memref<16x112xbf16, #tpu.memory_space<vmem>>, vector<16x112xbf16>
    %cst = arith.constant dense<0.000000e+00> : vector<64x112xf32>
    %3 = tpu.matmul %1, %2, %cst {dimension_numbers = #tpu.dot_dimension_numbers<[1], [0], [0], [1], [0, 0, 1, 1], [], []>} : vector<64x16xbf16>, vector<16x112xbf16>, vector<64x112xf32> -> vector<64x112xf32>
    %4 = vector.shape_cast %3 : vector<64x112xf32> to vector<4x16x112xf32>
    %5 = arith.truncf %4 : vector<4x16x112xf32> to vector<4x16x112xbf16>
    %c0_5 = arith.constant 0 : index
    %c0_6 = arith.constant 0 : index
    %c0_7 = arith.constant 0 : index
    %6 = vector.load %arg3[%c0_5, %c0_6, %c0_7] : memref<4x112x16xbf16, #tpu.memory_space<vmem>>, vector<4x112x16xbf16>
    "tpu.trace_start"() <{level = 10 : i32, message = "xij,xjk->xik"}> : () -> ()
    %cst_8 = arith.constant dense<0.000000e+00> : vector<4x112x112xf32>
    %7 = tpu.matmul %6, %5, %cst_8 {dimension_numbers = #tpu.dot_dimension_numbers<[2], [1], [1], [2], [0, 0, 0, 1, 1, 2], [0], [0]>} : vector<4x112x16xbf16>, vector<4x16x112xbf16>, vector<4x112x112xf32> -> vector<4x112x112xf32>
    "tpu.trace_stop"() : () -> ()
    %8 = vector.shape_cast %7 : vector<4x112x112xf32> to vector<1x4x112x112xf32>
    %9 = vector.extract_strided_slice %8 {offsets = [0, 0, 0, 0], sizes = [1, 1, 112, 112], strides = [1, 1, 1, 1]} : vector<1x4x112x112xf32> to vector<1x1x112x112xf32>
    %10 = vector.shape_cast %9 : vector<1x1x112x112xf32> to vector<1x112x112xf32>
    %c0_9 = arith.constant 0 : index
    %c0_10 = arith.constant 0 : index
    %11 = memref.load %arg8[%c0_9, %c0_10] : memref<8x4xf32, #tpu.memory_space<smem>>
    %12 = vector.broadcast %11 : f32 to vector<1x112x112xf32>
    %13 = arith.mulf %10, %12 : vector<1x112x112xf32>
    %14 = vector.extract_strided_slice %8 {offsets = [0, 1, 0, 0], sizes = [1, 1, 112, 112], strides = [1, 1, 1, 1]} : vector<1x4x112x112xf32> to vector<1x1x112x112xf32>
    %15 = vector.shape_cast %14 : vector<1x1x112x112xf32> to vector<1x112x112xf32>
    %c0_11 = arith.constant 0 : index
    %c1 = arith.constant 1 : index
    %16 = memref.load %arg8[%c0_11, %c1] : memref<8x4xf32, #tpu.memory_space<smem>>
    %17 = vector.broadcast %16 : f32 to vector<1x112x112xf32>
    %18 = arith.mulf %15, %17 : vector<1x112x112xf32>
    %19 = arith.addf %13, %18 : vector<1x112x112xf32>
    %20 = vector.extract_strided_slice %8 {offsets = [0, 2, 0, 0], sizes = [1, 1, 112, 112], strides = [1, 1, 1, 1]} : vector<1x4x112x112xf32> to vector<1x1x112x112xf32>
    %21 = vector.shape_cast %20 : vector<1x1x112x112xf32> to vector<1x112x112xf32>
    %c0_12 = arith.constant 0 : index
    %c2 = arith.constant 2 : index
    %22 = memref.load %arg8[%c0_12, %c2] : memref<8x4xf32, #tpu.memory_space<smem>>
    %23 = vector.broadcast %22 : f32 to vector<1x112x112xf32>
    %24 = arith.mulf %21, %23 : vector<1x112x112xf32>
    %25 = arith.addf %19, %24 : vector<1x112x112xf32>
    %26 = vector.extract_strided_slice %8 {offsets = [0, 3, 0, 0], sizes = [1, 1, 112, 112], strides = [1, 1, 1, 1]} : vector<1x4x112x112xf32> to vector<1x1x112x112xf32>
    %27 = vector.shape_cast %26 : vector<1x1x112x112xf32> to vector<1x112x112xf32>
    %c0_13 = arith.constant 0 : index
    %c3 = arith.constant 3 : index
    %28 = memref.load %arg8[%c0_13, %c3] : memref<8x4xf32, #tpu.memory_space<smem>>
    %29 = vector.broadcast %28 : f32 to vector<1x112x112xf32>
    %30 = arith.mulf %27, %29 : vector<1x112x112xf32>
    %31 = arith.addf %25, %30 : vector<1x112x112xf32>
    %c0_14 = arith.constant 0 : index
    %32 = memref.load %arg9[%c0_14] : memref<8xf32, #tpu.memory_space<smem>>
    %33 = vector.broadcast %32 : f32 to vector<1x112x112xf32>
    %34 = arith.addf %31, %33 : vector<1x112x112xf32>
    %cst_15 = arith.constant 0.000000e+00 : f32
    %35 = vector.broadcast %cst_15 : f32 to vector<1x112x112xf32>
    %36 = arith.maximumf %34, %35 : vector<1x112x112xf32>
    %37 = vector.extract_strided_slice %8 {offsets = [0, 0, 0, 0], sizes = [1, 1, 112, 112], strides = [1, 1, 1, 1]} : vector<1x4x112x112xf32> to vector<1x1x112x112xf32>
    %38 = vector.shape_cast %37 : vector<1x1x112x112xf32> to vector<1x112x112xf32>
    %c1_16 = arith.constant 1 : index
    %c0_17 = arith.constant 0 : index
    %39 = memref.load %arg8[%c1_16, %c0_17] : memref<8x4xf32, #tpu.memory_space<smem>>
    %40 = vector.broadcast %39 : f32 to vector<1x112x112xf32>
    %41 = arith.mulf %38, %40 : vector<1x112x112xf32>
    %42 = vector.extract_strided_slice %8 {offsets = [0, 1, 0, 0], sizes = [1, 1, 112, 112], strides = [1, 1, 1, 1]} : vector<1x4x112x112xf32> to vector<1x1x112x112xf32>
    %43 = vector.shape_cast %42 : vector<1x1x112x112xf32> to vector<1x112x112xf32>
    %c1_18 = arith.constant 1 : index
    %c1_19 = arith.constant 1 : index
    %44 = memref.load %arg8[%c1_18, %c1_19] : memref<8x4xf32, #tpu.memory_space<smem>>
    %45 = vector.broadcast %44 : f32 to vector<1x112x112xf32>
    %46 = arith.mulf %43, %45 : vector<1x112x112xf32>
    %47 = arith.addf %41, %46 : vector<1x112x112xf32>
    %48 = vector.extract_strided_slice %8 {offsets = [0, 2, 0, 0], sizes = [1, 1, 112, 112], strides = [1, 1, 1, 1]} : vector<1x4x112x112xf32> to vector<1x1x112x112xf32>
    %49 = vector.shape_cast %48 : vector<1x1x112x112xf32> to vector<1x112x112xf32>
    %c1_20 = arith.constant 1 : index
    %c2_21 = arith.constant 2 : index
    %50 = memref.load %arg8[%c1_20, %c2_21] : memref<8x4xf32, #tpu.memory_space<smem>>
    %51 = vector.broadcast %50 : f32 to vector<1x112x112xf32>
    %52 = arith.mulf %49, %51 : vector<1x112x112xf32>
    %53 = arith.addf %47, %52 : vector<1x112x112xf32>
    %54 = vector.extract_strided_slice %8 {offsets = [0, 3, 0, 0], sizes = [1, 1, 112, 112], strides = [1, 1, 1, 1]} : vector<1x4x112x112xf32> to vector<1x1x112x112xf32>
    %55 = vector.shape_cast %54 : vector<1x1x112x112xf32> to vector<1x112x112xf32>
    %c1_22 = arith.constant 1 : index
    %c3_23 = arith.constant 3 : index
    %56 = memref.load %arg8[%c1_22, %c3_23] : memref<8x4xf32, #tpu.memory_space<smem>>
    %57 = vector.broadcast %56 : f32 to vector<1x112x112xf32>
    %58 = arith.mulf %55, %57 : vector<1x112x112xf32>
    %59 = arith.addf %53, %58 : vector<1x112x112xf32>
    %c1_24 = arith.constant 1 : index
    %60 = memref.load %arg9[%c1_24] : memref<8xf32, #tpu.memory_space<smem>>
    %61 = vector.broadcast %60 : f32 to vector<1x112x112xf32>
    %62 = arith.addf %59, %61 : vector<1x112x112xf32>
    %cst_25 = arith.constant 0.000000e+00 : f32
    %63 = vector.broadcast %cst_25 : f32 to vector<1x112x112xf32>
    %64 = arith.maximumf %62, %63 : vector<1x112x112xf32>
    %65 = vector.extract_strided_slice %8 {offsets = [0, 0, 0, 0], sizes = [1, 1, 112, 112], strides = [1, 1, 1, 1]} : vector<1x4x112x112xf32> to vector<1x1x112x112xf32>
    %66 = vector.shape_cast %65 : vector<1x1x112x112xf32> to vector<1x112x112xf32>
    %c2_26 = arith.constant 2 : index
    %c0_27 = arith.constant 0 : index
    %67 = memref.load %arg8[%c2_26, %c0_27] : memref<8x4xf32, #tpu.memory_space<smem>>
    %68 = vector.broadcast %67 : f32 to vector<1x112x112xf32>
    %69 = arith.mulf %66, %68 : vector<1x112x112xf32>
    %70 = vector.extract_strided_slice %8 {offsets = [0, 1, 0, 0], sizes = [1, 1, 112, 112], strides = [1, 1, 1, 1]} : vector<1x4x112x112xf32> to vector<1x1x112x112xf32>
    %71 = vector.shape_cast %70 : vector<1x1x112x112xf32> to vector<1x112x112xf32>
    %c2_28 = arith.constant 2 : index
    %c1_29 = arith.constant 1 : index
    %72 = memref.load %arg8[%c2_28, %c1_29] : memref<8x4xf32, #tpu.memory_space<smem>>
    %73 = vector.broadcast %72 : f32 to vector<1x112x112xf32>
    %74 = arith.mulf %71, %73 : vector<1x112x112xf32>
    %75 = arith.addf %69, %74 : vector<1x112x112xf32>
    %76 = vector.extract_strided_slice %8 {offsets = [0, 2, 0, 0], sizes = [1, 1, 112, 112], strides = [1, 1, 1, 1]} : vector<1x4x112x112xf32> to vector<1x1x112x112xf32>
    %77 = vector.shape_cast %76 : vector<1x1x112x112xf32> to vector<1x112x112xf32>
    %c2_30 = arith.constant 2 : index
    %c2_31 = arith.constant 2 : index
    %78 = memref.load %arg8[%c2_30, %c2_31] : memref<8x4xf32, #tpu.memory_space<smem>>
    %79 = vector.broadcast %78 : f32 to vector<1x112x112xf32>
    %80 = arith.mulf %77, %79 : vector<1x112x112xf32>
    %81 = arith.addf %75, %80 : vector<1x112x112xf32>
    %82 = vector.extract_strided_slice %8 {offsets = [0, 3, 0, 0], sizes = [1, 1, 112, 112], strides = [1, 1, 1, 1]} : vector<1x4x112x112xf32> to vector<1x1x112x112xf32>
    %83 = vector.shape_cast %82 : vector<1x1x112x112xf32> to vector<1x112x112xf32>
    %c2_32 = arith.constant 2 : index
    %c3_33 = arith.constant 3 : index
    %84 = memref.load %arg8[%c2_32, %c3_33] : memref<8x4xf32, #tpu.memory_space<smem>>
    %85 = vector.broadcast %84 : f32 to vector<1x112x112xf32>
    %86 = arith.mulf %83, %85 : vector<1x112x112xf32>
    %87 = arith.addf %81, %86 : vector<1x112x112xf32>
    %c2_34 = arith.constant 2 : index
    %88 = memref.load %arg9[%c2_34] : memref<8xf32, #tpu.memory_space<smem>>
    %89 = vector.broadcast %88 : f32 to vector<1x112x112xf32>
    %90 = arith.addf %87, %89 : vector<1x112x112xf32>
    %cst_35 = arith.constant 0.000000e+00 : f32
    %91 = vector.broadcast %cst_35 : f32 to vector<1x112x112xf32>
    %92 = arith.maximumf %90, %91 : vector<1x112x112xf32>
    %93 = vector.extract_strided_slice %8 {offsets = [0, 0, 0, 0], sizes = [1, 1, 112, 112], strides = [1, 1, 1, 1]} : vector<1x4x112x112xf32> to vector<1x1x112x112xf32>
    %94 = vector.shape_cast %93 : vector<1x1x112x112xf32> to vector<1x112x112xf32>
    %c3_36 = arith.constant 3 : index
    %c0_37 = arith.constant 0 : index
    %95 = memref.load %arg8[%c3_36, %c0_37] : memref<8x4xf32, #tpu.memory_space<smem>>
    %96 = vector.broadcast %95 : f32 to vector<1x112x112xf32>
    %97 = arith.mulf %94, %96 : vector<1x112x112xf32>
    %98 = vector.extract_strided_slice %8 {offsets = [0, 1, 0, 0], sizes = [1, 1, 112, 112], strides = [1, 1, 1, 1]} : vector<1x4x112x112xf32> to vector<1x1x112x112xf32>
    %99 = vector.shape_cast %98 : vector<1x1x112x112xf32> to vector<1x112x112xf32>
    %c3_38 = arith.constant 3 : index
    %c1_39 = arith.constant 1 : index
    %100 = memref.load %arg8[%c3_38, %c1_39] : memref<8x4xf32, #tpu.memory_space<smem>>
    %101 = vector.broadcast %100 : f32 to vector<1x112x112xf32>
    %102 = arith.mulf %99, %101 : vector<1x112x112xf32>
    %103 = arith.addf %97, %102 : vector<1x112x112xf32>
    %104 = vector.extract_strided_slice %8 {offsets = [0, 2, 0, 0], sizes = [1, 1, 112, 112], strides = [1, 1, 1, 1]} : vector<1x4x112x112xf32> to vector<1x1x112x112xf32>
    %105 = vector.shape_cast %104 : vector<1x1x112x112xf32> to vector<1x112x112xf32>
    %c3_40 = arith.constant 3 : index
    %c2_41 = arith.constant 2 : index
    %106 = memref.load %arg8[%c3_40, %c2_41] : memref<8x4xf32, #tpu.memory_space<smem>>
    %107 = vector.broadcast %106 : f32 to vector<1x112x112xf32>
    %108 = arith.mulf %105, %107 : vector<1x112x112xf32>
    %109 = arith.addf %103, %108 : vector<1x112x112xf32>
    %110 = vector.extract_strided_slice %8 {offsets = [0, 3, 0, 0], sizes = [1, 1, 112, 112], strides = [1, 1, 1, 1]} : vector<1x4x112x112xf32> to vector<1x1x112x112xf32>
    %111 = vector.shape_cast %110 : vector<1x1x112x112xf32> to vector<1x112x112xf32>
    %c3_42 = arith.constant 3 : index
    %c3_43 = arith.constant 3 : index
    %112 = memref.load %arg8[%c3_42, %c3_43] : memref<8x4xf32, #tpu.memory_space<smem>>
    %113 = vector.broadcast %112 : f32 to vector<1x112x112xf32>
    %114 = arith.mulf %111, %113 : vector<1x112x112xf32>
    %115 = arith.addf %109, %114 : vector<1x112x112xf32>
    %c3_44 = arith.constant 3 : index
    %116 = memref.load %arg9[%c3_44] : memref<8xf32, #tpu.memory_space<smem>>
    %117 = vector.broadcast %116 : f32 to vector<1x112x112xf32>
    %118 = arith.addf %115, %117 : vector<1x112x112xf32>
    %cst_45 = arith.constant 0.000000e+00 : f32
    %119 = vector.broadcast %cst_45 : f32 to vector<1x112x112xf32>
    %120 = arith.maximumf %118, %119 : vector<1x112x112xf32>
    %121 = vector.extract_strided_slice %8 {offsets = [0, 0, 0, 0], sizes = [1, 1, 112, 112], strides = [1, 1, 1, 1]} : vector<1x4x112x112xf32> to vector<1x1x112x112xf32>
    %122 = vector.shape_cast %121 : vector<1x1x112x112xf32> to vector<1x112x112xf32>
    %c4 = arith.constant 4 : index
    %c0_46 = arith.constant 0 : index
    %123 = memref.load %arg8[%c4, %c0_46] : memref<8x4xf32, #tpu.memory_space<smem>>
    %124 = vector.broadcast %123 : f32 to vector<1x112x112xf32>
    %125 = arith.mulf %122, %124 : vector<1x112x112xf32>
    %126 = vector.extract_strided_slice %8 {offsets = [0, 1, 0, 0], sizes = [1, 1, 112, 112], strides = [1, 1, 1, 1]} : vector<1x4x112x112xf32> to vector<1x1x112x112xf32>
    %127 = vector.shape_cast %126 : vector<1x1x112x112xf32> to vector<1x112x112xf32>
    %c4_47 = arith.constant 4 : index
    %c1_48 = arith.constant 1 : index
    %128 = memref.load %arg8[%c4_47, %c1_48] : memref<8x4xf32, #tpu.memory_space<smem>>
    %129 = vector.broadcast %128 : f32 to vector<1x112x112xf32>
    %130 = arith.mulf %127, %129 : vector<1x112x112xf32>
    %131 = arith.addf %125, %130 : vector<1x112x112xf32>
    %132 = vector.extract_strided_slice %8 {offsets = [0, 2, 0, 0], sizes = [1, 1, 112, 112], strides = [1, 1, 1, 1]} : vector<1x4x112x112xf32> to vector<1x1x112x112xf32>
    %133 = vector.shape_cast %132 : vector<1x1x112x112xf32> to vector<1x112x112xf32>
    %c4_49 = arith.constant 4 : index
    %c2_50 = arith.constant 2 : index
    %134 = memref.load %arg8[%c4_49, %c2_50] : memref<8x4xf32, #tpu.memory_space<smem>>
    %135 = vector.broadcast %134 : f32 to vector<1x112x112xf32>
    %136 = arith.mulf %133, %135 : vector<1x112x112xf32>
    %137 = arith.addf %131, %136 : vector<1x112x112xf32>
    %138 = vector.extract_strided_slice %8 {offsets = [0, 3, 0, 0], sizes = [1, 1, 112, 112], strides = [1, 1, 1, 1]} : vector<1x4x112x112xf32> to vector<1x1x112x112xf32>
    %139 = vector.shape_cast %138 : vector<1x1x112x112xf32> to vector<1x112x112xf32>
    %c4_51 = arith.constant 4 : index
    %c3_52 = arith.constant 3 : index
    %140 = memref.load %arg8[%c4_51, %c3_52] : memref<8x4xf32, #tpu.memory_space<smem>>
    %141 = vector.broadcast %140 : f32 to vector<1x112x112xf32>
    %142 = arith.mulf %139, %141 : vector<1x112x112xf32>
    %143 = arith.addf %137, %142 : vector<1x112x112xf32>
    %c4_53 = arith.constant 4 : index
    %144 = memref.load %arg9[%c4_53] : memref<8xf32, #tpu.memory_space<smem>>
    %145 = vector.broadcast %144 : f32 to vector<1x112x112xf32>
    %146 = arith.addf %143, %145 : vector<1x112x112xf32>
    %cst_54 = arith.constant 0.000000e+00 : f32
    %147 = vector.broadcast %cst_54 : f32 to vector<1x112x112xf32>
    %148 = arith.maximumf %146, %147 : vector<1x112x112xf32>
    %149 = vector.extract_strided_slice %8 {offsets = [0, 0, 0, 0], sizes = [1, 1, 112, 112], strides = [1, 1, 1, 1]} : vector<1x4x112x112xf32> to vector<1x1x112x112xf32>
    %150 = vector.shape_cast %149 : vector<1x1x112x112xf32> to vector<1x112x112xf32>
    %c5 = arith.constant 5 : index
    %c0_55 = arith.constant 0 : index
    %151 = memref.load %arg8[%c5, %c0_55] : memref<8x4xf32, #tpu.memory_space<smem>>
    %152 = vector.broadcast %151 : f32 to vector<1x112x112xf32>
    %153 = arith.mulf %150, %152 : vector<1x112x112xf32>
    %154 = vector.extract_strided_slice %8 {offsets = [0, 1, 0, 0], sizes = [1, 1, 112, 112], strides = [1, 1, 1, 1]} : vector<1x4x112x112xf32> to vector<1x1x112x112xf32>
    %155 = vector.shape_cast %154 : vector<1x1x112x112xf32> to vector<1x112x112xf32>
    %c5_56 = arith.constant 5 : index
    %c1_57 = arith.constant 1 : index
    %156 = memref.load %arg8[%c5_56, %c1_57] : memref<8x4xf32, #tpu.memory_space<smem>>
    %157 = vector.broadcast %156 : f32 to vector<1x112x112xf32>
    %158 = arith.mulf %155, %157 : vector<1x112x112xf32>
    %159 = arith.addf %153, %158 : vector<1x112x112xf32>
    %160 = vector.extract_strided_slice %8 {offsets = [0, 2, 0, 0], sizes = [1, 1, 112, 112], strides = [1, 1, 1, 1]} : vector<1x4x112x112xf32> to vector<1x1x112x112xf32>
    %161 = vector.shape_cast %160 : vector<1x1x112x112xf32> to vector<1x112x112xf32>
    %c5_58 = arith.constant 5 : index
    %c2_59 = arith.constant 2 : index
    %162 = memref.load %arg8[%c5_58, %c2_59] : memref<8x4xf32, #tpu.memory_space<smem>>
    %163 = vector.broadcast %162 : f32 to vector<1x112x112xf32>
    %164 = arith.mulf %161, %163 : vector<1x112x112xf32>
    %165 = arith.addf %159, %164 : vector<1x112x112xf32>
    %166 = vector.extract_strided_slice %8 {offsets = [0, 3, 0, 0], sizes = [1, 1, 112, 112], strides = [1, 1, 1, 1]} : vector<1x4x112x112xf32> to vector<1x1x112x112xf32>
    %167 = vector.shape_cast %166 : vector<1x1x112x112xf32> to vector<1x112x112xf32>
    %c5_60 = arith.constant 5 : index
    %c3_61 = arith.constant 3 : index
    %168 = memref.load %arg8[%c5_60, %c3_61] : memref<8x4xf32, #tpu.memory_space<smem>>
    %169 = vector.broadcast %168 : f32 to vector<1x112x112xf32>
    %170 = arith.mulf %167, %169 : vector<1x112x112xf32>
    %171 = arith.addf %165, %170 : vector<1x112x112xf32>
    %c5_62 = arith.constant 5 : index
    %172 = memref.load %arg9[%c5_62] : memref<8xf32, #tpu.memory_space<smem>>
    %173 = vector.broadcast %172 : f32 to vector<1x112x112xf32>
    %174 = arith.addf %171, %173 : vector<1x112x112xf32>
    %cst_63 = arith.constant 0.000000e+00 : f32
    %175 = vector.broadcast %cst_63 : f32 to vector<1x112x112xf32>
    %176 = arith.maximumf %174, %175 : vector<1x112x112xf32>
    %177 = vector.extract_strided_slice %8 {offsets = [0, 0, 0, 0], sizes = [1, 1, 112, 112], strides = [1, 1, 1, 1]} : vector<1x4x112x112xf32> to vector<1x1x112x112xf32>
    %178 = vector.shape_cast %177 : vector<1x1x112x112xf32> to vector<1x112x112xf32>
    %c6 = arith.constant 6 : index
    %c0_64 = arith.constant 0 : index
    %179 = memref.load %arg8[%c6, %c0_64] : memref<8x4xf32, #tpu.memory_space<smem>>
    %180 = vector.broadcast %179 : f32 to vector<1x112x112xf32>
    %181 = arith.mulf %178, %180 : vector<1x112x112xf32>
    %182 = vector.extract_strided_slice %8 {offsets = [0, 1, 0, 0], sizes = [1, 1, 112, 112], strides = [1, 1, 1, 1]} : vector<1x4x112x112xf32> to vector<1x1x112x112xf32>
    %183 = vector.shape_cast %182 : vector<1x1x112x112xf32> to vector<1x112x112xf32>
    %c6_65 = arith.constant 6 : index
    %c1_66 = arith.constant 1 : index
    %184 = memref.load %arg8[%c6_65, %c1_66] : memref<8x4xf32, #tpu.memory_space<smem>>
    %185 = vector.broadcast %184 : f32 to vector<1x112x112xf32>
    %186 = arith.mulf %183, %185 : vector<1x112x112xf32>
    %187 = arith.addf %181, %186 : vector<1x112x112xf32>
    %188 = vector.extract_strided_slice %8 {offsets = [0, 2, 0, 0], sizes = [1, 1, 112, 112], strides = [1, 1, 1, 1]} : vector<1x4x112x112xf32> to vector<1x1x112x112xf32>
    %189 = vector.shape_cast %188 : vector<1x1x112x112xf32> to vector<1x112x112xf32>
    %c6_67 = arith.constant 6 : index
    %c2_68 = arith.constant 2 : index
    %190 = memref.load %arg8[%c6_67, %c2_68] : memref<8x4xf32, #tpu.memory_space<smem>>
    %191 = vector.broadcast %190 : f32 to vector<1x112x112xf32>
    %192 = arith.mulf %189, %191 : vector<1x112x112xf32>
    %193 = arith.addf %187, %192 : vector<1x112x112xf32>
    %194 = vector.extract_strided_slice %8 {offsets = [0, 3, 0, 0], sizes = [1, 1, 112, 112], strides = [1, 1, 1, 1]} : vector<1x4x112x112xf32> to vector<1x1x112x112xf32>
    %195 = vector.shape_cast %194 : vector<1x1x112x112xf32> to vector<1x112x112xf32>
    %c6_69 = arith.constant 6 : index
    %c3_70 = arith.constant 3 : index
    %196 = memref.load %arg8[%c6_69, %c3_70] : memref<8x4xf32, #tpu.memory_space<smem>>
    %197 = vector.broadcast %196 : f32 to vector<1x112x112xf32>
    %198 = arith.mulf %195, %197 : vector<1x112x112xf32>
    %199 = arith.addf %193, %198 : vector<1x112x112xf32>
    %c6_71 = arith.constant 6 : index
    %200 = memref.load %arg9[%c6_71] : memref<8xf32, #tpu.memory_space<smem>>
    %201 = vector.broadcast %200 : f32 to vector<1x112x112xf32>
    %202 = arith.addf %199, %201 : vector<1x112x112xf32>
    %cst_72 = arith.constant 0.000000e+00 : f32
    %203 = vector.broadcast %cst_72 : f32 to vector<1x112x112xf32>
    %204 = arith.maximumf %202, %203 : vector<1x112x112xf32>
    %205 = vector.extract_strided_slice %8 {offsets = [0, 0, 0, 0], sizes = [1, 1, 112, 112], strides = [1, 1, 1, 1]} : vector<1x4x112x112xf32> to vector<1x1x112x112xf32>
    %206 = vector.shape_cast %205 : vector<1x1x112x112xf32> to vector<1x112x112xf32>
    %c7 = arith.constant 7 : index
    %c0_73 = arith.constant 0 : index
    %207 = memref.load %arg8[%c7, %c0_73] : memref<8x4xf32, #tpu.memory_space<smem>>
    %208 = vector.broadcast %207 : f32 to vector<1x112x112xf32>
    %209 = arith.mulf %206, %208 : vector<1x112x112xf32>
    %210 = vector.extract_strided_slice %8 {offsets = [0, 1, 0, 0], sizes = [1, 1, 112, 112], strides = [1, 1, 1, 1]} : vector<1x4x112x112xf32> to vector<1x1x112x112xf32>
    %211 = vector.shape_cast %210 : vector<1x1x112x112xf32> to vector<1x112x112xf32>
    %c7_74 = arith.constant 7 : index
    %c1_75 = arith.constant 1 : index
    %212 = memref.load %arg8[%c7_74, %c1_75] : memref<8x4xf32, #tpu.memory_space<smem>>
    %213 = vector.broadcast %212 : f32 to vector<1x112x112xf32>
    %214 = arith.mulf %211, %213 : vector<1x112x112xf32>
    %215 = arith.addf %209, %214 : vector<1x112x112xf32>
    %216 = vector.extract_strided_slice %8 {offsets = [0, 2, 0, 0], sizes = [1, 1, 112, 112], strides = [1, 1, 1, 1]} : vector<1x4x112x112xf32> to vector<1x1x112x112xf32>
    %217 = vector.shape_cast %216 : vector<1x1x112x112xf32> to vector<1x112x112xf32>
    %c7_76 = arith.constant 7 : index
    %c2_77 = arith.constant 2 : index
    %218 = memref.load %arg8[%c7_76, %c2_77] : memref<8x4xf32, #tpu.memory_space<smem>>
    %219 = vector.broadcast %218 : f32 to vector<1x112x112xf32>
    %220 = arith.mulf %217, %219 : vector<1x112x112xf32>
    %221 = arith.addf %215, %220 : vector<1x112x112xf32>
    %222 = vector.extract_strided_slice %8 {offsets = [0, 3, 0, 0], sizes = [1, 1, 112, 112], strides = [1, 1, 1, 1]} : vector<1x4x112x112xf32> to vector<1x1x112x112xf32>
    %223 = vector.shape_cast %222 : vector<1x1x112x112xf32> to vector<1x112x112xf32>
    %c7_78 = arith.constant 7 : index
    %c3_79 = arith.constant 3 : index
    %224 = memref.load %arg8[%c7_78, %c3_79] : memref<8x4xf32, #tpu.memory_space<smem>>
    %225 = vector.broadcast %224 : f32 to vector<1x112x112xf32>
    %226 = arith.mulf %223, %225 : vector<1x112x112xf32>
    %227 = arith.addf %221, %226 : vector<1x112x112xf32>
    %c7_80 = arith.constant 7 : index
    %228 = memref.load %arg9[%c7_80] : memref<8xf32, #tpu.memory_space<smem>>
    %229 = vector.broadcast %228 : f32 to vector<1x112x112xf32>
    %230 = arith.addf %227, %229 : vector<1x112x112xf32>
    %cst_81 = arith.constant 0.000000e+00 : f32
    %231 = vector.broadcast %cst_81 : f32 to vector<1x112x112xf32>
    %232 = arith.maximumf %230, %231 : vector<1x112x112xf32>
    %233 = vector.shape_cast %36 : vector<1x112x112xf32> to vector<1x1x112x112xf32>
    %234 = vector.shape_cast %64 : vector<1x112x112xf32> to vector<1x1x112x112xf32>
    %235 = vector.shape_cast %92 : vector<1x112x112xf32> to vector<1x1x112x112xf32>
    %236 = vector.shape_cast %120 : vector<1x112x112xf32> to vector<1x1x112x112xf32>
    %237 = vector.shape_cast %148 : vector<1x112x112xf32> to vector<1x1x112x112xf32>
    %238 = vector.shape_cast %176 : vector<1x112x112xf32> to vector<1x1x112x112xf32>
    %239 = vector.shape_cast %204 : vector<1x112x112xf32> to vector<1x1x112x112xf32>
    %240 = vector.shape_cast %232 : vector<1x112x112xf32> to vector<1x1x112x112xf32>
    %241 = tpu.concatenate %233, %234, %235, %236, %237, %238, %239, %240 in 1 : vector<1x1x112x112xf32>, vector<1x1x112x112xf32>, vector<1x1x112x112xf32>, vector<1x1x112x112xf32>, vector<1x1x112x112xf32>, vector<1x1x112x112xf32>, vector<1x1x112x112xf32>, vector<1x1x112x112xf32> -> vector<1x8x112x112xf32>
    %242 = arith.truncf %241 : vector<1x8x112x112xf32> to vector<1x8x112x112xbf16>
    %243 = vector.shape_cast %242 : vector<1x8x112x112xbf16> to vector<896x112xbf16>
    %c0_82 = arith.constant 0 : index
    %c0_83 = arith.constant 0 : index
    %244 = vector.load %arg4[%c0_82, %c0_83] : memref<112x4xbf16, #tpu.memory_space<vmem>>, vector<112x4xbf16>
    %cst_84 = arith.constant dense<0.000000e+00> : vector<896x4xf32>
    %245 = tpu.matmul %243, %244, %cst_84 {dimension_numbers = #tpu.dot_dimension_numbers<[1], [0], [0], [1], [0, 0, 1, 1], [], []>} : vector<896x112xbf16>, vector<112x4xbf16>, vector<896x4xf32> -> vector<896x4xf32>
    %246 = vector.shape_cast %245 : vector<896x4xf32> to vector<8x112x4xf32>
    %247 = arith.truncf %246 : vector<8x112x4xf32> to vector<8x112x4xbf16>
    %c0_85 = arith.constant 0 : index
    %c0_86 = arith.constant 0 : index
    %c0_87 = arith.constant 0 : index
    %248 = vector.load %arg5[%c0_85, %c0_86, %c0_87] : memref<8x4x112xbf16, #tpu.memory_space<vmem>>, vector<8x4x112xbf16>
    "tpu.trace_start"() <{level = 10 : i32, message = "xij,xjk->xik"}> : () -> ()
    %cst_88 = arith.constant dense<0.000000e+00> : vector<8x4x4xf32>
    %249 = tpu.matmul %248, %247, %cst_88 {dimension_numbers = #tpu.dot_dimension_numbers<[2], [1], [1], [2], [0, 0, 0, 1, 1, 2], [0], [0]>} : vector<8x4x112xbf16>, vector<8x112x4xbf16>, vector<8x4x4xf32> -> vector<8x4x4xf32>
    "tpu.trace_stop"() : () -> ()
    %250 = vector.shape_cast %249 : vector<8x4x4xf32> to vector<1x8x4x4xf32>
    %c0_89 = arith.constant 0 : index
    %c0_90 = arith.constant 0 : index
    %c0_91 = arith.constant 0 : index
    %c0_92 = arith.constant 0 : index
    %251 = vector.load %arg12[%c0_89, %c0_90, %c0_91, %c0_92] : memref<1x8x4x4xf32, #tpu.memory_space<vmem>>, vector<1x8x4x4xf32>
    tpu.vector_store %arg12[%c0_89, %c0_90, %c0_91, %c0_92], %250 {strides = array<i32>} : memref<1x8x4x4xf32, #tpu.memory_space<vmem>>, vector<1x8x4x4xf32>,
    %252 = vector.extract_strided_slice %0 {offsets = [0, 0, 0, 0], sizes = [1, 1, 16, 16], strides = [1, 1, 1, 1]} : vector<1x4x16x16xbf16> to vector<1x1x16x16xbf16>
    %253 = vector.shape_cast %252 : vector<1x1x16x16xbf16> to vector<1x16x16xbf16>
    %c0_93 = arith.constant 0 : index
    %c0_94 = arith.constant 0 : index
    %254 = memref.load %arg10[%c0_93, %c0_94] : memref<8x4xf32, #tpu.memory_space<smem>>
    %255 = arith.extf %253 : vector<1x16x16xbf16> to vector<1x16x16xf32>
    %256 = vector.broadcast %254 : f32 to vector<1x16x16xf32>
    %257 = arith.mulf %255, %256 : vector<1x16x16xf32>
    %258 = vector.extract_strided_slice %0 {offsets = [0, 1, 0, 0], sizes = [1, 1, 16, 16], strides = [1, 1, 1, 1]} : vector<1x4x16x16xbf16> to vector<1x1x16x16xbf16>
    %259 = vector.shape_cast %258 : vector<1x1x16x16xbf16> to vector<1x16x16xbf16>
    %c0_95 = arith.constant 0 : index
    %c1_96 = arith.constant 1 : index
    %260 = memref.load %arg10[%c0_95, %c1_96] : memref<8x4xf32, #tpu.memory_space<smem>>
    %261 = arith.extf %259 : vector<1x16x16xbf16> to vector<1x16x16xf32>
    %262 = vector.broadcast %260 : f32 to vector<1x16x16xf32>
    %263 = arith.mulf %261, %262 : vector<1x16x16xf32>
    %264 = arith.addf %257, %263 : vector<1x16x16xf32>
    %265 = vector.extract_strided_slice %0 {offsets = [0, 2, 0, 0], sizes = [1, 1, 16, 16], strides = [1, 1, 1, 1]} : vector<1x4x16x16xbf16> to vector<1x1x16x16xbf16>
    %266 = vector.shape_cast %265 : vector<1x1x16x16xbf16> to vector<1x16x16xbf16>
    %c0_97 = arith.constant 0 : index
    %c2_98 = arith.constant 2 : index
    %267 = memref.load %arg10[%c0_97, %c2_98] : memref<8x4xf32, #tpu.memory_space<smem>>
    %268 = arith.extf %266 : vector<1x16x16xbf16> to vector<1x16x16xf32>
    %269 = vector.broadcast %267 : f32 to vector<1x16x16xf32>
    %270 = arith.mulf %268, %269 : vector<1x16x16xf32>
    %271 = arith.addf %264, %270 : vector<1x16x16xf32>
    %272 = vector.extract_strided_slice %0 {offsets = [0, 3, 0, 0], sizes = [1, 1, 16, 16], strides = [1, 1, 1, 1]} : vector<1x4x16x16xbf16> to vector<1x1x16x16xbf16>
    %273 = vector.shape_cast %272 : vector<1x1x16x16xbf16> to vector<1x16x16xbf16>
    %c0_99 = arith.constant 0 : index
    %c3_100 = arith.constant 3 : index
    %274 = memref.load %arg10[%c0_99, %c3_100] : memref<8x4xf32, #tpu.memory_space<smem>>
    %275 = arith.extf %273 : vector<1x16x16xbf16> to vector<1x16x16xf32>
    %276 = vector.broadcast %274 : f32 to vector<1x16x16xf32>
    %277 = arith.mulf %275, %276 : vector<1x16x16xf32>
    %278 = arith.addf %271, %277 : vector<1x16x16xf32>
    %c0_101 = arith.constant 0 : index
    %279 = memref.load %arg11[%c0_101] : memref<8xf32, #tpu.memory_space<smem>>
    %280 = vector.broadcast %279 : f32 to vector<1x16x16xf32>
    %281 = arith.addf %278, %280 : vector<1x16x16xf32>
    %cst_102 = arith.constant 0.000000e+00 : f32
    %282 = vector.broadcast %cst_102 : f32 to vector<1x16x16xf32>
    %283 = arith.maximumf %281, %282 : vector<1x16x16xf32>
    %284 = vector.extract_strided_slice %0 {offsets = [0, 0, 0, 0], sizes = [1, 1, 16, 16], strides = [1, 1, 1, 1]} : vector<1x4x16x16xbf16> to vector<1x1x16x16xbf16>
    %285 = vector.shape_cast %284 : vector<1x1x16x16xbf16> to vector<1x16x16xbf16>
    %c1_103 = arith.constant 1 : index
    %c0_104 = arith.constant 0 : index
    %286 = memref.load %arg10[%c1_103, %c0_104] : memref<8x4xf32, #tpu.memory_space<smem>>
    %287 = arith.extf %285 : vector<1x16x16xbf16> to vector<1x16x16xf32>
    %288 = vector.broadcast %286 : f32 to vector<1x16x16xf32>
    %289 = arith.mulf %287, %288 : vector<1x16x16xf32>
    %290 = vector.extract_strided_slice %0 {offsets = [0, 1, 0, 0], sizes = [1, 1, 16, 16], strides = [1, 1, 1, 1]} : vector<1x4x16x16xbf16> to vector<1x1x16x16xbf16>
    %291 = vector.shape_cast %290 : vector<1x1x16x16xbf16> to vector<1x16x16xbf16>
    %c1_105 = arith.constant 1 : index
    %c1_106 = arith.constant 1 : index
    %292 = memref.load %arg10[%c1_105, %c1_106] : memref<8x4xf32, #tpu.memory_space<smem>>
    %293 = arith.extf %291 : vector<1x16x16xbf16> to vector<1x16x16xf32>
    %294 = vector.broadcast %292 : f32 to vector<1x16x16xf32>
    %295 = arith.mulf %293, %294 : vector<1x16x16xf32>
    %296 = arith.addf %289, %295 : vector<1x16x16xf32>
    %297 = vector.extract_strided_slice %0 {offsets = [0, 2, 0, 0], sizes = [1, 1, 16, 16], strides = [1, 1, 1, 1]} : vector<1x4x16x16xbf16> to vector<1x1x16x16xbf16>
    %298 = vector.shape_cast %297 : vector<1x1x16x16xbf16> to vector<1x16x16xbf16>
    %c1_107 = arith.constant 1 : index
    %c2_108 = arith.constant 2 : index
    %299 = memref.load %arg10[%c1_107, %c2_108] : memref<8x4xf32, #tpu.memory_space<smem>>
    %300 = arith.extf %298 : vector<1x16x16xbf16> to vector<1x16x16xf32>
    %301 = vector.broadcast %299 : f32 to vector<1x16x16xf32>
    %302 = arith.mulf %300, %301 : vector<1x16x16xf32>
    %303 = arith.addf %296, %302 : vector<1x16x16xf32>
    %304 = vector.extract_strided_slice %0 {offsets = [0, 3, 0, 0], sizes = [1, 1, 16, 16], strides = [1, 1, 1, 1]} : vector<1x4x16x16xbf16> to vector<1x1x16x16xbf16>
    %305 = vector.shape_cast %304 : vector<1x1x16x16xbf16> to vector<1x16x16xbf16>
    %c1_109 = arith.constant 1 : index
    %c3_110 = arith.constant 3 : index
    %306 = memref.load %arg10[%c1_109, %c3_110] : memref<8x4xf32, #tpu.memory_space<smem>>
    %307 = arith.extf %305 : vector<1x16x16xbf16> to vector<1x16x16xf32>
    %308 = vector.broadcast %306 : f32 to vector<1x16x16xf32>
    %309 = arith.mulf %307, %308 : vector<1x16x16xf32>
    %310 = arith.addf %303, %309 : vector<1x16x16xf32>
    %c1_111 = arith.constant 1 : index
    %311 = memref.load %arg11[%c1_111] : memref<8xf32, #tpu.memory_space<smem>>
    %312 = vector.broadcast %311 : f32 to vector<1x16x16xf32>
    %313 = arith.addf %310, %312 : vector<1x16x16xf32>
    %cst_112 = arith.constant 0.000000e+00 : f32
    %314 = vector.broadcast %cst_112 : f32 to vector<1x16x16xf32>
    %315 = arith.maximumf %313, %314 : vector<1x16x16xf32>
    %316 = vector.extract_strided_slice %0 {offsets = [0, 0, 0, 0], sizes = [1, 1, 16, 16], strides = [1, 1, 1, 1]} : vector<1x4x16x16xbf16> to vector<1x1x16x16xbf16>
    %317 = vector.shape_cast %316 : vector<1x1x16x16xbf16> to vector<1x16x16xbf16>
    %c2_113 = arith.constant 2 : index
    %c0_114 = arith.constant 0 : index
    %318 = memref.load %arg10[%c2_113, %c0_114] : memref<8x4xf32, #tpu.memory_space<smem>>
    %319 = arith.extf %317 : vector<1x16x16xbf16> to vector<1x16x16xf32>
    %320 = vector.broadcast %318 : f32 to vector<1x16x16xf32>
    %321 = arith.mulf %319, %320 : vector<1x16x16xf32>
    %322 = vector.extract_strided_slice %0 {offsets = [0, 1, 0, 0], sizes = [1, 1, 16, 16], strides = [1, 1, 1, 1]} : vector<1x4x16x16xbf16> to vector<1x1x16x16xbf16>
    %323 = vector.shape_cast %322 : vector<1x1x16x16xbf16> to vector<1x16x16xbf16>
    %c2_115 = arith.constant 2 : index
    %c1_116 = arith.constant 1 : index
    %324 = memref.load %arg10[%c2_115, %c1_116] : memref<8x4xf32, #tpu.memory_space<smem>>
    %325 = arith.extf %323 : vector<1x16x16xbf16> to vector<1x16x16xf32>
    %326 = vector.broadcast %324 : f32 to vector<1x16x16xf32>
    %327 = arith.mulf %325, %326 : vector<1x16x16xf32>
    %328 = arith.addf %321, %327 : vector<1x16x16xf32>
    %329 = vector.extract_strided_slice %0 {offsets = [0, 2, 0, 0], sizes = [1, 1, 16, 16], strides = [1, 1, 1, 1]} : vector<1x4x16x16xbf16> to vector<1x1x16x16xbf16>
    %330 = vector.shape_cast %329 : vector<1x1x16x16xbf16> to vector<1x16x16xbf16>
    %c2_117 = arith.constant 2 : index
    %c2_118 = arith.constant 2 : index
    %331 = memref.load %arg10[%c2_117, %c2_118] : memref<8x4xf32, #tpu.memory_space<smem>>
    %332 = arith.extf %330 : vector<1x16x16xbf16> to vector<1x16x16xf32>
    %333 = vector.broadcast %331 : f32 to vector<1x16x16xf32>
    %334 = arith.mulf %332, %333 : vector<1x16x16xf32>
    %335 = arith.addf %328, %334 : vector<1x16x16xf32>
    %336 = vector.extract_strided_slice %0 {offsets = [0, 3, 0, 0], sizes = [1, 1, 16, 16], strides = [1, 1, 1, 1]} : vector<1x4x16x16xbf16> to vector<1x1x16x16xbf16>
    %337 = vector.shape_cast %336 : vector<1x1x16x16xbf16> to vector<1x16x16xbf16>
    %c2_119 = arith.constant 2 : index
    %c3_120 = arith.constant 3 : index
    %338 = memref.load %arg10[%c2_119, %c3_120] : memref<8x4xf32, #tpu.memory_space<smem>>
    %339 = arith.extf %337 : vector<1x16x16xbf16> to vector<1x16x16xf32>
    %340 = vector.broadcast %338 : f32 to vector<1x16x16xf32>
    %341 = arith.mulf %339, %340 : vector<1x16x16xf32>
    %342 = arith.addf %335, %341 : vector<1x16x16xf32>
    %c2_121 = arith.constant 2 : index
    %343 = memref.load %arg11[%c2_121] : memref<8xf32, #tpu.memory_space<smem>>
    %344 = vector.broadcast %343 : f32 to vector<1x16x16xf32>
    %345 = arith.addf %342, %344 : vector<1x16x16xf32>
    %cst_122 = arith.constant 0.000000e+00 : f32
    %346 = vector.broadcast %cst_122 : f32 to vector<1x16x16xf32>
    %347 = arith.maximumf %345, %346 : vector<1x16x16xf32>
    %348 = vector.extract_strided_slice %0 {offsets = [0, 0, 0, 0], sizes = [1, 1, 16, 16], strides = [1, 1, 1, 1]} : vector<1x4x16x16xbf16> to vector<1x1x16x16xbf16>
    %349 = vector.shape_cast %348 : vector<1x1x16x16xbf16> to vector<1x16x16xbf16>
    %c3_123 = arith.constant 3 : index
    %c0_124 = arith.constant 0 : index
    %350 = memref.load %arg10[%c3_123, %c0_124] : memref<8x4xf32, #tpu.memory_space<smem>>
    %351 = arith.extf %349 : vector<1x16x16xbf16> to vector<1x16x16xf32>
    %352 = vector.broadcast %350 : f32 to vector<1x16x16xf32>
    %353 = arith.mulf %351, %352 : vector<1x16x16xf32>
    %354 = vector.extract_strided_slice %0 {offsets = [0, 1, 0, 0], sizes = [1, 1, 16, 16], strides = [1, 1, 1, 1]} : vector<1x4x16x16xbf16> to vector<1x1x16x16xbf16>
    %355 = vector.shape_cast %354 : vector<1x1x16x16xbf16> to vector<1x16x16xbf16>
    %c3_125 = arith.constant 3 : index
    %c1_126 = arith.constant 1 : index
    %356 = memref.load %arg10[%c3_125, %c1_126] : memref<8x4xf32, #tpu.memory_space<smem>>
    %357 = arith.extf %355 : vector<1x16x16xbf16> to vector<1x16x16xf32>
    %358 = vector.broadcast %356 : f32 to vector<1x16x16xf32>
    %359 = arith.mulf %357, %358 : vector<1x16x16xf32>
    %360 = arith.addf %353, %359 : vector<1x16x16xf32>
    %361 = vector.extract_strided_slice %0 {offsets = [0, 2, 0, 0], sizes = [1, 1, 16, 16], strides = [1, 1, 1, 1]} : vector<1x4x16x16xbf16> to vector<1x1x16x16xbf16>
    %362 = vector.shape_cast %361 : vector<1x1x16x16xbf16> to vector<1x16x16xbf16>
    %c3_127 = arith.constant 3 : index
    %c2_128 = arith.constant 2 : index
    %363 = memref.load %arg10[%c3_127, %c2_128] : memref<8x4xf32, #tpu.memory_space<smem>>
    %364 = arith.extf %362 : vector<1x16x16xbf16> to vector<1x16x16xf32>
    %365 = vector.broadcast %363 : f32 to vector<1x16x16xf32>
    %366 = arith.mulf %364, %365 : vector<1x16x16xf32>
    %367 = arith.addf %360, %366 : vector<1x16x16xf32>
    %368 = vector.extract_strided_slice %0 {offsets = [0, 3, 0, 0], sizes = [1, 1, 16, 16], strides = [1, 1, 1, 1]} : vector<1x4x16x16xbf16> to vector<1x1x16x16xbf16>
    %369 = vector.shape_cast %368 : vector<1x1x16x16xbf16> to vector<1x16x16xbf16>
    %c3_129 = arith.constant 3 : index
    %c3_130 = arith.constant 3 : index
    %370 = memref.load %arg10[%c3_129, %c3_130] : memref<8x4xf32, #tpu.memory_space<smem>>
    %371 = arith.extf %369 : vector<1x16x16xbf16> to vector<1x16x16xf32>
    %372 = vector.broadcast %370 : f32 to vector<1x16x16xf32>
    %373 = arith.mulf %371, %372 : vector<1x16x16xf32>
    %374 = arith.addf %367, %373 : vector<1x16x16xf32>
    %c3_131 = arith.constant 3 : index
    %375 = memref.load %arg11[%c3_131] : memref<8xf32, #tpu.memory_space<smem>>
    %376 = vector.broadcast %375 : f32 to vector<1x16x16xf32>
    %377 = arith.addf %374, %376 : vector<1x16x16xf32>
    %cst_132 = arith.constant 0.000000e+00 : f32
    %378 = vector.broadcast %cst_132 : f32 to vector<1x16x16xf32>
    %379 = arith.maximumf %377, %378 : vector<1x16x16xf32>
    %380 = vector.extract_strided_slice %0 {offsets = [0, 0, 0, 0], sizes = [1, 1, 16, 16], strides = [1, 1, 1, 1]} : vector<1x4x16x16xbf16> to vector<1x1x16x16xbf16>
    %381 = vector.shape_cast %380 : vector<1x1x16x16xbf16> to vector<1x16x16xbf16>
    %c4_133 = arith.constant 4 : index
    %c0_134 = arith.constant 0 : index
    %382 = memref.load %arg10[%c4_133, %c0_134] : memref<8x4xf32, #tpu.memory_space<smem>>
    %383 = arith.extf %381 : vector<1x16x16xbf16> to vector<1x16x16xf32>
    %384 = vector.broadcast %382 : f32 to vector<1x16x16xf32>
    %385 = arith.mulf %383, %384 : vector<1x16x16xf32>
    %386 = vector.extract_strided_slice %0 {offsets = [0, 1, 0, 0], sizes = [1, 1, 16, 16], strides = [1, 1, 1, 1]} : vector<1x4x16x16xbf16> to vector<1x1x16x16xbf16>
    %387 = vector.shape_cast %386 : vector<1x1x16x16xbf16> to vector<1x16x16xbf16>
    %c4_135 = arith.constant 4 : index
    %c1_136 = arith.constant 1 : index
    %388 = memref.load %arg10[%c4_135, %c1_136] : memref<8x4xf32, #tpu.memory_space<smem>>
    %389 = arith.extf %387 : vector<1x16x16xbf16> to vector<1x16x16xf32>
    %390 = vector.broadcast %388 : f32 to vector<1x16x16xf32>
    %391 = arith.mulf %389, %390 : vector<1x16x16xf32>
    %392 = arith.addf %385, %391 : vector<1x16x16xf32>
    %393 = vector.extract_strided_slice %0 {offsets = [0, 2, 0, 0], sizes = [1, 1, 16, 16], strides = [1, 1, 1, 1]} : vector<1x4x16x16xbf16> to vector<1x1x16x16xbf16>
    %394 = vector.shape_cast %393 : vector<1x1x16x16xbf16> to vector<1x16x16xbf16>
    %c4_137 = arith.constant 4 : index
    %c2_138 = arith.constant 2 : index
    %395 = memref.load %arg10[%c4_137, %c2_138] : memref<8x4xf32, #tpu.memory_space<smem>>
    %396 = arith.extf %394 : vector<1x16x16xbf16> to vector<1x16x16xf32>
    %397 = vector.broadcast %395 : f32 to vector<1x16x16xf32>
    %398 = arith.mulf %396, %397 : vector<1x16x16xf32>
    %399 = arith.addf %392, %398 : vector<1x16x16xf32>
    %400 = vector.extract_strided_slice %0 {offsets = [0, 3, 0, 0], sizes = [1, 1, 16, 16], strides = [1, 1, 1, 1]} : vector<1x4x16x16xbf16> to vector<1x1x16x16xbf16>
    %401 = vector.shape_cast %400 : vector<1x1x16x16xbf16> to vector<1x16x16xbf16>
    %c4_139 = arith.constant 4 : index
    %c3_140 = arith.constant 3 : index
    %402 = memref.load %arg10[%c4_139, %c3_140] : memref<8x4xf32, #tpu.memory_space<smem>>
    %403 = arith.extf %401 : vector<1x16x16xbf16> to vector<1x16x16xf32>
    %404 = vector.broadcast %402 : f32 to vector<1x16x16xf32>
    %405 = arith.mulf %403, %404 : vector<1x16x16xf32>
    %406 = arith.addf %399, %405 : vector<1x16x16xf32>
    %c4_141 = arith.constant 4 : index
    %407 = memref.load %arg11[%c4_141] : memref<8xf32, #tpu.memory_space<smem>>
    %408 = vector.broadcast %407 : f32 to vector<1x16x16xf32>
    %409 = arith.addf %406, %408 : vector<1x16x16xf32>
    %cst_142 = arith.constant 0.000000e+00 : f32
    %410 = vector.broadcast %cst_142 : f32 to vector<1x16x16xf32>
    %411 = arith.maximumf %409, %410 : vector<1x16x16xf32>
    %412 = vector.extract_strided_slice %0 {offsets = [0, 0, 0, 0], sizes = [1, 1, 16, 16], strides = [1, 1, 1, 1]} : vector<1x4x16x16xbf16> to vector<1x1x16x16xbf16>
    %413 = vector.shape_cast %412 : vector<1x1x16x16xbf16> to vector<1x16x16xbf16>
    %c5_143 = arith.constant 5 : index
    %c0_144 = arith.constant 0 : index
    %414 = memref.load %arg10[%c5_143, %c0_144] : memref<8x4xf32, #tpu.memory_space<smem>>
    %415 = arith.extf %413 : vector<1x16x16xbf16> to vector<1x16x16xf32>
    %416 = vector.broadcast %414 : f32 to vector<1x16x16xf32>
    %417 = arith.mulf %415, %416 : vector<1x16x16xf32>
    %418 = vector.extract_strided_slice %0 {offsets = [0, 1, 0, 0], sizes = [1, 1, 16, 16], strides = [1, 1, 1, 1]} : vector<1x4x16x16xbf16> to vector<1x1x16x16xbf16>
    %419 = vector.shape_cast %418 : vector<1x1x16x16xbf16> to vector<1x16x16xbf16>
    %c5_145 = arith.constant 5 : index
    %c1_146 = arith.constant 1 : index
    %420 = memref.load %arg10[%c5_145, %c1_146] : memref<8x4xf32, #tpu.memory_space<smem>>
    %421 = arith.extf %419 : vector<1x16x16xbf16> to vector<1x16x16xf32>
    %422 = vector.broadcast %420 : f32 to vector<1x16x16xf32>
    %423 = arith.mulf %421, %422 : vector<1x16x16xf32>
    %424 = arith.addf %417, %423 : vector<1x16x16xf32>
    %425 = vector.extract_strided_slice %0 {offsets = [0, 2, 0, 0], sizes = [1, 1, 16, 16], strides = [1, 1, 1, 1]} : vector<1x4x16x16xbf16> to vector<1x1x16x16xbf16>
    %426 = vector.shape_cast %425 : vector<1x1x16x16xbf16> to vector<1x16x16xbf16>
    %c5_147 = arith.constant 5 : index
    %c2_148 = arith.constant 2 : index
    %427 = memref.load %arg10[%c5_147, %c2_148] : memref<8x4xf32, #tpu.memory_space<smem>>
    %428 = arith.extf %426 : vector<1x16x16xbf16> to vector<1x16x16xf32>
    %429 = vector.broadcast %427 : f32 to vector<1x16x16xf32>
    %430 = arith.mulf %428, %429 : vector<1x16x16xf32>
    %431 = arith.addf %424, %430 : vector<1x16x16xf32>
    %432 = vector.extract_strided_slice %0 {offsets = [0, 3, 0, 0], sizes = [1, 1, 16, 16], strides = [1, 1, 1, 1]} : vector<1x4x16x16xbf16> to vector<1x1x16x16xbf16>
    %433 = vector.shape_cast %432 : vector<1x1x16x16xbf16> to vector<1x16x16xbf16>
    %c5_149 = arith.constant 5 : index
    %c3_150 = arith.constant 3 : index
    %434 = memref.load %arg10[%c5_149, %c3_150] : memref<8x4xf32, #tpu.memory_space<smem>>
    %435 = arith.extf %433 : vector<1x16x16xbf16> to vector<1x16x16xf32>
    %436 = vector.broadcast %434 : f32 to vector<1x16x16xf32>
    %437 = arith.mulf %435, %436 : vector<1x16x16xf32>
    %438 = arith.addf %431, %437 : vector<1x16x16xf32>
    %c5_151 = arith.constant 5 : index
    %439 = memref.load %arg11[%c5_151] : memref<8xf32, #tpu.memory_space<smem>>
    %440 = vector.broadcast %439 : f32 to vector<1x16x16xf32>
    %441 = arith.addf %438, %440 : vector<1x16x16xf32>
    %cst_152 = arith.constant 0.000000e+00 : f32
    %442 = vector.broadcast %cst_152 : f32 to vector<1x16x16xf32>
    %443 = arith.maximumf %441, %442 : vector<1x16x16xf32>
    %444 = vector.extract_strided_slice %0 {offsets = [0, 0, 0, 0], sizes = [1, 1, 16, 16], strides = [1, 1, 1, 1]} : vector<1x4x16x16xbf16> to vector<1x1x16x16xbf16>
    %445 = vector.shape_cast %444 : vector<1x1x16x16xbf16> to vector<1x16x16xbf16>
    %c6_153 = arith.constant 6 : index
    %c0_154 = arith.constant 0 : index
    %446 = memref.load %arg10[%c6_153, %c0_154] : memref<8x4xf32, #tpu.memory_space<smem>>
    %447 = arith.extf %445 : vector<1x16x16xbf16> to vector<1x16x16xf32>
    %448 = vector.broadcast %446 : f32 to vector<1x16x16xf32>
    %449 = arith.mulf %447, %448 : vector<1x16x16xf32>
    %450 = vector.extract_strided_slice %0 {offsets = [0, 1, 0, 0], sizes = [1, 1, 16, 16], strides = [1, 1, 1, 1]} : vector<1x4x16x16xbf16> to vector<1x1x16x16xbf16>
    %451 = vector.shape_cast %450 : vector<1x1x16x16xbf16> to vector<1x16x16xbf16>
    %c6_155 = arith.constant 6 : index
    %c1_156 = arith.constant 1 : index
    %452 = memref.load %arg10[%c6_155, %c1_156] : memref<8x4xf32, #tpu.memory_space<smem>>
    %453 = arith.extf %451 : vector<1x16x16xbf16> to vector<1x16x16xf32>
    %454 = vector.broadcast %452 : f32 to vector<1x16x16xf32>
    %455 = arith.mulf %453, %454 : vector<1x16x16xf32>
    %456 = arith.addf %449, %455 : vector<1x16x16xf32>
    %457 = vector.extract_strided_slice %0 {offsets = [0, 2, 0, 0], sizes = [1, 1, 16, 16], strides = [1, 1, 1, 1]} : vector<1x4x16x16xbf16> to vector<1x1x16x16xbf16>
    %458 = vector.shape_cast %457 : vector<1x1x16x16xbf16> to vector<1x16x16xbf16>
    %c6_157 = arith.constant 6 : index
    %c2_158 = arith.constant 2 : index
    %459 = memref.load %arg10[%c6_157, %c2_158] : memref<8x4xf32, #tpu.memory_space<smem>>
    %460 = arith.extf %458 : vector<1x16x16xbf16> to vector<1x16x16xf32>
    %461 = vector.broadcast %459 : f32 to vector<1x16x16xf32>
    %462 = arith.mulf %460, %461 : vector<1x16x16xf32>
    %463 = arith.addf %456, %462 : vector<1x16x16xf32>
    %464 = vector.extract_strided_slice %0 {offsets = [0, 3, 0, 0], sizes = [1, 1, 16, 16], strides = [1, 1, 1, 1]} : vector<1x4x16x16xbf16> to vector<1x1x16x16xbf16>
    %465 = vector.shape_cast %464 : vector<1x1x16x16xbf16> to vector<1x16x16xbf16>
    %c6_159 = arith.constant 6 : index
    %c3_160 = arith.constant 3 : index
    %466 = memref.load %arg10[%c6_159, %c3_160] : memref<8x4xf32, #tpu.memory_space<smem>>
    %467 = arith.extf %465 : vector<1x16x16xbf16> to vector<1x16x16xf32>
    %468 = vector.broadcast %466 : f32 to vector<1x16x16xf32>
    %469 = arith.mulf %467, %468 : vector<1x16x16xf32>
    %470 = arith.addf %463, %469 : vector<1x16x16xf32>
    %c6_161 = arith.constant 6 : index
    %471 = memref.load %arg11[%c6_161] : memref<8xf32, #tpu.memory_space<smem>>
    %472 = vector.broadcast %471 : f32 to vector<1x16x16xf32>
    %473 = arith.addf %470, %472 : vector<1x16x16xf32>
    %cst_162 = arith.constant 0.000000e+00 : f32
    %474 = vector.broadcast %cst_162 : f32 to vector<1x16x16xf32>
    %475 = arith.maximumf %473, %474 : vector<1x16x16xf32>
    %476 = vector.extract_strided_slice %0 {offsets = [0, 0, 0, 0], sizes = [1, 1, 16, 16], strides = [1, 1, 1, 1]} : vector<1x4x16x16xbf16> to vector<1x1x16x16xbf16>
    %477 = vector.shape_cast %476 : vector<1x1x16x16xbf16> to vector<1x16x16xbf16>
    %c7_163 = arith.constant 7 : index
    %c0_164 = arith.constant 0 : index
    %478 = memref.load %arg10[%c7_163, %c0_164] : memref<8x4xf32, #tpu.memory_space<smem>>
    %479 = arith.extf %477 : vector<1x16x16xbf16> to vector<1x16x16xf32>
    %480 = vector.broadcast %478 : f32 to vector<1x16x16xf32>
    %481 = arith.mulf %479, %480 : vector<1x16x16xf32>
    %482 = vector.extract_strided_slice %0 {offsets = [0, 1, 0, 0], sizes = [1, 1, 16, 16], strides = [1, 1, 1, 1]} : vector<1x4x16x16xbf16> to vector<1x1x16x16xbf16>
    %483 = vector.shape_cast %482 : vector<1x1x16x16xbf16> to vector<1x16x16xbf16>
    %c7_165 = arith.constant 7 : index
    %c1_166 = arith.constant 1 : index
    %484 = memref.load %arg10[%c7_165, %c1_166] : memref<8x4xf32, #tpu.memory_space<smem>>
    %485 = arith.extf %483 : vector<1x16x16xbf16> to vector<1x16x16xf32>
    %486 = vector.broadcast %484 : f32 to vector<1x16x16xf32>
    %487 = arith.mulf %485, %486 : vector<1x16x16xf32>
    %488 = arith.addf %481, %487 : vector<1x16x16xf32>
    %489 = vector.extract_strided_slice %0 {offsets = [0, 2, 0, 0], sizes = [1, 1, 16, 16], strides = [1, 1, 1, 1]} : vector<1x4x16x16xbf16> to vector<1x1x16x16xbf16>
    %490 = vector.shape_cast %489 : vector<1x1x16x16xbf16> to vector<1x16x16xbf16>
    %c7_167 = arith.constant 7 : index
    %c2_168 = arith.constant 2 : index
    %491 = memref.load %arg10[%c7_167, %c2_168] : memref<8x4xf32, #tpu.memory_space<smem>>
    %492 = arith.extf %490 : vector<1x16x16xbf16> to vector<1x16x16xf32>
    %493 = vector.broadcast %491 : f32 to vector<1x16x16xf32>
    %494 = arith.mulf %492, %493 : vector<1x16x16xf32>
    %495 = arith.addf %488, %494 : vector<1x16x16xf32>
    %496 = vector.extract_strided_slice %0 {offsets = [0, 3, 0, 0], sizes = [1, 1, 16, 16], strides = [1, 1, 1, 1]} : vector<1x4x16x16xbf16> to vector<1x1x16x16xbf16>
    %497 = vector.shape_cast %496 : vector<1x1x16x16xbf16> to vector<1x16x16xbf16>
    %c7_169 = arith.constant 7 : index
    %c3_170 = arith.constant 3 : index
    %498 = memref.load %arg10[%c7_169, %c3_170] : memref<8x4xf32, #tpu.memory_space<smem>>
    %499 = arith.extf %497 : vector<1x16x16xbf16> to vector<1x16x16xf32>
    %500 = vector.broadcast %498 : f32 to vector<1x16x16xf32>
    %501 = arith.mulf %499, %500 : vector<1x16x16xf32>
    %502 = arith.addf %495, %501 : vector<1x16x16xf32>
    %c7_171 = arith.constant 7 : index
    %503 = memref.load %arg11[%c7_171] : memref<8xf32, #tpu.memory_space<smem>>
    %504 = vector.broadcast %503 : f32 to vector<1x16x16xf32>
    %505 = arith.addf %502, %504 : vector<1x16x16xf32>
    %cst_172 = arith.constant 0.000000e+00 : f32
    %506 = vector.broadcast %cst_172 : f32 to vector<1x16x16xf32>
    %507 = arith.maximumf %505, %506 : vector<1x16x16xf32>
    %508 = vector.shape_cast %283 : vector<1x16x16xf32> to vector<1x1x16x16xf32>
    %509 = vector.shape_cast %315 : vector<1x16x16xf32> to vector<1x1x16x16xf32>
    %510 = vector.shape_cast %347 : vector<1x16x16xf32> to vector<1x1x16x16xf32>
    %511 = vector.shape_cast %379 : vector<1x16x16xf32> to vector<1x1x16x16xf32>
    %512 = vector.shape_cast %411 : vector<1x16x16xf32> to vector<1x1x16x16xf32>
    %513 = vector.shape_cast %443 : vector<1x16x16xf32> to vector<1x1x16x16xf32>
    %514 = vector.shape_cast %475 : vector<1x16x16xf32> to vector<1x1x16x16xf32>
    %515 = vector.shape_cast %507 : vector<1x16x16xf32> to vector<1x1x16x16xf32>
    %516 = tpu.concatenate %508, %509, %510, %511, %512, %513, %514, %515 in 1 : vector<1x1x16x16xf32>, vector<1x1x16x16xf32>, vector<1x1x16x16xf32>, vector<1x1x16x16xf32>, vector<1x1x16x16xf32>, vector<1x1x16x16xf32>, vector<1x1x16x16xf32>, vector<1x1x16x16xf32> -> vector<1x8x16x16xf32>
    %517 = arith.truncf %516 : vector<1x8x16x16xf32> to vector<1x8x16x16xbf16>
    %518 = vector.shape_cast %517 : vector<1x8x16x16xbf16> to vector<128x16xbf16>
    %c0_173 = arith.constant 0 : index
    %c0_174 = arith.constant 0 : index
    %519 = vector.load %arg6[%c0_173, %c0_174] : memref<16x7xbf16, #tpu.memory_space<vmem>>, vector<16x7xbf16>
    %cst_175 = arith.constant dense<0.000000e+00> : vector<128x7xf32>
    %520 = tpu.matmul %518, %519, %cst_175 {dimension_numbers = #tpu.dot_dimension_numbers<[1], [0], [0], [1], [0, 0, 1, 1], [], []>} : vector<128x16xbf16>, vector<16x7xbf16>, vector<128x7xf32> -> vector<128x7xf32>
    %521 = vector.shape_cast %520 : vector<128x7xf32> to vector<8x16x7xf32>
    %522 = arith.truncf %521 : vector<8x16x7xf32> to vector<8x16x7xbf16>
    %c0_176 = arith.constant 0 : index
    %c0_177 = arith.constant 0 : index
    %c0_178 = arith.constant 0 : index
    %523 = vector.load %arg7[%c0_176, %c0_177, %c0_178] : memref<8x7x16xbf16, #tpu.memory_space<vmem>>, vector<8x7x16xbf16>
    "tpu.trace_start"() <{level = 10 : i32, message = "xij,xjk->xik"}> : () -> ()
    %cst_179 = arith.constant dense<0.000000e+00> : vector<8x7x7xf32>
    %524 = tpu.matmul %523, %522, %cst_179 {dimension_numbers = #tpu.dot_dimension_numbers<[2], [1], [1], [2], [0, 0, 0, 1, 1, 2], [0], [0]>} : vector<8x7x16xbf16>, vector<8x16x7xbf16>, vector<8x7x7xf32> -> vector<8x7x7xf32>
    "tpu.trace_stop"() : () -> ()
    %525 = vector.shape_cast %524 : vector<8x7x7xf32> to vector<1x8x7x7xf32>
    %c0_180 = arith.constant 0 : index
    %c0_181 = arith.constant 0 : index
    %c0_182 = arith.constant 0 : index
    %c0_183 = arith.constant 0 : index
    %526 = vector.load %arg13[%c0_180, %c0_181, %c0_182, %c0_183] : memref<1x8x7x7xf32, #tpu.memory_space<vmem>>, vector<1x8x7x7xf32>
    tpu.vector_store %arg13[%c0_180, %c0_181, %c0_182, %c0_183], %525 {strides = array<i32>} : memref<1x8x7x7xf32, #tpu.memory_space<vmem>>, vector<1x8x7x7xf32>,
    return
  }
  func.func @transform_0(%arg0: i32) -> (i32, i32, i32, i32) {
    %c0_i32 = arith.constant 0 : i32
    %c0_i32_0 = arith.constant 0 : i32
    %c0_i32_1 = arith.constant 0 : i32
    %c0_i32_2 = arith.constant 0 : i32
    return %arg0, %c0_i32, %c0_i32_0, %c0_i32_1 : i32, i32, i32, i32
  }
  func.func @transform_1(%arg0: i32) -> (i32, i32) {
    %c0_i32 = arith.constant 0 : i32
    %c0_i32_0 = arith.constant 0 : i32
    %c0_i32_1 = arith.constant 0 : i32
    return %c0_i32, %c0_i32_0 : i32, i32
  }
  func.func @transform_2(%arg0: i32) -> (i32, i32, i32) {
    %c0_i32 = arith.constant 0 : i32
    %c0_i32_0 = arith.constant 0 : i32
    %c0_i32_1 = arith.constant 0 : i32
    %c0_i32_2 = arith.constant 0 : i32
    return %c0_i32, %c0_i32_0, %c0_i32_1 : i32, i32, i32
  }
  func.func @transform_3(%arg0: i32) -> (i32, i32) {
    %c0_i32 = arith.constant 0 : i32
    %c0_i32_0 = arith.constant 0 : i32
    %c0_i32_1 = arith.constant 0 : i32
    return %c0_i32, %c0_i32_0 : i32, i32
  }
  func.func @transform_4(%arg0: i32) -> (i32, i32, i32) {
    %c0_i32 = arith.constant 0 : i32
    %c0_i32_0 = arith.constant 0 : i32
    %c0_i32_1 = arith.constant 0 : i32
    %c0_i32_2 = arith.constant 0 : i32
    return %c0_i32, %c0_i32_0, %c0_i32_1 : i32, i32, i32
  }
  func.func @transform_5(%arg0: i32) -> (i32, i32) {
    %c0_i32 = arith.constant 0 : i32
    %c0_i32_0 = arith.constant 0 : i32
    %c0_i32_1 = arith.constant 0 : i32
    return %c0_i32, %c0_i32_0 : i32, i32
  }
  func.func @transform_6(%arg0: i32) -> (i32, i32, i32) {
    %c0_i32 = arith.constant 0 : i32
    %c0_i32_0 = arith.constant 0 : i32
    %c0_i32_1 = arith.constant 0 : i32
    %c0_i32_2 = arith.constant 0 : i32
    return %c0_i32, %c0_i32_0, %c0_i32_1 : i32, i32, i32
  }
  func.func @transform_7(%arg0: i32) -> (i32, i32) {
    %c0_i32 = arith.constant 0 : i32
    %c0_i32_0 = arith.constant 0 : i32
    %c0_i32_1 = arith.constant 0 : i32
    return %c0_i32, %c0_i32_0 : i32, i32
  }
  func.func @transform_8(%arg0: i32) -> i32 {
    %c0_i32 = arith.constant 0 : i32
    %c0_i32_0 = arith.constant 0 : i32
    return %c0_i32 : i32
  }
  func.func @transform_9(%arg0: i32) -> (i32, i32) {
    %c0_i32 = arith.constant 0 : i32
    %c0_i32_0 = arith.constant 0 : i32
    %c0_i32_1 = arith.constant 0 : i32
    return %c0_i32, %c0_i32_0 : i32, i32
  }
  func.func @transform_10(%arg0: i32) -> i32 {
    %c0_i32 = arith.constant 0 : i32
    %c0_i32_0 = arith.constant 0 : i32
    return %c0_i32 : i32
  }
  func.func @transform_11(%arg0: i32) -> (i32, i32, i32, i32) {
    %c0_i32 = arith.constant 0 : i32
    %c0_i32_0 = arith.constant 0 : i32
    %c0_i32_1 = arith.constant 0 : i32
    %c0_i32_2 = arith.constant 0 : i32
    return %arg0, %c0_i32, %c0_i32_0, %c0_i32_1 : i32, i32, i32, i32
  }
  func.func @transform_12(%arg0: i32) -> (i32, i32, i32, i32) {
    %c0_i32 = arith.constant 0 : i32
    %c0_i32_0 = arith.constant 0 : i32
    %c0_i32_1 = arith.constant 0 : i32
    %c0_i32_2 = arith.constant 0 : i32
    return %arg0, %c0_i32, %c0_i32_0, %c0_i32_1 : i32, i32, i32, i32
  }
}

</mosaic_0001>

<bundles_post_ra>
// kernel: tpu_custom_call.1
= control target key start
LH: loop header
LB: loop body
LE: loop exit
PB: predicated region body
PF: predicated region fallthrough
CT: control target
= control target key end

     0   :  { %s7913_s0 = inlined_call_operand.vmem [shape: bf16[2,4,16,16], index: 0, kind: input, shape index: {}]   ;;  %s7914_s1 = inlined_call_operand.vmem [shape: bf16[16,112], index: 1, kind: input, shape index: {}]   ;;  %s7915_s2 = inlined_call_operand.vmem [shape: bf16[4,112,16], index: 2, kind: input, shape index: {}]   ;;  %s7916_s3 = inlined_call_operand.vmem [shape: bf16[112,4], index: 3, kind: input, shape index: {}]   ;;  %s7917_s4 = inlined_call_operand.vmem [shape: bf16[8,4,112], index: 4, kind: input, shape index: {}]   ;;  %s7918_s5 = inlined_call_operand.vmem [shape: bf16[16,7], index: 5, kind: input, shape index: {}]   ;;  %s7919_s6 = inlined_call_operand.vmem [shape: bf16[8,7,16], index: 6, kind: input, shape index: {}]   ;;  %s7920_s7 = inlined_call_operand.vmem [shape: f32[8,4], index: 7, kind: input, shape index: {}]   ;;  %s7921_s8 = inlined_call_operand.vmem [shape: f32[8], index: 8, kind: input, shape index: {}]   ;;  %s7922_s9 = inlined_call_operand.vmem [shape: f32[8,4], index: 9, kind: input, shape index: {}]   ;;  %s7923_s10 = inlined_call_operand.vmem [shape: f32[8], index: 10, kind: input, shape index: {}]   ;;  %s7924_s11 = inlined_call_operand.vmem [shape: f32[2,8,4,4], index: 11, kind: output, shape index: {0}]   ;;  %s7925_s12 = inlined_call_operand.vmem [shape: f32[2,8,7,7], index: 12, kind: output, shape index: {1}]  }
   0x1   :  { %8040 = sst [smem:[#allocation117_spill]] %s7913_s0 }
   0x2   :  { %8041 = sst [smem:[#allocation118_spill]] %s7914_s1 }
   0x3   :  { %8042 = sst [smem:[#allocation119_spill]] %s7915_s2 }
   0x4   :  { %8043 = sst [smem:[#allocation120_spill]] %s7916_s3 }
   0x5   :  { %8044 = sst [smem:[#allocation121_spill]] %s7920_s7 }
   0x6   :  { %8045 = sst [smem:[#allocation122_spill]] %s7921_s8 }
   0x7   :  { %8046 = sst [smem:[#allocation123_spill]] %s7922_s9 }
   0x8   :  { %8047 = sst [smem:[#allocation124_spill]] %s7923_s10 }
   0x9   :  { %8048 = sst [smem:[#allocation125_spill]] %s7925_s12 }
   0xa   :  { %18 = vsyncpa [#allocation3], 0 }
   0xb   :  { %19 = vsyncpa [#allocation5], 0 }
   0xc   :  { %20 = vsyncpa [#allocation8], 0  ;;  %s5527_s21 = smov 0  }
   0xd LB: > { %8049 = sst [smem:[#allocation12_spill]] %s5454_s21  ;;  %s8050_s8 = sld [smem:[#allocation122_spill]]  ;;  %s5454_s21 = sphi %s5527_s21, %s26_s21  }
   0xe   : > { %s5536_s25 = sadd.s32 4294967295, %s5454_s21   ;;  %p4370_p0 = scmp.ge.s32.totalorder %s5454_s21, 1 }
   0xf   : > { %p319_p1 = scmp.lt.s32.totalorder %s5454_s21, 3  ;;  %p5305_p2 = scmp.eq.s32.totalorder %s5536_s25, 0 }
  0x10   : > { %s8052_s7 = sld [smem:[#allocation121_spill]]  ;;  %s8053_s9 = sld [smem:[#allocation123_spill]] }
  0x11   : > { %p5541_p3 = pnand %p4370_p0, %p319_p1  ;;  %s8055_s10 = sld [smem:[#allocation124_spill]] }
  0x13   : > { %s361_s24 = sshll.u32 %s8050_s8, 4  ;;  %p5292_p4 = pneg %p5541_p3  ;;  %s362_s24 = int_to_ptr.vmem [resolvable:$true] %s361_s24 }
  0x14   : > { %s5376_s19 = scalar_lea.vmem %s362_s24, 16  ;;  %p5384_p10 = scmp.lt.s32.totalorder %s362_s24, %s362_s24 }
  0x15   : > { %p5559_p5 = pnand %p5305_p2, %p5292_p4  ;;  %p5377_p6 = scmp.ne.s32.totalorder %s362_s24, %s5376_s19 }
  0x16   : > { %s350_s29 = sshll.u32 %s8052_s7, 4  ;;  %s372_s14 = sshll.u32 %s8053_s9, 4  ;;  %s5548_s29 = int_to_ptr.vmem [resolvable:$true] %s350_s29  ;;  %s5555_s14 = int_to_ptr.vmem [resolvable:$true] %s372_s14 }
  0x17   : > { %s383_s18 = sshll.u32 %s8055_s10, 4  ;;  %p5378_p7 = pneg %p5559_p5  ;;  %s5566_s18 = int_to_ptr.vmem [resolvable:$true] %s383_s18 }
  0x18   : > { %p5385_p11 = scmp.lt.s32.totalorder %s5376_s19, %s5376_s19 }
  0x19   : > { %p5379_p8 = pnand %p5378_p7, %p5377_p6 }
  0x1a   : > { %p5386_p12 = por %p5385_p11, %p5384_p10 }
  0x1b   : > { %p5380_p9 = pneg %p5379_p8 }
  0x1d   : > { %p5387_p13 = pnand %p5386_p12, %p5380_p9 }
  0x1f   : > { %5390 = shalt.err (!%p5387_p13)
}
  0x20   : > { %s5456_s20 = smov [#allocation4]   ;;  %s5391_s22 = scalar_lea.vmem %s5548_s29, 128 }
  0x21   : > { %5298 = dma.vmem_to_smem (!%p5559_p5), %s362_s24, 16, %s5456_s20, [#allocation5]  }
  0x22   : > { %p5392_p0 = scmp.ne.s32.totalorder %s5548_s29, %s5391_s22  ;;  %p5399_p6 = scmp.lt.s32.totalorder %s5548_s29, %s5548_s29 }
  0x23   : > { %p5400_p8 = scmp.lt.s32.totalorder %s5391_s22, %s5391_s22 }
  0x24   : > { %p5394_p1 = pnand %p5392_p0, %p5378_p7 }
  0x25   : > { %p5401_p10 = por %p5400_p8, %p5399_p6 }
  0x26   : > { %p5395_p4 = pneg %p5394_p1 }
  0x28   : > { %p5402_p9 = pnand %p5401_p10, %p5395_p4 }
  0x2a   : > { %5405 = shalt.err (!%p5402_p9)
}
  0x2b   : > { %s5457_s23 = smov [#allocation2]   ;;  %s5406_s24 = scalar_lea.vmem %s5555_s14, 128 }
  0x2c   : > { %5295 = dma.vmem_to_smem (!%p5559_p5), %s5548_s29, 128, %s5457_s23, [#allocation3]  }
  0x2d   : > { %p5407_p11 = scmp.ne.s32.totalorder %s5555_s14, %s5406_s24  ;;  %p5414_p0 = scmp.lt.s32.totalorder %s5555_s14, %s5555_s14 }
  0x2e   : > { %p5415_p1 = scmp.lt.s32.totalorder %s5406_s24, %s5406_s24 }
  0x2f   : > { %p5409_p12 = pnand %p5407_p11, %p5378_p7 }
  0x30   : > { %p5416_p4 = por %p5415_p1, %p5414_p0 }
  0x31   : > { %p5410_p13 = pneg %p5409_p12 }
  0x33   : > { %p5417_p6 = pnand %p5416_p4, %p5410_p13 }
  0x35   : > { %5420 = shalt.err (!%p5417_p6)
}
  0x36   : > { %s5458_s27 = smov [#allocation6]   ;;  %s5421_s28 = scalar_lea.vmem %s5566_s18, 16 }
  0x37   : > { %5301 = dma.vmem_to_smem (!%p5559_p5), %s5555_s14, 128, %s5458_s27, [#allocation5]  }
  0x38   : > { %p5422_p8 = scmp.ne.s32.totalorder %s5566_s18, %s5421_s28  ;;  %p5429_p11 = scmp.lt.s32.totalorder %s5566_s18, %s5566_s18 }
  0x39   : > { %p5430_p12 = scmp.lt.s32.totalorder %s5421_s28, %s5421_s28 }
  0x3a   : > { %p5424_p10 = pnand %p5422_p8, %p5378_p7 }
  0x3b   : > { %p5431_p13 = por %p5430_p12, %p5429_p11 }
  0x3c   : > { %p5425_p9 = pneg %p5424_p10 }
  0x3e   : > { %p5432_p0 = pnand %p5431_p13, %p5425_p9 }
  0x40   : > { %5435 = shalt.err (!%p5432_p0)
}
  0x41   : > { %s5459_s29 = smov [#allocation7]   ;;  %404 = sbr.rel (%p5541_p3) target bundleno = 1620 (0x654), region = 64 }
  0x42   : > { %5304 = dma.vmem_to_smem (!%p5559_p5), %s5566_s18, 16, %s5459_s29, [#allocation8]  }
  0x48   : > { %5441 = dma.done.wait (%p5305_p2), [#allocation3], 128  }
  0x49   : > { %5443 = vsyncadd (%p5305_p2), [#allocation3], 4294967168 }
  0x4a   : > { %5445 = dma.done.wait (%p5305_p2), [#allocation5], 144  }
  0x4b   : > { %5447 = vsyncadd (%p5305_p2), [#allocation5], 4294967152 }
  0x4c   : > { %5449 = dma.done.wait (%p5305_p2), [#allocation8], 16  }
  0x4d   : > { %5451 = vsyncadd (%p5305_p2), [#allocation8], 4294967280 }
  0x4e   : > { %422 = sfence }
  0x4f   : > { %s8056_s1 = sld [smem:[#allocation118_spill]]  ;;  %p464_p3 = scmp.lt.s32.totalorder %s5536_s25, 1  ;;  %vm516_vm0 = vcmask 130048   ;;  %v7928_v5 = vmov 0.0   ;;  %vm5461_vm1 = vmmov 0   ;;  %vm2434_vm2 = vcmask 916480  }
  0x50   : > { %s8057_s0 = sld [smem:[#allocation117_spill]]  ;;  %4820 = vmatprep.subr.bf16.mxu1 %v7928_v5  ;;  %4822 = vmatprep.mubr.msk.bf16.mxu1 %vm5461_vm1, %v7928_v5  ;;  %s8058_s2 = sld [smem:[#allocation119_spill]]  ;;  %vm3492_vm3 = vcmask 27648   ;;  %vm4230_vm4 = vcmask 55296  }
  0x51   : > { %s8356_s25 = smov (!%p464_p3, %s5536_s25), 1  ;;  %s8059_s3 = sld [smem:[#allocation120_spill]] }
  0x52   : > { %s7926_s13 = sshll.u32 %s8356_s25, 5  ;;  %s4452_s17 = sld [smem:[#allocation2 + $0x1]] }
  0x53   : > { %s1234_s18 = sld [smem:[#allocation2]]  ;;  %s4456_s20 = sld [smem:[#allocation2 + $0x81]] }
  0x54   : > { %s4455_s19 = sld [smem:[#allocation2 + $0x80]]  ;;  %s4461_s23 = sld [smem:[#allocation2 + $0x101]] }
  0x55   : > { %v5327_v0 = vld [vmem:[%s8056_s1] sm:$0xff]   ;;  %s4460_s22 = sld [smem:[#allocation2 + $0x100]]  ;;  %s4453_s27 = sld [smem:[#allocation2 + $0x2]] }
  0x56   : > { %4810 = vmatprep.subr.bf16.mxu0 %v5327_v0  ;;  %s5632_s16 = scalar_lea.vmem %s8057_s0, %s7926_s13  ;;  %v5332_v12 = vld [vmem:[%s8058_s2 + $0x38] sm:$0xff]   ;;  %v5333_v13 = vld [vmem:[%s8058_s2] sm:$0xff]   ;;  %v5335_v21 = vld [vmem:[%s8058_s2 + $0x8] sm:$0xff]   ;;  %s4465_s24 = sld [smem:[#allocation2 + $0x180]] }
  0x57   : > { %4811 = vmatpush3.bf16.msra.mxu0 %v5327_v0  ;;  %v480_v1 = vld [vmem:[%s5632_s16] sm:$0xff]   ;;  %v482_v2 = vld [vmem:[%s5632_s16 + $0x8] sm:$0xff]   ;;  %v484_v3 = vld [vmem:[%s5632_s16 + $0x10] sm:$0xff]   ;;  %s4466_s28 = sld [smem:[#allocation2 + $0x181]]  ;;  %s4457_s29 = sld [smem:[#allocation2 + $0x82]] }
  0x58   : > { %4812 = vmatprep.mubr.msk.bf16.mxu0 %vm516_vm0, %v480_v1  ;;  %v486_v4 = vld [vmem:[%s5632_s16 + $0x18] sm:$0xff]   ;;  %4850 = vmatprep.subr.bf16.mxu0 %v7928_v5  ;;  %v5334_v19 = vld [vmem:[%s8058_s2 + $0x40] sm:$0xff]   ;;  %v5336_v22 = vld [vmem:[%s8058_s2 + $0x48] sm:$0xff]   ;;  %s4462_s26 = sld [smem:[#allocation2 + $0x102]]  ;;  %s4454_s30 = sld [smem:[#allocation2 + $0x3]]  ;;  %v5839_v53 = vstv %s4452_s17 }
  0x59   : > { %v5337_v23 = vld [vmem:[%s8058_s2 + $0x10] sm:$0xff]   ;;  %v5339_v25 = vld [vmem:[%s8058_s2 + $0x18] sm:$0xff]   ;;  %v5341_v27 = vld [vmem:[%s8058_s2 + $0x20] sm:$0xff]   ;;  %s4458_s13 = sld [smem:[#allocation2 + $0x83]]  ;;  %s4470_s14 = sld [smem:[#allocation2 + $0x200]]  ;;  %v5841_v54 = vstv %s1234_s18 }
  0x5a   : > { %4813 = vmatmul.mubr.msk.bf16.vlgmr.msra.gmra.mrb[0].mxu0 %vm516_vm0, %v482_v2  ;;  %v5338_v24 = vld [vmem:[%s8058_s2 + $0x50] sm:$0xff]   ;;  %v5340_v26 = vld [vmem:[%s8058_s2 + $0x58] sm:$0xff]   ;;  %v5342_v28 = vld [vmem:[%s8058_s2 + $0x60] sm:$0xff]   ;;  %s4463_s0 = sld [smem:[#allocation2 + $0x103]]  ;;  %s1340_s15 = sld [smem:[#allocation4]]  ;;  %v5843_v55 = vstv %s4455_s19 }
  0x5b   : > { %4816 = vmatprep.mubr.msk.bf16.mxu0 %vm516_vm0, %v484_v3  ;;  %v5343_v29 = vld [vmem:[%s8058_s2 + $0x28] sm:$0xff]   ;;  %v5345_v31 = vld [vmem:[%s8058_s2 + $0x30] sm:$0xff]   ;;  %v5349_v35 = vld [vmem:[%s8058_s2 + $0x78] sm:$0xff]   ;;  %s4471_s1 = sld [smem:[#allocation2 + $0x201]]  ;;  %s4467_s7 = sld [smem:[#allocation2 + $0x182]]  ;;  %v5845_v56 = vstv %s4456_s20 }
  0x5c   : > { %v5344_v30 = vld [vmem:[%s8058_s2 + $0x68] sm:$0xff]   ;;  %v5347_v33 = vld [vmem:[%s8058_s2 + $0x70] sm:$0xff]   ;;  %v5350_v36 = vld [vmem:[%s8058_s2 + $0xb8] sm:$0xff]   ;;  %s4468_s8 = sld [smem:[#allocation2 + $0x183]]  ;;  %s4475_s9 = sld [smem:[#allocation2 + $0x280]]  ;;  %v5847_v57 = vstv %s4460_s22 }
  0x5d   : > { %v5346_v32 = vld [vmem:[%s8058_s2 + $0xa8] sm:$0xff]   ;;  %v5348_v34 = vld [vmem:[%s8058_s2 + $0xb0] sm:$0xff]   ;;  %v5351_v37 = vld [vmem:[%s8058_s2 + $0x80] sm:$0xff]   ;;  %s4476_s10 = sld [smem:[#allocation2 + $0x281]]  ;;  %s4469_s21 = sld [smem:[#allocation4 + $0x3]]  ;;  %v5849_v58 = vstv %s4453_s27 }
  0x5e   : > { %v5352_v38 = vld [vmem:[%s8058_s2 + $0xc0] sm:$0xff]   ;;  %v5353_v39 = vld [vmem:[%s8058_s2 + $0x88] sm:$0xff]   ;;  %v5355_v41 = vld [vmem:[%s8058_s2 + $0x90] sm:$0xff]   ;;  %s4472_s12 = sld [smem:[#allocation2 + $0x202]]  ;;  %v5851_v59 = vstv %s4461_s23  ;;  %s7291_s17 = sld [smem:[#allocation2 + $0x381]] }
  0x5f   : > { %v5354_v40 = vld [vmem:[%s8058_s2 + $0xc8] sm:$0xff]   ;;  %v5356_v42 = vld [vmem:[%s8058_s2 + $0xd0] sm:$0xff]   ;;  %v5357_v43 = vld [vmem:[%s8058_s2 + $0x98] sm:$0xff]   ;;  %v5853_v60 = vstv %s4465_s24  ;;  %s7299_s18 = sld [smem:[#allocation2 + $0x382]]  ;;  %s7305_s19 = sld [smem:[#allocation2 + $0x383]] }
  0x60   : > { %v5358_v44 = vld [vmem:[%s8058_s2 + $0xd8] sm:$0xff]   ;;  %v5359_v45 = vld [vmem:[%s8058_s2 + $0xa0] sm:$0xff]   ;;  %v5361_v47 = vld [vmem:[%s8059_s3 + $0x8] sm:$0xff]   ;;  %s4459_s2 = sld [smem:[#allocation4 + $0x1]]  ;;  %v5855_v61 = vstv %s4466_s28  ;;  %s7307_s20 = sld [smem:[#allocation4 + $0x7]] }
  0x61   : > { %v5360_v46 = vld [vmem:[%s8059_s3] sm:$0xff]   ;;  %v5362_v48 = vld [vmem:[%s8059_s3 + $0x10] sm:$0xff]   ;;  %v5363_v49 = vld [vmem:[%s8059_s3 + $0x18] sm:$0xff]   ;;  %v5857_v62 = vstv %s4454_s30  ;;  %s8352_s24 = sshll.u32 %s8356_s25, 5  ;;  %s4570_s30 = sld [smem:[#allocation6 + $0x101]] }
  0x62   : > { %4817 = vmatmul.mubr.msk.bf16.gmra.mrb[4].mxu0 %vm516_vm0, %v486_v4  ;;  %v5364_v50 = vld [vmem:[%s8059_s3 + $0x20] sm:$0xff]   ;;  %v5365_v51 = vld [vmem:[%s8059_s3 + $0x28] sm:$0xff]   ;;  %v5366_v52 = vld [vmem:[%s8059_s3 + $0x30] sm:$0xff]   ;;  %s4464_s3 = sld [smem:[#allocation4 + $0x2]]  ;;  %v5859_v63 = vstv %s4457_s29  ;;  %s7695_s29 = scalar_lea.vmem %s7924_s11, %s8352_s24 }
  0x63   : > { %4852 = vmatprep.mubr.msk.bf16.mxu0 %vm5461_vm1, %v7928_v5  ;;  %v5861_v0 = vstv %s4458_s13  ;;  %v5863_v1 = vstv %s4462_s26  ;;  %v5865_v2 = vstv %s1340_s15  ;;  %v5867_v3 = vstv %s4463_s0  ;;  %s6017_s0 = sld [smem:[#allocation2 + $0x203]]  ;;  %s7285_s13 = sld [smem:[#allocation2 + $0x380]] }
  0x64   : > { %v5869_v4 = vstv %s4470_s14  ;;  %s4569_s26 = sld [smem:[#allocation6 + $0x100]]  ;;  %s4571_s14 = sld [smem:[#allocation6 + $0x102]] }
  0x65   : > { %s4572_s15 = sld [smem:[#allocation6 + $0x103]]  ;;  %s7759_s22 = sld [smem:[#allocation6 + $0x300]] }
  0x66   : > { %s7766_s23 = sld [smem:[#allocation6 + $0x301]]  ;;  %s7768_s24 = sld [smem:[#allocation6 + $0x302]] }
  0x67   : > { %s7775_s27 = sld [smem:[#allocation6 + $0x303]]  ;;  %s7783_s28 = sld [smem:[#allocation7 + $0x6]] }
 0x12d   : > { %v4814_v6 = vpop.f32.mrb[0].mxu0 }
 0x12e   : > { %v563_v7 = vpop.f32.mrb[1].mxu0 }
 0x12f   : > { %v4815_v8 = vpop.f32.mrb[2].mxu0 }
 0x130   : > { %v595_v9 = vpack.c.bf16 %v4815_v8, %v4814_v6  ;;  %v566_v10 = vpop.f32.mrb[3].mxu0  ;;  %v5871_v6 = vstv %s4471_s1  ;;  %v5875_v8 = vstv %s4464_s3  ;;  %s4474_s1 = sld [smem:[#allocation4 + $0x4]]  ;;  %s6256_s3 = sld [smem:[#allocation2 + $0x283]] }
 0x131   : > { %v594_v11 = vpack.c.bf16 %v566_v10, %v563_v7  ;;  %v5873_v7 = vstv %s4459_s2  ;;  %8060 = vst [vmem:[#allocation13_spill] sm:$0xff] %v5875_v8  ;;  %v5879_v10 = vstv %s4468_s8  ;;  %s6254_s2 = sld [smem:[#allocation2 + $0x282]]  ;;  %s7100_s8 = sld [smem:[#allocation2 + $0x300]] }
 0x132   : > { %4851 = vmatpush3.bf16.msra.mxu0 %v595_v9  ;;  %v5877_v9 = vstv %s4467_s7  ;;  %8062 = vst [vmem:[#allocation15_spill] sm:$0xff] %v5879_v10  ;;  %s6340_s7 = sld [smem:[#allocation4 + $0x5]] }
 0x133   : > { %4821 = vmatpush3.bf16.msra.mxu1 %v594_v11  ;;  %4910 = vmatprep.subr.bf16.mxu0 %v7928_v5  ;;  %8061 = vst [vmem:[#allocation14_spill] sm:$0xff] %v5877_v9 }
 0x134   : > { %4880 = vmatprep.subr.bf16.mxu1 %v7928_v5 }
 0x135   : > { %4853 = vmatmul.mubr.msk.bf16.vlgmr.msra.gmra.mrb[8].mxu0 %vm516_vm0, %v5332_v12  ;;  %v4818_v14 = vpop.f32.mrb[4].mxu0  ;;  %v5883_v12 = vstv %s4469_s21  ;;  %s7136_s21 = sld [smem:[#allocation4 + $0x6]] }
 0x136   : > { %4823 = vmatmul.mubr.msk.bf16.vlgmr.msra.gmra.mrb[0].mxu1 %vm516_vm0, %v5333_v13  ;;  %4856 = vmatprep.mubr.msk.bf16.mxu0 %vm5461_vm1, %v7928_v5  ;;  %v579_v15 = vpop.f32.mrb[5].mxu0  ;;  %8064 = vst [vmem:[#allocation17_spill] sm:$0xff] %v5883_v12  ;;  %v5885_v13 = vstv %s4472_s12  ;;  %s7124_s12 = sld [smem:[#allocation2 + $0x303]] }
 0x137   : > { %4826 = vmatprep.mubr.msk.bf16.mxu1 %vm5461_vm1, %v7928_v5  ;;  %v4819_v16 = vpop.f32.mrb[6].mxu0  ;;  %8065 = vst [vmem:[#allocation18_spill] sm:$0xff] %v5885_v13 }
 0x138   : > { %v597_v17 = vpack.c.bf16 %v4819_v16, %v4818_v14  ;;  %v582_v18 = vpop.f32.mrb[7].mxu0  ;;  %v5887_v14 = vstv %s4475_s9  ;;  %s7107_s9 = sld [smem:[#allocation2 + $0x301]] }
 0x139   : > { %v596_v20 = vpack.c.bf16 %v582_v18, %v579_v15  ;;  %8066 = vst [vmem:[#allocation19_spill] sm:$0xff] %v5887_v14  ;;  %v5889_v15 = vstv %s4476_s10  ;;  %s7109_s10 = sld [smem:[#allocation2 + $0x302]] }
 0x13a   : > { %4911 = vmatpush3.bf16.msra.mxu0 %v597_v17  ;;  %8067 = vst [vmem:[#allocation20_spill] sm:$0xff] %v5889_v15 }
 0x13b   : > { %4881 = vmatpush3.bf16.msra.mxu1 %v596_v20  ;;  %5066 = vmatprep.subr.bf16.mxu0 %v7928_v5 }
 0x13c   : > { %4940 = vmatprep.subr.bf16.mxu1 %v5360_v46 }
 0x13d   : > { %4857 = vmatmul.mubr.msk.bf16.gmra.mrb[12].mxu0 %vm516_vm0, %v5334_v19 }
 0x13e   : > { %4827 = vmatmul.mubr.msk.bf16.gmra.mrb[4].mxu1 %vm516_vm0, %v5335_v21  ;;  %4860 = vmatprep.mubr.msk.bf16.mxu0 %vm5461_vm1, %v7928_v5 }
 0x13f   : > { %4830 = vmatprep.mubr.msk.bf16.mxu1 %vm5461_vm1, %v7928_v5 }
 0x145   : > { %4861 = vmatmul.mubr.msk.bf16.gmra.mrb[16].mxu0 %vm516_vm0, %v5336_v22 }
 0x146   : > { %4831 = vmatmul.mubr.msk.bf16.gmra.mrb[8].mxu1 %vm516_vm0, %v5337_v23  ;;  %4864 = vmatprep.mubr.msk.bf16.mxu0 %vm5461_vm1, %v7928_v5 }
 0x147   : > { %4834 = vmatprep.mubr.msk.bf16.mxu1 %vm5461_vm1, %v7928_v5 }
 0x14d   : > { %4865 = vmatmul.mubr.msk.bf16.gmra.mrb[20].mxu0 %vm516_vm0, %v5338_v24 }
 0x14e   : > { %4835 = vmatmul.mubr.msk.bf16.gmra.mrb[12].mxu1 %vm516_vm0, %v5339_v25  ;;  %4868 = vmatprep.mubr.msk.bf16.mxu0 %vm5461_vm1, %v7928_v5 }
 0x14f   : > { %4838 = vmatprep.mubr.msk.bf16.mxu1 %vm5461_vm1, %v7928_v5 }
 0x155   : > { %4869 = vmatmul.mubr.msk.bf16.gmra.mrb[24].mxu0 %vm516_vm0, %v5340_v26 }
 0x156   : > { %4839 = vmatmul.mubr.msk.bf16.gmra.mrb[16].mxu1 %vm516_vm0, %v5341_v27  ;;  %4872 = vmatprep.mubr.msk.bf16.mxu0 %vm5461_vm1, %v7928_v5 }
 0x157   : > { %4842 = vmatprep.mubr.msk.bf16.mxu1 %vm5461_vm1, %v7928_v5 }
 0x15d   : > { %4873 = vmatmul.mubr.msk.bf16.gmra.mrb[28].mxu0 %vm516_vm0, %v5342_v28 }
 0x15e   : > { %4843 = vmatmul.mubr.msk.bf16.gmra.mrb[20].mxu1 %vm516_vm0, %v5343_v29  ;;  %4876 = vmatprep.mubr.msk.bf16.mxu0 %vm5461_vm1, %v7928_v5 }
 0x15f   : > { %4846 = vmatprep.mubr.msk.bf16.mxu1 %vm5461_vm1, %v7928_v5 }
 0x165   : > { %4877 = vmatmul.mubr.msk.bf16.gmra.mrb[32].mxu0 %vm516_vm0, %v5344_v30 }
 0x166   : > { %4847 = vmatmul.mubr.msk.bf16.gmra.mrb[24].mxu1 %vm516_vm0, %v5345_v31  ;;  %4912 = vmatprep.mubr.msk.bf16.mxu0 %vm5461_vm1, %v7928_v5 }
 0x167   : > { %4882 = vmatprep.mubr.msk.bf16.mxu1 %vm5461_vm1, %v7928_v5 }
 0x16d   : > { %4913 = vmatmul.mubr.msk.bf16.vlgmr.msra.gmra.mrb[36].mxu0 %vm516_vm0, %v5346_v32 }
 0x16e   : > { %4883 = vmatmul.mubr.msk.bf16.vlgmr.msra.gmra.mrb[28].mxu1 %vm516_vm0, %v5347_v33  ;;  %4916 = vmatprep.mubr.msk.bf16.mxu0 %vm5461_vm1, %v7928_v5 }
 0x16f   : > { %4886 = vmatprep.mubr.msk.bf16.mxu1 %vm5461_vm1, %v7928_v5  ;;  %4941 = vmatpush3.bf16.msra.mxu1 %v5360_v46 }
 0x170   : > { %4942 = vmatprep.subr.bf16.mxu1 %v5361_v47 }
 0x173   : > { %4943 = vmatpush3.bf16.msra.mxu1 %v5361_v47 }
 0x174   : > { %4944 = vmatprep.subr.bf16.mxu1 %v5362_v48 }
 0x175   : > { %4917 = vmatmul.mubr.msk.bf16.gmra.mrb[40].mxu0 %vm516_vm0, %v5348_v34 }
 0x176   : > { %4887 = vmatmul.mubr.msk.bf16.gmra.mrb[32].mxu1 %vm516_vm0, %v5349_v35  ;;  %4920 = vmatprep.mubr.msk.bf16.mxu0 %vm5461_vm1, %v7928_v5 }
 0x177   : > { %4890 = vmatprep.mubr.msk.bf16.mxu1 %vm5461_vm1, %v7928_v5  ;;  %4945 = vmatpush3.bf16.msra.mxu1 %v5362_v48 }
 0x178   : > { %4946 = vmatprep.subr.bf16.mxu1 %v5363_v49 }
 0x17b   : > { %4947 = vmatpush3.bf16.msra.mxu1 %v5363_v49 }
 0x17c   : > { %4948 = vmatprep.subr.bf16.mxu1 %v5364_v50 }
 0x17d   : > { %4921 = vmatmul.mubr.msk.bf16.gmra.mrb[44].mxu0 %vm516_vm0, %v5350_v36 }
 0x17e   : > { %4891 = vmatmul.mubr.msk.bf16.gmra.mrb[36].mxu1 %vm516_vm0, %v5351_v37  ;;  %4924 = vmatprep.mubr.msk.bf16.mxu0 %vm5461_vm1, %v7928_v5 }
 0x17f   : > { %4894 = vmatprep.mubr.msk.bf16.mxu1 %vm5461_vm1, %v7928_v5  ;;  %4949 = vmatpush3.bf16.msra.mxu1 %v5364_v50 }
 0x180   : > { %4950 = vmatprep.subr.bf16.mxu1 %v5365_v51 }
 0x183   : > { %4951 = vmatpush3.bf16.msra.mxu1 %v5365_v51 }
 0x184   : > { %4952 = vmatprep.subr.bf16.mxu1 %v5366_v52 }
 0x185   : > { %4925 = vmatmul.mubr.msk.bf16.gmra.mrb[48].mxu0 %vm516_vm0, %v5352_v38 }
 0x186   : > { %4895 = vmatmul.mubr.msk.bf16.gmra.mrb[40].mxu1 %vm516_vm0, %v5353_v39  ;;  %4928 = vmatprep.mubr.msk.bf16.mxu0 %vm5461_vm1, %v7928_v5 }
 0x187   : > { %4898 = vmatprep.mubr.msk.bf16.mxu1 %vm5461_vm1, %v7928_v5  ;;  %4953 = vmatpush3.bf16.msra.mxu1 %v5366_v52 }
 0x188   : > { %5228 = vmatprep.subr.bf16.mxu1 %v7928_v5 }
 0x18d   : > { %4929 = vmatmul.mubr.msk.bf16.gmra.mrb[52].mxu0 %vm516_vm0, %v5354_v40 }
 0x18e   : > { %4899 = vmatmul.mubr.msk.bf16.gmra.mrb[44].mxu1 %vm516_vm0, %v5355_v41  ;;  %4932 = vmatprep.mubr.msk.bf16.mxu0 %vm5461_vm1, %v7928_v5 }
 0x18f   : > { %4902 = vmatprep.mubr.msk.bf16.mxu1 %vm5461_vm1, %v7928_v5 }
 0x195   : > { %4933 = vmatmul.mubr.msk.bf16.gmra.mrb[56].mxu0 %vm516_vm0, %v5356_v42 }
 0x196   : > { %4903 = vmatmul.mubr.msk.bf16.gmra.mrb[48].mxu1 %vm516_vm0, %v5357_v43  ;;  %4936 = vmatprep.mubr.msk.bf16.mxu0 %vm5461_vm1, %v7928_v5 }
 0x197   : > { %4906 = vmatprep.mubr.msk.bf16.mxu1 %vm5461_vm1, %v7928_v5 }
 0x19d   : > { %4937 = vmatmul.mubr.msk.bf16.gmra.mrb[60].mxu0 %vm516_vm0, %v5358_v44 }
 0x19e   : > { %4907 = vmatmul.mubr.msk.bf16.gmra.mrb[52].mxu1 %vm516_vm0, %v5359_v45  ;;  %5080 = vmatprep.mubr.msk.bf16.mxu0 %vm5461_vm1, %v7928_v5 }
 0x208   : > { %v5881_v11 = vpop.f32.mrb[8].mxu0 }
 0x209   : > { %8063 = vst [vmem:[#allocation16_spill] sm:$0xff] %v5881_v11  ;;  %v5891_v16 = vpop.f32.mrb[0].mxu1  ;;  %v4854_v17 = vpop.f32.mrb[9].mxu0  ;;  %v1252_v18 = vmul.f32 %v5839_v53, %v5881_v11  ;;  %v1388_v19 = vmul.f32 %v5845_v56, %v5881_v11  ;;  %v1524_v20 = vmul.f32 %v5851_v59, %v5881_v11  ;;  %v1660_v21 = vmul.f32 %v5855_v61, %v5881_v11 }
 0x20a   : > { %8068 = vst [vmem:[#allocation21_spill] sm:$0xff] %v5891_v16  ;;  %v4824_v22 = vpop.f32.mrb[1].mxu1  ;;  %v5901_v23 = vpop.f32.mrb[10].mxu0  ;;  %v1236_v24 = vmul.f32 %v5841_v54, %v5891_v16  ;;  %v1372_v25 = vmul.f32 %v5843_v55, %v5891_v16  ;;  %v1508_v26 = vmul.f32 %v5847_v57, %v5891_v16  ;;  %v1644_v27 = vmul.f32 %v5853_v60, %v5891_v16 }
 0x20b   : > { %8069 = vst [vmem:[#allocation22_spill] sm:$0xff] %v5901_v23  ;;  %v5911_v28 = vpop.f32.mrb[2].mxu1  ;;  %v4855_v29 = vpop.f32.mrb[11].mxu0  ;;  %v1253_v30 = vmul.f32 %v5839_v53, %v5901_v23  ;;  %v1389_v31 = vmul.f32 %v5845_v56, %v5901_v23  ;;  %v1525_v32 = vmul.f32 %v5851_v59, %v5901_v23  ;;  %v1661_v33 = vmul.f32 %v5855_v61, %v5901_v23 }
 0x20c   : > { %8070 = vst [vmem:[#allocation23_spill] sm:$0xff] %v5911_v28  ;;  %v4825_v34 = vpop.f32.mrb[3].mxu1  ;;  %v1237_v35 = vmul.f32 %v5841_v54, %v5911_v28  ;;  %v5923_v36 = vadd.f32 %v1252_v18, %v1236_v24  ;;  %v1373_v37 = vmul.f32 %v5843_v55, %v5911_v28  ;;  %v5927_v38 = vadd.f32 %v1388_v19, %v1372_v25 }
 0x20d   : > { %v1509_v39 = vmul.f32 %v5847_v57, %v5911_v28  ;;  %v5931_v40 = vadd.f32 %v1524_v20, %v1508_v26  ;;  %v1645_v41 = vmul.f32 %v5853_v60, %v5911_v28  ;;  %v5935_v42 = vadd.f32 %v1660_v21, %v1644_v27 }
 0x20e   : > { %v5937_v43 = vadd.f32 %v1253_v30, %v1237_v35  ;;  %v5939_v44 = vadd.f32 %v1389_v31, %v1373_v37  ;;  %v1780_v45 = vmul.f32 %v5869_v4, %v5891_v16  ;;  %v1781_v46 = vmul.f32 %v5869_v4, %v5911_v28 }
 0x20f   : > { %v5945_v47 = vadd.f32 %v1525_v32, %v1509_v39  ;;  %v5947_v48 = vadd.f32 %v1661_v33, %v1645_v41  ;;  %v1796_v49 = vmul.f32 %v5871_v6, %v5881_v11  ;;  %v1797_v50 = vmul.f32 %v5871_v6, %v5901_v23 }
 0x210   : > { %v5953_v51 = vpop.f32.mrb[12].mxu0  ;;  %v1916_v52 = vmul.f32 %v5887_v14, %v5891_v16  ;;  %v1917_v17 = vmul.f32 %v5887_v14, %v5911_v28  ;;  %v1932_v18 = vmul.f32 %v5889_v15, %v5881_v11  ;;  %v1933_v19 = vmul.f32 %v5889_v15, %v5901_v23 }
 0x211   : > { %8071 = vst [vmem:[#allocation24_spill] sm:$0xff] %v5953_v51  ;;  %v1254_v20 = vmul.f32 %v5839_v53, %v5953_v51  ;;  %v5965_v21 = vpop.f32.mrb[4].mxu1  ;;  %v4858_v22 = vpop.f32.mrb[13].mxu0  ;;  %v1390_v24 = vmul.f32 %v5845_v56, %v5953_v51  ;;  %v1526_v25 = vmul.f32 %v5851_v59, %v5953_v51  ;;  %v1662_v26 = vmul.f32 %v5855_v61, %v5953_v51 }
 0x212   : > { %8072 = vst [vmem:[#allocation25_spill] sm:$0xff] %v5965_v21  ;;  %v1238_v27 = vmul.f32 %v5841_v54, %v5965_v21  ;;  %v4828_v29 = vpop.f32.mrb[5].mxu1  ;;  %v5975_v30 = vpop.f32.mrb[14].mxu0  ;;  %v1374_v31 = vmul.f32 %v5843_v55, %v5965_v21  ;;  %v1510_v32 = vmul.f32 %v5847_v57, %v5965_v21  ;;  %v1646_v33 = vmul.f32 %v5853_v60, %v5965_v21 }
 0x213   : > { %8073 = vst [vmem:[#allocation26_spill] sm:$0xff] %v5975_v30  ;;  %v1255_v34 = vmul.f32 %v5839_v53, %v5975_v30  ;;  %v5985_v35 = vpop.f32.mrb[6].mxu1  ;;  %v4859_v37 = vpop.f32.mrb[15].mxu0  ;;  %v1391_v39 = vmul.f32 %v5845_v56, %v5975_v30  ;;  %v1527_v41 = vmul.f32 %v5851_v59, %v5975_v30  ;;  %v1663_v22 = vmul.f32 %v5855_v61, %v5975_v30 }
 0x214   : > { %8074 = vst [vmem:[#allocation27_spill] sm:$0xff] %v5985_v35  ;;  %v5993_v29 = vadd.f32 %v1254_v20, %v1238_v27  ;;  %v1239_v5 = vmul.f32 %v5841_v54, %v5985_v35  ;;  %v4829_v23 = vpop.f32.mrb[7].mxu1  ;;  %v1375_v11 = vmul.f32 %v5843_v55, %v5985_v35  ;;  %v5999_v28 = vadd.f32 %v1390_v24, %v1374_v31 }
 0x215   : > { %v1511_v37 = vmul.f32 %v5847_v57, %v5985_v35  ;;  %v6003_v16 = vadd.f32 %v1526_v25, %v1510_v32  ;;  %v1647_v13 = vmul.f32 %v5853_v60, %v5985_v35  ;;  %v6007_v12 = vadd.f32 %v1662_v26, %v1646_v33 }
 0x216   : > { %8075 = vst [vmem:[#allocation28_spill] sm:$0xff] %v5993_v29  ;;  %8076 = vst [vmem:[#allocation29_spill] sm:$0xff] %v5999_v28  ;;  %v6009_v20 = vadd.f32 %v1255_v34, %v1239_v5  ;;  %v6011_v27 = vadd.f32 %v1391_v39, %v1375_v11  ;;  %v6013_v23 = vadd.f32 %v1796_v49, %v1780_v45 }
 0x217   : > { %8077 = vst [vmem:[#allocation30_spill] sm:$0xff] %v6003_v16  ;;  %8078 = vst [vmem:[#allocation31_spill] sm:$0xff] %v6007_v12  ;;  %v6015_v29 = vadd.f32 %v1797_v50, %v1781_v46  ;;  %v6019_v24 = vadd.f32 %v1527_v41, %v1511_v37  ;;  %v6021_v31 = vadd.f32 %v1663_v22, %v1647_v13 }
 0x218   : > { %8079 = vst [vmem:[#allocation32_spill] sm:$0xff] %v6009_v20  ;;  %8080 = vst [vmem:[#allocation33_spill] sm:$0xff] %v6011_v27  ;;  %v1782_v25 = vmul.f32 %v5869_v4, %v5965_v21  ;;  %v1783_v26 = vmul.f32 %v5869_v4, %v5985_v35  ;;  %v6027_v5 = vpop.f32.mrb[16].mxu0  ;;  %v1798_v11 = vmul.f32 %v5871_v6, %v5953_v51 }
 0x219   : > { %8081 = vst [vmem:[#allocation34_spill] sm:$0xff] %v6013_v23  ;;  %8082 = vst [vmem:[#allocation35_spill] sm:$0xff] %v6015_v29  ;;  %v1799_v45 = vmul.f32 %v5871_v6, %v5975_v30  ;;  %v6033_v46 = vadd.f32 %v1932_v18, %v1916_v52  ;;  %v6035_v49 = vadd.f32 %v1933_v19, %v1917_v17  ;;  %v6037_v13 = vpop.f32.mrb[8].mxu1  ;;  %v4862_v50 = vpop.f32.mrb[17].mxu0 }
 0x21a   : > { %8083 = vst [vmem:[#allocation36_spill] sm:$0xff] %v6019_v24  ;;  %8084 = vst [vmem:[#allocation37_spill] sm:$0xff] %v6021_v31  ;;  %v1256_v32 = vmul.f32 %v5839_v53, %v6027_v5  ;;  %v1392_v33 = vmul.f32 %v5845_v56, %v6027_v5  ;;  %v1528_v34 = vmul.f32 %v5851_v59, %v6027_v5  ;;  %v4832_v52 = vpop.f32.mrb[9].mxu1  ;;  %v6047_v18 = vpop.f32.mrb[18].mxu0 }
 0x21b   : > { %8085 = vst [vmem:[#allocation38_spill] sm:$0xff] %v6027_v5  ;;  %8086 = vst [vmem:[#allocation39_spill] sm:$0xff] %v6033_v46  ;;  %v1664_v39 = vmul.f32 %v5855_v61, %v6027_v5  ;;  %v1240_v17 = vmul.f32 %v5841_v54, %v6037_v13  ;;  %v1376_v19 = vmul.f32 %v5843_v55, %v6037_v13  ;;  %v6057_v37 = vpop.f32.mrb[10].mxu1  ;;  %v4863_v50 = vpop.f32.mrb[19].mxu0 }
 0x21c   : > { %8087 = vst [vmem:[#allocation40_spill] sm:$0xff] %v6035_v49  ;;  %8088 = vst [vmem:[#allocation41_spill] sm:$0xff] %v6037_v13  ;;  %v1512_v41 = vmul.f32 %v5847_v57, %v6037_v13  ;;  %v1648_v22 = vmul.f32 %v5853_v60, %v6037_v13  ;;  %v1257_v52 = vmul.f32 %v5839_v53, %v6047_v18  ;;  %v4833_v23 = vpop.f32.mrb[11].mxu1 }
 0x21d   : > { %8089 = vst [vmem:[#allocation42_spill] sm:$0xff] %v6047_v18  ;;  %8090 = vst [vmem:[#allocation43_spill] sm:$0xff] %v6057_v37  ;;  %v1393_v49 = vmul.f32 %v5845_v56, %v6047_v18  ;;  %v1529_v46 = vmul.f32 %v5851_v59, %v6047_v18  ;;  %v1665_v29 = vmul.f32 %v5855_v61, %v6047_v18 }
 0x21e   : > { %v1241_v31 = vmul.f32 %v5841_v54, %v6057_v37  ;;  %v6069_v12 = vadd.f32 %v1256_v32, %v1240_v17  ;;  %v1377_v50 = vmul.f32 %v5843_v55, %v6057_v37  ;;  %v6073_v24 = vadd.f32 %v1392_v33, %v1376_v19 }
 0x21f   : > { %v1513_v16 = vmul.f32 %v5847_v57, %v6057_v37  ;;  %v6077_v27 = vadd.f32 %v1528_v34, %v1512_v41  ;;  %v1649_v20 = vmul.f32 %v5853_v60, %v6057_v37  ;;  %v6081_v28 = vadd.f32 %v1664_v39, %v1648_v22 }
 0x220   : > { %8091 = vst [vmem:[#allocation44_spill] sm:$0xff] %v6069_v12  ;;  %8092 = vst [vmem:[#allocation45_spill] sm:$0xff] %v6073_v24  ;;  %v6083_v23 = vadd.f32 %v1257_v52, %v1241_v31  ;;  %v6085_v8 = vadd.f32 %v1393_v49, %v1377_v50  ;;  %v6088_v32 = vstv %s6017_s0  ;;  %v6090_v17 = vadd.f32 %v1798_v11, %v1782_v25  ;;  %v6100_v41 = vpop.f32.mrb[20].mxu0  ;;  %s7703_s0 = sld [smem:[#allocation7 + $0x2]] }
 0x221   : > { %8093 = vst [vmem:[#allocation46_spill] sm:$0xff] %v6077_v27  ;;  %8094 = vst [vmem:[#allocation47_spill] sm:$0xff] %v6081_v28  ;;  %v6092_v33 = vadd.f32 %v1529_v46, %v1513_v16  ;;  %v6094_v19 = vadd.f32 %v1665_v29, %v1649_v20  ;;  %v6096_v24 = vstv %s4474_s1  ;;  %v6098_v34 = vadd.f32 %v1799_v45, %v1783_v26  ;;  %v6110_v29 = vpop.f32.mrb[12].mxu1  ;;  %v4866_v20 = vpop.f32.mrb[21].mxu0  ;;  %s4574_s1 = sld [smem:[#allocation6 + $0x180]] }
 0x222   : > { %8095 = vst [vmem:[#allocation48_spill] sm:$0xff] %v6083_v23  ;;  %8096 = vst [vmem:[#allocation49_spill] sm:$0xff] %v6085_v8  ;;  %v1784_v31 = vmul.f32 %v5869_v4, %v6037_v13  ;;  %v1785_v49 = vmul.f32 %v5869_v4, %v6057_v37  ;;  %v1800_v25 = vmul.f32 %v5871_v6, %v6027_v5  ;;  %v4836_v39 = vpop.f32.mrb[13].mxu1  ;;  %v6120_v22 = vpop.f32.mrb[22].mxu0 }
 0x223   : > { %8097 = vst [vmem:[#allocation50_spill] sm:$0xff] %v6088_v32  ;;  %8098 = vst [vmem:[#allocation51_spill] sm:$0xff] %v6090_v17  ;;  %v1801_v16 = vmul.f32 %v5871_v6, %v6047_v18  ;;  %v1258_v26 = vmul.f32 %v5839_v53, %v6100_v41  ;;  %v1394_v11 = vmul.f32 %v5845_v56, %v6100_v41  ;;  %v6130_v5 = vpop.f32.mrb[14].mxu1  ;;  %v4867_v37 = vpop.f32.mrb[23].mxu0 }
 0x224   : > { %8099 = vst [vmem:[#allocation52_spill] sm:$0xff] %v6092_v33  ;;  %8100 = vst [vmem:[#allocation53_spill] sm:$0xff] %v6094_v19  ;;  %v1530_v45 = vmul.f32 %v5851_v59, %v6100_v41  ;;  %v1666_v46 = vmul.f32 %v5855_v61, %v6100_v41  ;;  %v1242_v52 = vmul.f32 %v5841_v54, %v6110_v29 }
 0x225   : > { %8101 = vst [vmem:[#allocation54_spill] sm:$0xff] %v6096_v24  ;;  %8102 = vst [vmem:[#allocation55_spill] sm:$0xff] %v6098_v34  ;;  %v1378_v50 = vmul.f32 %v5843_v55, %v6110_v29  ;;  %v1514_v20 = vmul.f32 %v5847_v57, %v6110_v29  ;;  %v1650_v18 = vmul.f32 %v5853_v60, %v6110_v29  ;;  %v4837_v24 = vpop.f32.mrb[15].mxu1 }
 0x226   : > { %8103 = vst [vmem:[#allocation56_spill] sm:$0xff] %v6100_v41  ;;  %8104 = vst [vmem:[#allocation57_spill] sm:$0xff] %v6110_v29  ;;  %v1259_v39 = vmul.f32 %v5839_v53, %v6120_v22  ;;  %v1395_v13 = vmul.f32 %v5845_v56, %v6120_v22  ;;  %v1531_v34 = vmul.f32 %v5851_v59, %v6120_v22 }
 0x227   : > { %8105 = vst [vmem:[#allocation58_spill] sm:$0xff] %v6120_v22  ;;  %8106 = vst [vmem:[#allocation59_spill] sm:$0xff] %v6130_v5  ;;  %v1667_v17 = vmul.f32 %v5855_v61, %v6120_v22  ;;  %v1243_v32 = vmul.f32 %v5841_v54, %v6130_v5  ;;  %v6142_v19 = vadd.f32 %v1258_v26, %v1242_v52 }
 0x228   : > { %v1379_v37 = vmul.f32 %v5843_v55, %v6130_v5  ;;  %v6146_v28 = vadd.f32 %v1394_v11, %v1378_v50  ;;  %v1515_v33 = vmul.f32 %v5847_v57, %v6130_v5  ;;  %v6150_v27 = vadd.f32 %v1530_v45, %v1514_v20 }
 0x229   : > { %v1651_v8 = vmul.f32 %v5853_v60, %v6130_v5  ;;  %v6154_v23 = vadd.f32 %v1666_v46, %v1650_v18  ;;  %v6156_v24 = vadd.f32 %v1259_v39, %v1243_v32  ;;  %v6160_v26 = vadd.f32 %v1800_v25, %v1784_v31  ;;  %v6172_v18 = vpop.f32.mrb[24].mxu0 }
 0x22a   : > { %8107 = vst [vmem:[#allocation60_spill] sm:$0xff] %v6150_v27  ;;  %v6158_v12 = vadd.f32 %v1395_v13, %v1379_v37  ;;  %v6162_v52 = vadd.f32 %v1801_v16, %v1785_v49  ;;  %v6164_v11 = vadd.f32 %v1531_v34, %v1515_v33  ;;  %v1786_v45 = vmul.f32 %v5869_v4, %v6110_v29  ;;  %v4870_v34 = vpop.f32.mrb[25].mxu0 }
 0x22b   : > { %8108 = vst [vmem:[#allocation61_spill] sm:$0xff] %v6154_v23  ;;  %8109 = vst [vmem:[#allocation62_spill] sm:$0xff] %v6156_v24  ;;  %v6166_v50 = vadd.f32 %v1667_v17, %v1651_v8  ;;  %v1787_v20 = vmul.f32 %v5869_v4, %v6130_v5  ;;  %v1802_v13 = vmul.f32 %v5871_v6, %v6100_v41  ;;  %v6186_v17 = vpop.f32.mrb[16].mxu1  ;;  %v6196_v39 = vpop.f32.mrb[26].mxu0 }
 0x22c   : > { %8110 = vst [vmem:[#allocation63_spill] sm:$0xff] %v6158_v12  ;;  %8111 = vst [vmem:[#allocation64_spill] sm:$0xff] %v6160_v26  ;;  %v1803_v32 = vmul.f32 %v5871_v6, %v6120_v22  ;;  %v6180_v33 = vmul.f32 %v5887_v14, %v5965_v21  ;;  %v6184_v8 = vmul.f32 %v5887_v14, %v5985_v35  ;;  %v4840_v46 = vpop.f32.mrb[17].mxu1  ;;  %v4871_v41 = vpop.f32.mrb[27].mxu0 }
 0x22d   : > { %8112 = vst [vmem:[#allocation65_spill] sm:$0xff] %v6162_v52  ;;  %8113 = vst [vmem:[#allocation66_spill] sm:$0xff] %v6164_v11  ;;  %v1260_v31 = vmul.f32 %v5839_v53, %v6172_v18  ;;  %v1396_v49 = vmul.f32 %v5845_v56, %v6172_v18  ;;  %v1532_v25 = vmul.f32 %v5851_v59, %v6172_v18  ;;  %v6206_v22 = vpop.f32.mrb[18].mxu1 }
 0x22e   : > { %8114 = vst [vmem:[#allocation67_spill] sm:$0xff] %v6166_v50  ;;  %8115 = vst [vmem:[#allocation68_spill] sm:$0xff] %v6172_v18  ;;  %v1668_v16 = vmul.f32 %v5855_v61, %v6172_v18  ;;  %v1244_v37 = vmul.f32 %v5841_v54, %v6186_v17  ;;  %v1380_v34 = vmul.f32 %v5843_v55, %v6186_v17 }
 0x22f   : > { %8116 = vst [vmem:[#allocation69_spill] sm:$0xff] %v6184_v8  ;;  %8117 = vst [vmem:[#allocation70_spill] sm:$0xff] %v6186_v17  ;;  %v1516_v35 = vmul.f32 %v5847_v57, %v6186_v17  ;;  %v1652_v21 = vmul.f32 %v5853_v60, %v6186_v17  ;;  %v1261_v46 = vmul.f32 %v5839_v53, %v6196_v39  ;;  %v4841_v8 = vpop.f32.mrb[19].mxu1 }
 0x230   : > { %8118 = vst [vmem:[#allocation71_spill] sm:$0xff] %v6196_v39  ;;  %8119 = vst [vmem:[#allocation72_spill] sm:$0xff] %v6206_v22  ;;  %v1397_v5 = vmul.f32 %v5845_v56, %v6196_v39  ;;  %v1533_v29 = vmul.f32 %v5851_v59, %v6196_v39  ;;  %v1669_v14 = vmul.f32 %v5855_v61, %v6196_v39 }
 0x231   : > { %v1245_v52 = vmul.f32 %v5841_v54, %v6206_v22  ;;  %v6218_v26 = vadd.f32 %v1260_v31, %v1244_v37  ;;  %v1381_v41 = vmul.f32 %v5843_v55, %v6206_v22  ;;  %v6222_v50 = vadd.f32 %v1396_v49, %v1380_v34 }
 0x232   : > { %v1517_v23 = vmul.f32 %v5847_v57, %v6206_v22  ;;  %v6226_v11 = vadd.f32 %v1532_v25, %v1516_v35  ;;  %v1653_v27 = vmul.f32 %v5853_v60, %v6206_v22  ;;  %v6230_v12 = vadd.f32 %v1668_v16, %v1652_v21  ;;  %v6248_v21 = vpop.f32.mrb[28].mxu0 }
 0x233   : > { %v6232_v8 = vadd.f32 %v1261_v46, %v1245_v52  ;;  %v6234_v24 = vadd.f32 %v1397_v5, %v1381_v41  ;;  %v6236_v31 = vadd.f32 %v1802_v13, %v1786_v45  ;;  %v6238_v37 = vadd.f32 %v1803_v32, %v1787_v20  ;;  %8127 = vst [vmem:[#allocation80_spill] sm:$0xff] %v6248_v21 }
 0x234   : > { %8120 = vst [vmem:[#allocation73_spill] sm:$0xff] %v6226_v11  ;;  %8121 = vst [vmem:[#allocation74_spill] sm:$0xff] %v6230_v12  ;;  %v6240_v49 = vadd.f32 %v1533_v29, %v1517_v23  ;;  %v6242_v34 = vadd.f32 %v1669_v14, %v1653_v27  ;;  %v1788_v35 = vmul.f32 %v5869_v4, %v6186_v17  ;;  %v6266_v23 = vpop.f32.mrb[20].mxu1  ;;  %v4874_v29 = vpop.f32.mrb[29].mxu0 }
 0x235   : > { %8122 = vst [vmem:[#allocation75_spill] sm:$0xff] %v6234_v24  ;;  %8123 = vst [vmem:[#allocation76_spill] sm:$0xff] %v6236_v31  ;;  %v1789_v25 = vmul.f32 %v5869_v4, %v6206_v22  ;;  %v1804_v5 = vmul.f32 %v5871_v6, %v6172_v18  ;;  %v1805_v52 = vmul.f32 %v5871_v6, %v6196_v39  ;;  %v4844_v16 = vpop.f32.mrb[21].mxu1  ;;  %v6276_v46 = vpop.f32.mrb[30].mxu0 }
 0x236   : > { %8124 = vst [vmem:[#allocation77_spill] sm:$0xff] %v6238_v37  ;;  %8125 = vst [vmem:[#allocation78_spill] sm:$0xff] %v6240_v49  ;;  %v6260_v14 = vmul.f32 %v5889_v15, %v5953_v51  ;;  %v6264_v27 = vmul.f32 %v5889_v15, %v5975_v30  ;;  %v1262_v45 = vmul.f32 %v5839_v53, %v6248_v21  ;;  %v6286_v39 = vpop.f32.mrb[22].mxu1  ;;  %v4875_v18 = vpop.f32.mrb[31].mxu0 }
 0x237   : > { %8126 = vst [vmem:[#allocation79_spill] sm:$0xff] %v6242_v34  ;;  %8129 = vst [vmem:[#allocation82_spill] sm:$0xff] %v6266_v23  ;;  %v1398_v20 = vmul.f32 %v5845_v56, %v6248_v21  ;;  %v1534_v13 = vmul.f32 %v5851_v59, %v6248_v21  ;;  %v1670_v32 = vmul.f32 %v5855_v61, %v6248_v21 }
 0x238   : > { %8128 = vst [vmem:[#allocation81_spill] sm:$0xff] %v6264_v27  ;;  %8130 = vst [vmem:[#allocation83_spill] sm:$0xff] %v6276_v46  ;;  %v1246_v41 = vmul.f32 %v5841_v54, %v6266_v23  ;;  %v1382_v29 = vmul.f32 %v5843_v55, %v6266_v23  ;;  %v1518_v30 = vmul.f32 %v5847_v57, %v6266_v23  ;;  %v4845_v27 = vpop.f32.mrb[23].mxu1 }
 0x239   : > { %v1654_v51 = vmul.f32 %v5853_v60, %v6266_v23  ;;  %8131 = vst [vmem:[#allocation84_spill] sm:$0xff] %v6286_v39  ;;  %v1263_v16 = vmul.f32 %v5839_v53, %v6276_v46  ;;  %v1399_v22 = vmul.f32 %v5845_v56, %v6276_v46  ;;  %v1535_v17 = vmul.f32 %v5851_v59, %v6276_v46 }
 0x23a   : > { %v1671_v15 = vmul.f32 %v5855_v61, %v6276_v46  ;;  %v1247_v37 = vmul.f32 %v5841_v54, %v6286_v39  ;;  %v6298_v31 = vadd.f32 %v1262_v45, %v1246_v41  ;;  %v1383_v18 = vmul.f32 %v5843_v55, %v6286_v39 }
 0x23b   : > { %v6302_v34 = vadd.f32 %v1398_v20, %v1382_v29  ;;  %v1519_v12 = vmul.f32 %v5847_v57, %v6286_v39  ;;  %v6306_v49 = vadd.f32 %v1534_v13, %v1518_v30  ;;  %v1655_v27 = vmul.f32 %v5853_v60, %v6286_v39 }
 0x23c   : > { %v6310_v11 = vadd.f32 %v1670_v32, %v1654_v51  ;;  %v6312_v24 = vadd.f32 %v1263_v16, %v1247_v37  ;;  %v6314_v45 = vadd.f32 %v1399_v22, %v1383_v18  ;;  %v6316_v41 = vadd.f32 %v1804_v5, %v1788_v35  ;;  %v6328_v51 = vpop.f32.mrb[32].mxu0 }
 0x23d   : > { %8132 = vst [vmem:[#allocation85_spill] sm:$0xff] %v6302_v34  ;;  %v6318_v20 = vadd.f32 %v1805_v52, %v1789_v25  ;;  %v6320_v29 = vadd.f32 %v1535_v17, %v1519_v12  ;;  %v6322_v34 = vadd.f32 %v1671_v15, %v1655_v27  ;;  %v1790_v30 = vmul.f32 %v5869_v4, %v6266_v23  ;;  %v6342_v15 = vpop.f32.mrb[24].mxu1  ;;  %v4878_v17 = vpop.f32.mrb[33].mxu0 }
 0x23e   : > { %8133 = vst [vmem:[#allocation86_spill] sm:$0xff] %v6310_v11  ;;  %8134 = vst [vmem:[#allocation87_spill] sm:$0xff] %v6316_v41  ;;  %v1791_v13 = vmul.f32 %v5869_v4, %v6286_v39  ;;  %v1806_v22 = vmul.f32 %v5871_v6, %v6248_v21  ;;  %v1807_v37 = vmul.f32 %v5871_v6, %v6276_v46  ;;  %v6335_v35 = vstv %s6254_s2  ;;  %v4848_v16 = vpop.f32.mrb[25].mxu1  ;;  %v6352_v18 = vpop.f32.mrb[34].mxu0  ;;  %s7602_s2 = sld [smem:[#allocation6]] }
 0x23f   : > { %8135 = vst [vmem:[#allocation88_spill] sm:$0xff] %v6318_v20  ;;  %8136 = vst [vmem:[#allocation89_spill] sm:$0xff] %v6320_v29  ;;  %v6338_v12 = vstv %s6256_s3  ;;  %v1264_v25 = vmul.f32 %v5839_v53, %v6328_v51  ;;  %v1400_v5 = vmul.f32 %v5845_v56, %v6328_v51  ;;  %v1536_v52 = vmul.f32 %v5851_v59, %v6328_v51  ;;  %v6362_v39 = vpop.f32.mrb[26].mxu1  ;;  %v4879_v23 = vpop.f32.mrb[35].mxu0  ;;  %s7604_s3 = sld [smem:[#allocation6 + $0x1]] }
 0x240   : > { %8137 = vst [vmem:[#allocation90_spill] sm:$0xff] %v6322_v34  ;;  %8138 = vst [vmem:[#allocation91_spill] sm:$0xff] %v6328_v51  ;;  %v1672_v32 = vmul.f32 %v5855_v61, %v6328_v51  ;;  %v1248_v27 = vmul.f32 %v5841_v54, %v6342_v15  ;;  %v1384_v17 = vmul.f32 %v5843_v55, %v6342_v15  ;;  %v4849_v41 = vpop.f32.mrb[27].mxu1 }
 0x241   : > { %8139 = vst [vmem:[#allocation92_spill] sm:$0xff] %v6335_v35  ;;  %8140 = vst [vmem:[#allocation93_spill] sm:$0xff] %v6338_v12  ;;  %v1520_v46 = vmul.f32 %v5847_v57, %v6342_v15  ;;  %v1656_v21 = vmul.f32 %v5853_v60, %v6342_v15  ;;  %v1265_v16 = vmul.f32 %v5839_v53, %v6352_v18 }
 0x242   : > { %8141 = vst [vmem:[#allocation94_spill] sm:$0xff] %v6342_v15  ;;  %8142 = vst [vmem:[#allocation95_spill] sm:$0xff] %v6352_v18  ;;  %v1401_v12 = vmul.f32 %v5845_v56, %v6352_v18  ;;  %v1537_v35 = vmul.f32 %v5851_v59, %v6352_v18  ;;  %v1673_v20 = vmul.f32 %v5855_v61, %v6352_v18 }
 0x243   : > { %8143 = vst [vmem:[#allocation96_spill] sm:$0xff] %v6362_v39  ;;  %v1249_v34 = vmul.f32 %v5841_v54, %v6362_v39  ;;  %v6374_v11 = vadd.f32 %v1264_v25, %v1248_v27  ;;  %v1385_v23 = vmul.f32 %v5843_v55, %v6362_v39  ;;  %v6378_v29 = vadd.f32 %v1400_v5, %v1384_v17 }
 0x244   : > { %v1521_v53 = vmul.f32 %v5847_v57, %v6362_v39  ;;  %v6382_v56 = vadd.f32 %v1536_v52, %v1520_v46  ;;  %v1657_v59 = vmul.f32 %v5853_v60, %v6362_v39  ;;  %v6386_v61 = vadd.f32 %v1672_v32, %v1656_v21 }
 0x245   : > { %v6388_v41 = vadd.f32 %v1265_v16, %v1249_v34  ;;  %v6390_v54 = vadd.f32 %v1401_v12, %v1385_v23  ;;  %v6392_v25 = vadd.f32 %v1806_v22, %v1790_v30  ;;  %v6394_v55 = vadd.f32 %v1807_v37, %v1791_v13  ;;  %v6408_v34 = vpop.f32.mrb[36].mxu0  ;;  %v6425_v13 = vpop.f32.mrb[28].mxu1 }
 0x246   : > { %8144 = vst [vmem:[#allocation97_spill] sm:$0xff] %v6386_v61  ;;  %v6396_v5 = vadd.f32 %v1537_v35, %v1521_v53  ;;  %v6398_v27 = vadd.f32 %v1673_v20, %v1657_v59  ;;  %v6402_v57 = vmul.f32 %v5869_v4, %v6342_v15  ;;  %v6406_v60 = vmul.f32 %v5869_v4, %v6362_v39  ;;  %v4914_v4 = vpop.f32.mrb[37].mxu0  ;;  %v4884_v12 = vpop.f32.mrb[29].mxu1 }
 0x247   : > { %8145 = vst [vmem:[#allocation98_spill] sm:$0xff] %v6392_v25  ;;  %8146 = vst [vmem:[#allocation99_spill] sm:$0xff] %v6394_v55  ;;  %v6412_v21 = vmul.f32 %v5871_v6, %v6328_v51  ;;  %v6416_v46 = vmul.f32 %v5871_v6, %v6352_v18  ;;  %v6419_v20 = vstv %s6340_s7  ;;  %v6423_v30 = vadd.f32 %v6260_v14, %v6180_v33  ;;  %v6435_v52 = vpop.f32.mrb[38].mxu0  ;;  %v6445_v16 = vpop.f32.mrb[30].mxu1  ;;  %s7608_s7 = sld [smem:[#allocation6 + $0x2]] }
 0x248   : > { %8147 = vst [vmem:[#allocation100_spill] sm:$0xff] %v6398_v27  ;;  %8148 = vst [vmem:[#allocation101_spill] sm:$0xff] %v6402_v57  ;;  %v1312_v22 = vmul.f32 %v5857_v62, %v6408_v34  ;;  %v1448_v37 = vmul.f32 %v5861_v0, %v6408_v34  ;;  %v1584_v35 = vmul.f32 %v5867_v3, %v6408_v34  ;;  %v4915_v23 = vpop.f32.mrb[39].mxu0  ;;  %v4885_v18 = vpop.f32.mrb[31].mxu1  ;;  %v8174_v27 = vld [vmem:[#allocation45_spill] sm:$0xff] }
 0x249   : > { %8149 = vst [vmem:[#allocation102_spill] sm:$0xff] %v6406_v60  ;;  %8150 = vst [vmem:[#allocation103_spill] sm:$0xff] %v6408_v34  ;;  %v1720_v6 = vmul.f32 %v5879_v10, %v6408_v34  ;;  %v1282_v33 = vmul.f32 %v5849_v58, %v6425_v13  ;;  %v1418_v14 = vmul.f32 %v5859_v63, %v6425_v13 }
 0x24a   : > { %8151 = vst [vmem:[#allocation104_spill] sm:$0xff] %v6412_v21  ;;  %8152 = vst [vmem:[#allocation105_spill] sm:$0xff] %v6416_v46  ;;  %v1554_v32 = vmul.f32 %v5863_v1, %v6425_v13  ;;  %v1690_v17 = vmul.f32 %v5877_v9, %v6425_v13  ;;  %v1313_v53 = vmul.f32 %v5857_v62, %v6435_v52 }
 0x24b   : > { %8153 = vst [vmem:[#allocation106_spill] sm:$0xff] %v6419_v20  ;;  %8154 = vst [vmem:[#allocation107_spill] sm:$0xff] %v6423_v30  ;;  %v1449_v59 = vmul.f32 %v5861_v0, %v6435_v52  ;;  %v1585_v4 = vmul.f32 %v5867_v3, %v6435_v52  ;;  %v6455_v12 = vmul.f32 %v5879_v10, %v6435_v52 }
 0x24c   : > { %8155 = vst [vmem:[#allocation108_spill] sm:$0xff] %v6425_v13  ;;  %8156 = vst [vmem:[#allocation109_spill] sm:$0xff] %v6435_v52  ;;  %v1283_v51 = vmul.f32 %v5849_v58, %v6445_v16  ;;  %v1296_v39 = vadd.f32 %v1282_v33, %v5923_v36  ;;  %v1419_v23 = vmul.f32 %v5859_v63, %v6445_v16 }
 0x24d   : > { %8157 = vst [vmem:[#allocation110_spill] sm:$0xff] %v6445_v16  ;;  %8158 = vst [vmem:[#allocation111_spill] sm:$0xff] %v6455_v12  ;;  %v1432_v15 = vadd.f32 %v1418_v14, %v5927_v38  ;;  %v1555_v20 = vmul.f32 %v5863_v1, %v6445_v16  ;;  %v1568_v30 = vadd.f32 %v1554_v32, %v5931_v40  ;;  %v6477_v40 = vpop.f32.mrb[40].mxu0 }
 0x24e   : > { %v1691_v46 = vmul.f32 %v5877_v9, %v6445_v16  ;;  %v1704_v18 = vadd.f32 %v1690_v17, %v5935_v42  ;;  %v1297_v60 = vadd.f32 %v1283_v51, %v5937_v43  ;;  %v1326_v21 = vadd.f32 %v1312_v22, %v1296_v39  ;;  %8161 = vst [vmem:[#allocation114_spill] sm:$0xff] %v6477_v40  ;;  %v6483_v39 = vpop.f32.mrb[32].mxu1 }
 0x24f   : > { %v1433_v36 = vadd.f32 %v1419_v23, %v5939_v44  ;;  %v1462_v33 = vadd.f32 %v1448_v37, %v1432_v15  ;;  %v1569_v57 = vadd.f32 %v1555_v20, %v5945_v47  ;;  %v1598_v38 = vadd.f32 %v1584_v35, %v1568_v30  ;;  %8162 = vst [vmem:[#allocation115_spill] sm:$0xff] %v6483_v39  ;;  %v4918_v47 = vpop.f32.mrb[41].mxu0  ;;  %v8163_v15 = vld [vmem:[#allocation13_spill] sm:$0xff]  ;;  %v4888_v20 = vpop.f32.mrb[33].mxu1 }
 0x250   : > { %v6473_v14 = vadd.f32 %v1691_v46, %v5947_v48  ;;  %v6475_v55 = vadd.f32 %v1720_v6, %v1704_v18  ;;  %v1327_v32 = vadd.f32 %v1313_v53, %v1297_v60  ;;  %v1342_v25 = vadd.f32 %v5865_v2, %v1326_v21  ;;  %v6490_v21 = vpop.f32.mrb[42].mxu0  ;;  %v6496_v6 = vpop.f32.mrb[34].mxu1  ;;  %v8168_v20 = vld [vmem:[#allocation32_spill] sm:$0xff] }
 0x251   : > { %v1463_v42 = vadd.f32 %v1449_v59, %v1433_v36  ;;  %v1478_v43 = vadd.f32 %v5873_v7, %v1462_v33  ;;  %v1314_v44 = vmul.f32 %v5857_v62, %v6477_v40  ;;  %v1450_v48 = vmul.f32 %v5861_v0, %v6477_v40  ;;  %8164 = vst [vmem:[#allocation13_spill] sm:$0xff] %v6490_v21  ;;  %v4919_v17 = vpop.f32.mrb[43].mxu0  ;;  %v4889_v18 = vpop.f32.mrb[35].mxu1 }
 0x252   : > { %8159 = vst [vmem:[#allocation112_spill] sm:$0xff] %v6473_v14  ;;  %8160 = vst [vmem:[#allocation113_spill] sm:$0xff] %v6475_v55  ;;  %v1599_v51 = vadd.f32 %v1585_v4, %v1569_v57  ;;  %v1614_v46 = vadd.f32 %v8163_v15, %v1598_v38  ;;  %v1284_v60 = vmul.f32 %v5849_v58, %v6483_v39  ;;  %v1356_v22 = vmax.f32 %v1342_v25, 0.0  ;;  %v8166_v4 = vld [vmem:[#allocation28_spill] sm:$0xff] }
 0x253   : > { %v1343_v30 = vadd.f32 %v5865_v2, %v1327_v32  ;;  %v1479_v37 = vadd.f32 %v5873_v7, %v1463_v42  ;;  %v1315_v35 = vmul.f32 %v5857_v62, %v6490_v21  ;;  %8165 = vst [vmem:[#allocation116_spill] sm:$0xff] %v6496_v6  ;;  %v1492_v57 = vmax.f32 %v1478_v43, 0.0  ;;  %v8167_v32 = vld [vmem:[#allocation29_spill] sm:$0xff] }
 0x254   : > { %v1420_v53 = vmul.f32 %v5859_v63, %v6483_v39  ;;  %v1451_v59 = vmul.f32 %v5861_v0, %v6490_v21  ;;  %v1298_v23 = vadd.f32 %v1284_v60, %v8166_v4  ;;  %v1285_v25 = vmul.f32 %v5849_v58, %v6496_v6  ;;  %v8169_v60 = vld [vmem:[#allocation33_spill] sm:$0xff] }
 0x255   : > { %v1357_v36 = vmax.f32 %v1343_v30, 0.0  ;;  %v1493_v33 = vmax.f32 %v1479_v37, 0.0  ;;  %v1421_v38 = vmul.f32 %v5859_v63, %v6496_v6  ;;  %v1615_v43 = vadd.f32 %v8163_v15, %v1599_v51  ;;  %v6515_v37 = vpop.f32.mrb[44].mxu0 }
 0x256   : > { %v1434_v42 = vadd.f32 %v1420_v53, %v8167_v32  ;;  %v1628_v47 = vmax.f32 %v1614_v46, 0.0  ;;  %v1299_v17 = vadd.f32 %v1285_v25, %v8168_v20  ;;  %v1328_v34 = vadd.f32 %v1314_v44, %v1298_v23  ;;  %8170 = vst [vmem:[#allocation28_spill] sm:$0xff] %v6515_v37 }
 0x257   : > { %v2322_v52 = vpack.c.bf16 %v1357_v36, %v1356_v22  ;;  %v6510_v16 = vpack.c.bf16 %v1493_v33, %v1492_v57  ;;  %v1435_v4 = vadd.f32 %v1421_v38, %v8169_v60  ;;  %v1629_v18 = vmax.f32 %v1615_v43, 0.0  ;;  %v6523_v22 = vpop.f32.mrb[36].mxu1 }
 0x258   : > { %v1464_v13 = vadd.f32 %v1450_v48, %v1434_v42  ;;  %v1556_v30 = vmul.f32 %v5863_v1, %v6483_v39  ;;  %v1329_v53 = vadd.f32 %v1315_v35, %v1299_v17  ;;  %v1344_v51 = vadd.f32 %v5865_v2, %v1328_v34  ;;  %8171 = vst [vmem:[#allocation29_spill] sm:$0xff] %v6523_v22  ;;  %v4922_v48 = vpop.f32.mrb[45].mxu0  ;;  %v4892_v35 = vpop.f32.mrb[37].mxu1 }
 0x259   : > { %4954 = vmatprep.mubr.msk.bf16.mxu1 %vm2434_vm2, %v2322_v52  ;;  %v1557_v46 = vmul.f32 %v5863_v1, %v6496_v6  ;;  %v1586_v44 = vmul.f32 %v5867_v3, %v6477_v40  ;;  %v1316_v57 = vmul.f32 %v5857_v62, %v6515_v37  ;;  %v1465_v23 = vadd.f32 %v1451_v59, %v1435_v4  ;;  %v6530_v34 = vpop.f32.mrb[46].mxu0  ;;  %v6537_v42 = vpop.f32.mrb[38].mxu1  ;;  %v8177_v6 = vld [vmem:[#allocation48_spill] sm:$0xff] }
 0x25a   : > { %v1480_v25 = vadd.f32 %v5873_v7, %v1464_v13  ;;  %v1452_v52 = vmul.f32 %v5861_v0, %v6515_v37  ;;  %v1345_v36 = vadd.f32 %v5865_v2, %v1329_v53  ;;  %v1358_v33 = vmax.f32 %v1344_v51, 0.0  ;;  %8172 = vst [vmem:[#allocation32_spill] sm:$0xff] %v6537_v42  ;;  %v4923_v59 = vpop.f32.mrb[47].mxu0  ;;  %v4893_v60 = vpop.f32.mrb[39].mxu1  ;;  %v8173_v51 = vld [vmem:[#allocation44_spill] sm:$0xff] }
 0x25b   : > { %v1286_v38 = vmul.f32 %v5849_v58, %v6523_v22  ;;  %v1422_v32 = vmul.f32 %v5859_v63, %v6523_v22  ;;  %v1317_v13 = vmul.f32 %v5857_v62, %v6530_v34  ;;  %v1481_v43 = vadd.f32 %v5873_v7, %v1465_v23  ;;  %v8176_v23 = vld [vmem:[#allocation30_spill] sm:$0xff]  ;;  %v6560_v14 = vpop.f32.mrb[48].mxu0 }
 0x25c   : > { %v1494_v20 = vmax.f32 %v1480_v25, 0.0  ;;  %v1453_v17 = vmul.f32 %v5861_v0, %v6530_v34  ;;  %v1359_v4 = vmax.f32 %v1345_v36, 0.0  ;;  %v1287_v53 = vmul.f32 %v5849_v58, %v6537_v42  ;;  %v8178_v36 = vld [vmem:[#allocation49_spill] sm:$0xff] }
 0x25d   : > { %v1300_v48 = vadd.f32 %v1286_v38, %v8173_v51  ;;  %v1423_v35 = vmul.f32 %v5859_v63, %v6537_v42  ;;  %v1495_v59 = vmax.f32 %v1481_v43, 0.0  ;;  %v1436_v61 = vadd.f32 %v1422_v32, %v8174_v27  ;;  %v8179_v38 = vld [vmem:[#allocation36_spill] sm:$0xff] }
 0x25e   : > { %v6550_v10 = vpack.c.bf16 %v1629_v18, %v1628_v47  ;;  %v1570_v25 = vadd.f32 %v1556_v30, %v8176_v23  ;;  %v2323_v40 = vpack.c.bf16 %v1359_v4, %v1358_v33  ;;  %v1301_v9 = vadd.f32 %v1287_v53, %v8177_v6  ;;  %v6564_v30 = vpop.f32.mrb[40].mxu1 }
 0x25f   : > { %v1330_v60 = vadd.f32 %v1316_v57, %v1300_v48  ;;  %v1437_v39 = vadd.f32 %v1423_v35, %v8178_v36  ;;  %v6555_v55 = vpack.c.bf16 %v1495_v59, %v1494_v20  ;;  %v1466_v12 = vadd.f32 %v1452_v52, %v1436_v61  ;;  %8180 = vst [vmem:[#allocation44_spill] sm:$0xff] %v6564_v30  ;;  %v4926_v57 = vpop.f32.mrb[49].mxu0  ;;  %v4896_v32 = vpop.f32.mrb[41].mxu1 }
 0x260   : > { %8175 = vst [vmem:[#allocation33_spill] sm:$0xff] %v6550_v10  ;;  %v1571_v51 = vadd.f32 %v1557_v46, %v8179_v38  ;;  %v1587_v43 = vmul.f32 %v5867_v3, %v6490_v21  ;;  %4955 = vmatmul.mubr.msk.bf16.vlgmr.msra.gmra.mrb[56].mxu1 %vm2434_vm2, %v2323_v40  ;;  %v1331_v27 = vadd.f32 %v1317_v13, %v1301_v9  ;;  %v6571_v20 = vpop.f32.mrb[50].mxu0  ;;  %v6577_v13 = vpop.f32.mrb[42].mxu1  ;;  %v8183_v32 = vld [vmem:[#allocation63_spill] sm:$0xff] }
 0x261   : > { %v1346_v47 = vadd.f32 %v5865_v2, %v1330_v60  ;;  %v1467_v18 = vadd.f32 %v1453_v17, %v1437_v39  ;;  %v1600_v6 = vadd.f32 %v1586_v44, %v1570_v25  ;;  %v1318_v61 = vmul.f32 %v5857_v62, %v6560_v14  ;;  %v4927_v17 = vpop.f32.mrb[51].mxu0  ;;  %v4897_v35 = vpop.f32.mrb[43].mxu1 }
 0x262   : > { %v1482_v46 = vadd.f32 %v5873_v7, %v1466_v12  ;;  %v1454_v52 = vmul.f32 %v5861_v0, %v6560_v14  ;;  %v1601_v33 = vadd.f32 %v1587_v43, %v1571_v51  ;;  %v1347_v9 = vadd.f32 %v5865_v2, %v1331_v27 }
 0x263   : > { %v1360_v40 = vmax.f32 %v1346_v47, 0.0  ;;  %v1288_v39 = vmul.f32 %v5849_v58, %v6564_v30  ;;  %v1483_v44 = vadd.f32 %v5873_v7, %v1467_v18  ;;  %v1319_v12 = vmul.f32 %v5857_v62, %v6571_v20  ;;  %v8181_v47 = vld [vmem:[#allocation62_spill] sm:$0xff] }
 0x264   : > { %v1496_v4 = vmax.f32 %v1482_v46, 0.0  ;;  %v1424_v53 = vmul.f32 %v5859_v63, %v6564_v30  ;;  %v1455_v48 = vmul.f32 %v5861_v0, %v6571_v20  ;;  %v1361_v59 = vmax.f32 %v1347_v9, 0.0 }
 0x265   : > { %v1289_v23 = vmul.f32 %v5849_v58, %v6577_v13  ;;  %v1302_v25 = vadd.f32 %v1288_v39, %v6142_v19  ;;  %v1497_v60 = vmax.f32 %v1483_v44, 0.0  ;;  %v1425_v36 = vmul.f32 %v5859_v63, %v6577_v13  ;;  %v6597_v44 = vpop.f32.mrb[52].mxu0 }
 0x266   : > { %v1438_v38 = vadd.f32 %v1424_v53, %v6146_v28  ;;  %v1616_v51 = vadd.f32 %v8163_v15, %v1600_v6  ;;  %v1617_v43 = vadd.f32 %v8163_v15, %v1601_v33  ;;  %v2324_v27 = vpack.c.bf16 %v1361_v59, %v1360_v40  ;;  %v6605_v40 = vpop.f32.mrb[44].mxu1 }
 0x267   : > { %v1303_v18 = vadd.f32 %v1289_v23, %v8181_v47  ;;  %v1332_v57 = vadd.f32 %v1318_v61, %v1302_v25  ;;  %v6594_v46 = vpack.c.bf16 %v1497_v60, %v1496_v4  ;;  %v1439_v9 = vadd.f32 %v1425_v36, %v8183_v32  ;;  %v4930_v4 = vpop.f32.mrb[53].mxu0  ;;  %v4900_v59 = vpop.f32.mrb[45].mxu1 }
 0x268   : > { %v1468_v17 = vadd.f32 %v1454_v52, %v1438_v38  ;;  %v1630_v19 = vmax.f32 %v1616_v51, 0.0  ;;  %v1631_v39 = vmax.f32 %v1617_v43, 0.0  ;;  %4958 = vmatprep.mubr.msk.bf16.mxu1 %vm2434_vm2, %v2324_v27  ;;  %v1558_v33 = vmul.f32 %v5863_v1, %v6523_v22  ;;  %v6612_v23 = vpop.f32.mrb[54].mxu0  ;;  %v6619_v51 = vpop.f32.mrb[46].mxu1 }
 0x269   : > { %8182 = vst [vmem:[#allocation45_spill] sm:$0xff] %v6594_v46  ;;  %v1333_v28 = vadd.f32 %v1319_v12, %v1303_v18  ;;  %v1348_v6 = vadd.f32 %v5865_v2, %v1332_v57  ;;  %v1559_v61 = vmul.f32 %v5863_v1, %v6537_v42  ;;  %v1320_v52 = vmul.f32 %v5857_v62, %v6597_v44  ;;  %v4901_v57 = vpop.f32.mrb[47].mxu1 }
 0x26a   : > { %v1469_v53 = vadd.f32 %v1455_v48, %v1439_v9  ;;  %v1484_v35 = vadd.f32 %v5873_v7, %v1468_v17  ;;  %v1456_v12 = vmul.f32 %v5861_v0, %v6597_v44  ;;  %v1290_v36 = vmul.f32 %v5849_v58, %v6605_v40  ;;  %v4931_v48 = vpop.f32.mrb[55].mxu0 }
 0x26b   : > { %v1349_v25 = vadd.f32 %v5865_v2, %v1333_v28  ;;  %v1362_v60 = vmax.f32 %v1348_v6, 0.0  ;;  %v1426_v38 = vmul.f32 %v5859_v63, %v6605_v40  ;;  %v1321_v43 = vmul.f32 %v5857_v62, %v6612_v23  ;;  %v6642_v21 = vpop.f32.mrb[56].mxu0 }
 0x26c   : > { %v1485_v27 = vadd.f32 %v5873_v7, %v1469_v53  ;;  %v1498_v47 = vmax.f32 %v1484_v35, 0.0  ;;  %v1457_v18 = vmul.f32 %v5861_v0, %v6612_v23  ;;  %v1291_v9 = vmul.f32 %v5849_v58, %v6619_v51  ;;  %v8185_v53 = vld [vmem:[#allocation46_spill] sm:$0xff] }
 0x26d   : > { %v1363_v32 = vmax.f32 %v1349_v25, 0.0  ;;  %v1304_v17 = vadd.f32 %v1290_v36, %v6218_v26  ;;  %v1427_v28 = vmul.f32 %v5859_v63, %v6619_v51  ;;  %v1440_v4 = vadd.f32 %v1426_v38, %v6222_v50  ;;  %v8186_v25 = vld [vmem:[#allocation75_spill] sm:$0xff]  ;;  %v8187_v26 = vld [vmem:[#allocation52_spill] sm:$0xff] }
 0x26e   : > { %v1499_v6 = vmax.f32 %v1485_v27, 0.0  ;;  %v6632_v59 = vpack.c.bf16 %v1631_v39, %v1630_v19  ;;  %v1572_v35 = vadd.f32 %v1558_v33, %v8185_v53  ;;  %v1305_v10 = vadd.f32 %v1291_v9, %v6232_v8  ;;  %v6648_v33 = vpop.f32.mrb[48].mxu1 }
 0x26f   : > { %v2325_v48 = vpack.c.bf16 %v1363_v32, %v1362_v60  ;;  %v1334_v57 = vadd.f32 %v1320_v52, %v1304_v17  ;;  %v1441_v42 = vadd.f32 %v1427_v28, %v8186_v25  ;;  %v1470_v46 = vadd.f32 %v1456_v12, %v1440_v4  ;;  %v4934_v52 = vpop.f32.mrb[57].mxu0 }
 0x270   : > { %8184 = vst [vmem:[#allocation30_spill] sm:$0xff] %v6632_v59  ;;  %v6637_v22 = vpack.c.bf16 %v1499_v6, %v1498_v47  ;;  %v1573_v36 = vadd.f32 %v1559_v61, %v8187_v26  ;;  %v1588_v27 = vmul.f32 %v5867_v3, %v6515_v37  ;;  %v1335_v50 = vadd.f32 %v1321_v43, %v1305_v10  ;;  %v4904_v47 = vpop.f32.mrb[49].mxu1  ;;  %v6655_v10 = vpop.f32.mrb[58].mxu0 }
 0x271   : > { %4959 = vmatmul.mubr.msk.bf16.gmra.mrb[60].mxu1 %vm2434_vm2, %v2325_v48  ;;  %v1350_v19 = vadd.f32 %v5865_v2, %v1334_v57  ;;  %v1471_v39 = vadd.f32 %v1457_v18, %v1441_v42  ;;  %v1589_v8 = vmul.f32 %v5867_v3, %v6530_v34  ;;  %v1322_v61 = vmul.f32 %v5857_v62, %v6642_v21  ;;  %v6661_v9 = vpop.f32.mrb[50].mxu1  ;;  %v4935_v17 = vpop.f32.mrb[59].mxu0 }
 0x272   : > { %v1486_v12 = vadd.f32 %v5873_v7, %v1470_v46  ;;  %v1458_v60 = vmul.f32 %v5861_v0, %v6642_v21  ;;  %v1602_v38 = vadd.f32 %v1588_v27, %v1572_v35  ;;  %v1351_v42 = vadd.f32 %v5865_v2, %v1335_v50  ;;  %v4905_v53 = vpop.f32.mrb[51].mxu1  ;;  %v8188_v27 = vld [vmem:[#allocation85_spill] sm:$0xff] }
 0x273   : > { %v1364_v43 = vmax.f32 %v1350_v19, 0.0  ;;  %v1292_v18 = vmul.f32 %v5849_v58, %v6648_v33  ;;  %v1487_v32 = vadd.f32 %v5873_v7, %v1471_v39  ;;  %v1323_v46 = vmul.f32 %v5857_v62, %v6655_v10 }
 0x274   : > { %v1500_v28 = vmax.f32 %v1486_v12, 0.0  ;;  %v1428_v6 = vmul.f32 %v5859_v63, %v6648_v33  ;;  %v1459_v4 = vmul.f32 %v5861_v0, %v6655_v10  ;;  %v1365_v35 = vmax.f32 %v1351_v42, 0.0 }
 0x275   : > { %v1293_v48 = vmul.f32 %v5849_v58, %v6661_v9  ;;  %v1306_v57 = vadd.f32 %v1292_v18, %v6298_v31  ;;  %v1501_v25 = vmax.f32 %v1487_v32, 0.0  ;;  %v1429_v26 = vmul.f32 %v5859_v63, %v6661_v9  ;;  %v6681_v32 = vpop.f32.mrb[60].mxu0 }
 0x276   : > { %v1442_v50 = vadd.f32 %v1428_v6, %v8188_v27  ;;  %v1603_v19 = vadd.f32 %v1589_v8, %v1573_v36  ;;  %v1618_v39 = vadd.f32 %v8163_v15, %v1602_v38  ;;  %v2326_v52 = vpack.c.bf16 %v1365_v35, %v1364_v43  ;;  %8189 = vst [vmem:[#allocation48_spill] sm:$0xff] %v6681_v32 }
 0x277   : > { %v1307_v12 = vadd.f32 %v1293_v48, %v6312_v24  ;;  %v1336_v47 = vadd.f32 %v1322_v61, %v1306_v57  ;;  %v6677_v17 = vpack.c.bf16 %v1501_v25, %v1500_v28  ;;  %v1443_v42 = vadd.f32 %v1429_v26, %v6314_v45  ;;  %v6689_v61 = vpop.f32.mrb[52].mxu1  ;;  %v4938_v45 = vpop.f32.mrb[61].mxu0 }
 0x278   : > { %v1472_v53 = vadd.f32 %v1458_v60, %v1442_v50  ;;  %v1619_v31 = vadd.f32 %v8163_v15, %v1603_v19  ;;  %v1632_v18 = vmax.f32 %v1618_v39, 0.0  ;;  %4962 = vmatprep.mubr.msk.bf16.mxu1 %vm2434_vm2, %v2326_v52  ;;  %v1560_v8 = vmul.f32 %v5863_v1, %v6564_v30  ;;  %8190 = vst [vmem:[#allocation49_spill] sm:$0xff] %v6689_v61  ;;  %v4908_v28 = vpop.f32.mrb[53].mxu1  ;;  %v6696_v35 = vpop.f32.mrb[62].mxu0 }
 0x279   : > { %v1337_v6 = vadd.f32 %v1323_v46, %v1307_v12  ;;  %v1352_v36 = vadd.f32 %v5865_v2, %v1336_v47  ;;  %v1561_v24 = vmul.f32 %v5863_v1, %v6577_v13  ;;  %v1324_v60 = vmul.f32 %v5857_v62, %v6681_v32  ;;  %8191 = vst [vmem:[#allocation36_spill] sm:$0xff] %v6696_v35  ;;  %v6703_v27 = vpop.f32.mrb[54].mxu1  ;;  %v8193_v28 = vld [vmem:[#allocation60_spill] sm:$0xff] }
 0x27a   : > { %v1473_v38 = vadd.f32 %v1459_v4, %v1443_v42  ;;  %v1488_v43 = vadd.f32 %v5873_v7, %v1472_v53  ;;  %v1460_v46 = vmul.f32 %v5861_v0, %v6681_v32  ;;  %v1294_v25 = vmul.f32 %v5849_v58, %v6689_v61  ;;  %8192 = vst [vmem:[#allocation62_spill] sm:$0xff] %v6703_v27  ;;  %v4939_v4 = vpop.f32.mrb[63].mxu0  ;;  %v4909_v12 = vpop.f32.mrb[55].mxu1 }
 0x27b   : > { %v1353_v48 = vadd.f32 %v5865_v2, %v1337_v6  ;;  %v1366_v57 = vmax.f32 %v1352_v36, 0.0  ;;  %v1430_v26 = vmul.f32 %v5859_v63, %v6689_v61  ;;  %v1325_v50 = vmul.f32 %v5857_v62, %v6696_v35 }
 0x27c   : > { %v1489_v19 = vadd.f32 %v5873_v7, %v1473_v38  ;;  %v1502_v39 = vmax.f32 %v1488_v43, 0.0  ;;  %v1461_v52 = vmul.f32 %v5861_v0, %v6696_v35  ;;  %v1295_v42 = vmul.f32 %v5849_v58, %v6703_v27 }
 0x27d   : > { %v1367_v47 = vmax.f32 %v1353_v48, 0.0  ;;  %v1308_v53 = vadd.f32 %v1294_v25, %v6374_v11  ;;  %v1431_v6 = vmul.f32 %v5859_v63, %v6703_v27  ;;  %v1444_v45 = vadd.f32 %v1430_v26, %v6378_v29  ;;  %v8194_v11 = vld [vmem:[#allocation66_spill] sm:$0xff] }
 0x27e   : > { %v1503_v36 = vmax.f32 %v1489_v19, 0.0  ;;  %v1633_v62 = vmax.f32 %v1619_v31, 0.0  ;;  %v1574_v38 = vadd.f32 %v1560_v8, %v8193_v28  ;;  %v1309_v4 = vadd.f32 %v1295_v42, %v6388_v41 }
 0x27f   : > { %v2327_v43 = vpack.c.bf16 %v1367_v47, %v1366_v57  ;;  %v1338_v0 = vadd.f32 %v1324_v60, %v1308_v53  ;;  %v1445_v48 = vadd.f32 %v1431_v6, %v6390_v54  ;;  %v1474_v58 = vadd.f32 %v1460_v46, %v1444_v45  ;;  %v8196_v47 = vld [vmem:[#allocation78_spill] sm:$0xff] }
 0x280   : > { %v6719_v12 = vpack.c.bf16 %v1503_v36, %v1502_v39  ;;  %v6721_v59 = vpack.c.bf16 %v1633_v62, %v1632_v18  ;;  %v1575_v25 = vadd.f32 %v1561_v24, %v8194_v11  ;;  %v1339_v63 = vadd.f32 %v1325_v50, %v1309_v4  ;;  %v8195_v39 = vld [vmem:[#allocation73_spill] sm:$0xff] }
 0x281   : > { %4963 = vmatmul.mubr.msk.bf16.gmra.mrb[64].mxu1 %vm2434_vm2, %v2327_v43  ;;  %v1354_v29 = vadd.f32 %v5865_v2, %v1338_v0  ;;  %v1475_v31 = vadd.f32 %v1461_v52, %v1445_v48  ;;  %v1590_v8 = vmul.f32 %v5867_v3, %v6560_v14  ;;  %v1490_v41 = vadd.f32 %v5873_v7, %v1474_v58 }
 0x282   : > { %v1591_v54 = vmul.f32 %v5867_v3, %v6571_v20  ;;  %v1562_v18 = vmul.f32 %v5863_v1, %v6605_v40  ;;  %v1563_v24 = vmul.f32 %v5863_v1, %v6619_v51  ;;  %v1355_v60 = vadd.f32 %v5865_v2, %v1339_v63 }
 0x283   : > { %v1368_v46 = vmax.f32 %v1354_v29, 0.0  ;;  %v1491_v57 = vadd.f32 %v5873_v7, %v1475_v31  ;;  %v1604_v26 = vadd.f32 %v1590_v8, %v1574_v38  ;;  %v1504_v50 = vmax.f32 %v1490_v41, 0.0 }
 0x284   : > { %v1605_v19 = vadd.f32 %v1591_v54, %v1575_v25  ;;  %v1576_v52 = vadd.f32 %v1562_v18, %v8195_v39  ;;  %v1577_v42 = vadd.f32 %v1563_v24, %v8196_v47  ;;  %v1369_v53 = vmax.f32 %v1355_v60, 0.0  ;;  %v8197_v25 = vld [vmem:[#allocation89_spill] sm:$0xff]  ;;  %v8198_v39 = vld [vmem:[#allocation112_spill] sm:$0xff] }
 0x285   : > { %v1505_v6 = vmax.f32 %v1491_v57, 0.0  ;;  %v1620_v36 = vadd.f32 %v8163_v15, %v1604_v26  ;;  %v1592_v45 = vmul.f32 %v5867_v3, %v6597_v44  ;;  %v1593_v2 = vmul.f32 %v5867_v3, %v6612_v23 }
 0x286   : > { %v1621_v62 = vadd.f32 %v8163_v15, %v1605_v19  ;;  %v1564_v7 = vmul.f32 %v5863_v1, %v6648_v33  ;;  %v1565_v28 = vmul.f32 %v5863_v1, %v6661_v9  ;;  %v2328_v38 = vpack.c.bf16 %v1369_v53, %v1368_v46 }
 0x287   : > { %v6749_v43 = vpack.c.bf16 %v1505_v6, %v1504_v50  ;;  %v1634_v4 = vmax.f32 %v1620_v36, 0.0  ;;  %v1606_v0 = vadd.f32 %v1592_v45, %v1576_v52  ;;  %v1607_v58 = vadd.f32 %v1593_v2, %v1577_v42  ;;  %v8199_v52 = vld [vmem:[#allocation111_spill] sm:$0xff]  ;;  %v8201_v6 = vld [vmem:[#allocation17_spill] sm:$0xff]  ;;  %v8203_v2 = vld [vmem:[#allocation14_spill] sm:$0xff] }
 0x288   : > { %v1635_v48 = vmax.f32 %v1621_v62, 0.0  ;;  %v1578_v11 = vadd.f32 %v1564_v7, %v6306_v49  ;;  %v1579_v63 = vadd.f32 %v1565_v28, %v8197_v25  ;;  %4966 = vmatprep.mubr.msk.bf16.mxu1 %vm2434_vm2, %v2328_v38  ;;  %v1594_v31 = vmul.f32 %v5867_v3, %v6642_v21  ;;  %v8205_v25 = vld [vmem:[#allocation31_spill] sm:$0xff] }
 0x289   : > { %v1622_v29 = vadd.f32 %v8163_v15, %v1606_v0  ;;  %v1595_v8 = vmul.f32 %v5867_v3, %v6655_v10  ;;  %v1566_v41 = vmul.f32 %v5863_v1, %v6689_v61  ;;  %4967 = vmatmul.mubr.msk.bf16.gmra.mrb[68].mxu1 %vm2434_vm2, %v6510_v16  ;;  %v1623_v49 = vadd.f32 %v8163_v15, %v1607_v58  ;;  %v8204_v58 = vld [vmem:[#allocation116_spill] sm:$0xff] }
 0x28a   : > { %v6763_v54 = vpack.c.bf16 %v1635_v48, %v1634_v4  ;;  %v1567_v18 = vmul.f32 %v5863_v1, %v6703_v27  ;;  %v1596_v24 = vmul.f32 %v5867_v3, %v6681_v32  ;;  %4970 = vmatprep.mubr.msk.bf16.mxu1 %vm2434_vm2, %v6555_v55  ;;  %v1608_v46 = vadd.f32 %v1594_v31, %v1578_v11  ;;  %v8200_v55 = vld [vmem:[#allocation113_spill] sm:$0xff] }
 0x28b   : > { %v1636_v60 = vmax.f32 %v1622_v29, 0.0  ;;  %v1609_v57 = vadd.f32 %v1595_v8, %v1579_v63  ;;  %v1580_v26 = vadd.f32 %v1566_v41, %v6382_v56  ;;  %v1637_v50 = vmax.f32 %v1623_v49, 0.0  ;;  %v8206_v8 = vld [vmem:[#allocation114_spill] sm:$0xff]  ;;  %v8207_v41 = vld [vmem:[#allocation15_spill] sm:$0xff] }
 0x28c   : > { %v1581_v16 = vadd.f32 %v1567_v18, %v6396_v5  ;;  %v1597_v19 = vmul.f32 %v5867_v3, %v6696_v35  ;;  %v1735_v1 = vadd.f32 %v8199_v52, %v8198_v39  ;;  %v1624_v47 = vadd.f32 %v8163_v15, %v1608_v46  ;;  %v8202_v5 = vld [vmem:[#allocation115_spill] sm:$0xff]  ;;  %v8208_v18 = vld [vmem:[#allocation13_spill] sm:$0xff]  ;;  %v8212_v39 = vld [vmem:[#allocation32_spill] sm:$0xff] }
 0x28d   : > { %v1625_v42 = vadd.f32 %v8163_v15, %v1609_v57  ;;  %v1610_v53 = vadd.f32 %v1596_v24, %v1580_v26  ;;  %v1750_v36 = vadd.f32 %v8201_v6, %v8200_v55  ;;  %v6782_v45 = vpack.c.bf16 %v1637_v50, %v1636_v60  ;;  %v8209_v60 = vld [vmem:[#allocation45_spill] sm:$0xff]  ;;  %v8213_v55 = vld [vmem:[#allocation47_spill] sm:$0xff] }
 0x28e   : > { %v1611_v56 = vadd.f32 %v1597_v19, %v1581_v16  ;;  %v1751_v62 = vadd.f32 %v8201_v6, %v1735_v1  ;;  %v1692_v7 = vmul.f32 %v8203_v2, %v8202_v5  ;;  %v1638_v3 = vmax.f32 %v1624_v47, 0.0  ;;  %v8210_v57 = vld [vmem:[#allocation37_spill] sm:$0xff] }
 0x28f   : > { %v1639_v28 = vmax.f32 %v1625_v42, 0.0  ;;  %v1626_v38 = vadd.f32 %v8163_v15, %v1610_v53  ;;  %v1764_v4 = vmax.f32 %v1750_v36, 0.0  ;;  %v1693_v11 = vmul.f32 %v8203_v2, %v8204_v58  ;;  %v8211_v50 = vld [vmem:[#allocation29_spill] sm:$0xff] }
 0x290   : > { %v1627_v0 = vadd.f32 %v8163_v15, %v1611_v56  ;;  %v1765_v48 = vmax.f32 %v1751_v62, 0.0  ;;  %v1706_v63 = vadd.f32 %v1692_v7, %v8205_v25  ;;  %v1722_v49 = vmul.f32 %v8207_v41, %v8206_v8  ;;  %v8214_v62 = vld [vmem:[#allocation53_spill] sm:$0xff] }
 0x291   : > { %v6792_v29 = vpack.c.bf16 %v1639_v28, %v1638_v3  ;;  %v1640_v31 = vmax.f32 %v1626_v38, 0.0  ;;  %v1723_v24 = vmul.f32 %v8207_v41, %v8208_v18  ;;  %4971 = vmatmul.mubr.msk.bf16.gmra.mrb[72].mxu1 %vm2434_vm2, %v8209_v60  ;;  %v1707_v26 = vadd.f32 %v1693_v11, %v8210_v57 }
 0x292   : > { %v1641_v46 = vmax.f32 %v1627_v0, 0.0  ;;  %v6800_v15 = vpack.c.bf16 %v1765_v48, %v1764_v4  ;;  %v1694_v16 = vmul.f32 %v8203_v2, %v8211_v50  ;;  %4974 = vmatprep.mubr.msk.bf16.mxu1 %vm2434_vm2, %v6637_v22  ;;  %v1736_v19 = vadd.f32 %v1722_v49, %v1706_v63  ;;  %v8215_v0 = vld [vmem:[#allocation61_spill] sm:$0xff] }
 0x293   : > { %v1695_v52 = vmul.f32 %v8203_v2, %v8212_v39  ;;  %v1724_v1 = vmul.f32 %v8207_v41, %v6515_v37  ;;  %v1725_v47 = vmul.f32 %v8207_v41, %v6530_v34  ;;  %v1737_v53 = vadd.f32 %v1723_v24, %v1707_v26 }
 0x294   : > { %v6813_v42 = vpack.c.bf16 %v1641_v46, %v1640_v31  ;;  %v1708_v36 = vadd.f32 %v1694_v16, %v8213_v55  ;;  %v1696_v56 = vmul.f32 %v8203_v2, %v6564_v30  ;;  %v1752_v22 = vadd.f32 %v8201_v6, %v1736_v19  ;;  %v8216_v31 = vld [vmem:[#allocation67_spill] sm:$0xff] }
 0x295   : > { %v1709_v7 = vadd.f32 %v1695_v52, %v8214_v62  ;;  %v1697_v3 = vmul.f32 %v8203_v2, %v6577_v13  ;;  %v1726_v28 = vmul.f32 %v8207_v41, %v6560_v14  ;;  %v1753_v38 = vadd.f32 %v8201_v6, %v1737_v53  ;;  %v8217_v52 = vld [vmem:[#allocation74_spill] sm:$0xff] }
 0x296   : > { %v1738_v4 = vadd.f32 %v1724_v1, %v1708_v36  ;;  %v1710_v48 = vadd.f32 %v1696_v56, %v8215_v0  ;;  %v1727_v11 = vmul.f32 %v8207_v41, %v6571_v20  ;;  %v1766_v25 = vmax.f32 %v1752_v22, 0.0  ;;  %v8218_v56 = vld [vmem:[#allocation79_spill] sm:$0xff] }
 0x297   : > { %v1739_v63 = vadd.f32 %v1725_v47, %v1709_v7  ;;  %v1711_v49 = vadd.f32 %v1697_v3, %v8216_v31  ;;  %v1698_v24 = vmul.f32 %v8203_v2, %v6605_v40  ;;  %v1767_v60 = vmax.f32 %v1753_v38, 0.0 }
 0x298   : > { %v1754_v46 = vadd.f32 %v8201_v6, %v1738_v4  ;;  %v1740_v57 = vadd.f32 %v1726_v28, %v1710_v48  ;;  %v1699_v26 = vmul.f32 %v8203_v2, %v6619_v51  ;;  %v1728_v47 = vmul.f32 %v8207_v41, %v6597_v44 }
 0x299   : > { %v1755_v16 = vadd.f32 %v8201_v6, %v1739_v63  ;;  %v1741_v19 = vadd.f32 %v1727_v11, %v1711_v49  ;;  %v1712_v1 = vadd.f32 %v1698_v24, %v8217_v52  ;;  %4975 = vmatmul.mubr.msk.bf16.gmra.mrb[76].mxu1 %vm2434_vm2, %v6677_v17  ;;  %v6840_v53 = vpack.c.bf16 %v1767_v60, %v1766_v25  ;;  %v8219_v63 = vld [vmem:[#allocation86_spill] sm:$0xff] }
 0x29a   : > { %v1768_v55 = vmax.f32 %v1754_v46, 0.0  ;;  %v1756_v36 = vadd.f32 %v8201_v6, %v1740_v57  ;;  %v1713_v22 = vadd.f32 %v1699_v26, %v8218_v56  ;;  %4978 = vmatprep.mubr.msk.bf16.mxu1 %vm2434_vm2, %v6719_v12  ;;  %v1729_v3 = vmul.f32 %v8207_v41, %v6612_v23  ;;  %v8220_v49 = vld [vmem:[#allocation90_spill] sm:$0xff] }
 0x29b   : > { %v1769_v62 = vmax.f32 %v1755_v16, 0.0  ;;  %v1757_v7 = vadd.f32 %v8201_v6, %v1741_v19  ;;  %v1742_v28 = vadd.f32 %v1728_v47, %v1712_v1  ;;  %v1700_v17 = vmul.f32 %v8203_v2, %v6648_v33  ;;  %v8221_v47 = vld [vmem:[#allocation97_spill] sm:$0xff] }
 0x29c   : > { %v1770_v38 = vmax.f32 %v1756_v36, 0.0  ;;  %v1701_v4 = vmul.f32 %v8203_v2, %v6661_v9  ;;  %v1730_v0 = vmul.f32 %v8207_v41, %v6642_v21  ;;  %v1743_v11 = vadd.f32 %v1729_v3, %v1713_v22  ;;  %v8222_v22 = vld [vmem:[#allocation100_spill] sm:$0xff] }
 0x29d   : > { %v6855_v48 = vpack.c.bf16 %v1769_v62, %v1768_v55  ;;  %v1771_v12 = vmax.f32 %v1757_v7, 0.0  ;;  %v1758_v25 = vadd.f32 %v8201_v6, %v1742_v28  ;;  %v1714_v31 = vadd.f32 %v1700_v17, %v8219_v63  ;;  %v8223_v3 = vld [vmem:[#allocation108_spill] sm:$0xff]  ;;  %v8224_v28 = vld [vmem:[#allocation18_spill] sm:$0xff] }
 0x29e   : > { %v1715_v24 = vadd.f32 %v1701_v4, %v8220_v49  ;;  %v1731_v60 = vmul.f32 %v8207_v41, %v6655_v10  ;;  %v1702_v46 = vmul.f32 %v8203_v2, %v6689_v61  ;;  %v1759_v26 = vadd.f32 %v8201_v6, %v1743_v11  ;;  %v8226_v11 = vld [vmem:[#allocation33_spill] sm:$0xff]  ;;  %v8227_v63 = vld [vmem:[#allocation34_spill] sm:$0xff]  ;;  %v8228_v49 = vld [vmem:[#allocation103_spill] sm:$0xff] }
 0x29f   : > { %v6864_v57 = vpack.c.bf16 %v1771_v12, %v1770_v38  ;;  %v1772_v16 = vmax.f32 %v1758_v25, 0.0  ;;  %v1703_v19 = vmul.f32 %v8203_v2, %v6703_v27  ;;  %v1744_v52 = vadd.f32 %v1730_v0, %v1714_v31  ;;  %v8225_v0 = vld [vmem:[#allocation110_spill] sm:$0xff] }
 0x2a0   : > { %v1745_v1 = vadd.f32 %v1731_v60, %v1715_v24  ;;  %v1716_v55 = vadd.f32 %v1702_v46, %v8221_v47  ;;  %v1732_v36 = vmul.f32 %v8207_v41, %v6681_v32  ;;  %v1773_v56 = vmax.f32 %v1759_v26, 0.0  ;;  %v8229_v24 = vld [vmem:[#allocation50_spill] sm:$0xff]  ;;  %v8231_v47 = vld [vmem:[#allocation109_spill] sm:$0xff] }
 0x2a1   : > { %v1717_v62 = vadd.f32 %v1703_v19, %v8222_v22  ;;  %v1733_v7 = vmul.f32 %v8207_v41, %v6696_v35  ;;  %v1826_v38 = vmul.f32 %v8224_v28, %v8223_v3  ;;  %4979 = vmatmul.mubr.msk.bf16.gmra.mrb[80].mxu1 %vm2434_vm2, %v6749_v43  ;;  %v1760_v2 = vadd.f32 %v8201_v6, %v1744_v52  ;;  %v8230_v19 = vld [vmem:[#allocation35_spill] sm:$0xff] }
 0x2a2   : > { %v1761_v17 = vadd.f32 %v8201_v6, %v1745_v1  ;;  %v1746_v4 = vadd.f32 %v1732_v36, %v1716_v55  ;;  %v1827_v12 = vmul.f32 %v8224_v28, %v8225_v0  ;;  %4982 = vmatprep.mubr.msk.bf16.mxu1 %vm2434_vm2, %v8226_v11  ;;  %v6885_v25 = vpack.c.bf16 %v1773_v56, %v1772_v16  ;;  %v8234_v11 = vld [vmem:[#allocation55_spill] sm:$0xff] }
 0x2a3   : > { %v1747_v41 = vadd.f32 %v1733_v7, %v1717_v62  ;;  %v1840_v31 = vadd.f32 %v1826_v38, %v8227_v63  ;;  %v1856_v60 = vmul.f32 %v8229_v24, %v8228_v49  ;;  %v1774_v43 = vmax.f32 %v1760_v2, 0.0 }
 0x2a4   : > { %v1775_v46 = vmax.f32 %v1761_v17, 0.0  ;;  %v1762_v26 = vadd.f32 %v8201_v6, %v1746_v4  ;;  %v1841_v52 = vadd.f32 %v1827_v12, %v8230_v19  ;;  %v1857_v55 = vmul.f32 %v8229_v24, %v8231_v47  ;;  %v8232_v17 = vld [vmem:[#allocation54_spill] sm:$0xff]  ;;  %v8233_v4 = vld [vmem:[#allocation51_spill] sm:$0xff] }
 0x2a5   : > { %v1763_v1 = vadd.f32 %v8201_v6, %v1747_v41  ;;  %v1870_v36 = vadd.f32 %v1856_v60, %v1840_v31  ;;  %v1828_v16 = vmul.f32 %v8224_v28, %v8202_v5  ;;  %v1829_v62 = vmul.f32 %v8224_v28, %v8204_v58 }
 0x2a6   : > { %v6897_v56 = vpack.c.bf16 %v1775_v46, %v1774_v43  ;;  %v1776_v22 = vmax.f32 %v1762_v26, 0.0  ;;  %v1858_v7 = vmul.f32 %v8229_v24, %v8206_v8  ;;  %v1871_v2 = vadd.f32 %v1857_v55, %v1841_v52  ;;  %v8236_v52 = vld [vmem:[#allocation30_spill] sm:$0xff]  ;;  %v8237_v55 = vld [vmem:[#allocation64_spill] sm:$0xff] }
 0x2a7   : > { %v1777_v38 = vmax.f32 %v1763_v1, 0.0  ;;  %v1886_v6 = vadd.f32 %v8232_v17, %v1870_v36  ;;  %v1842_v12 = vadd.f32 %v1828_v16, %v8233_v4  ;;  %v1843_v41 = vadd.f32 %v1829_v62, %v8234_v11  ;;  %v8238_v16 = vld [vmem:[#allocation65_spill] sm:$0xff] }
 0x2a8   : > { %v1859_v63 = vmul.f32 %v8229_v24, %v8208_v18  ;;  %v1830_v31 = vmul.f32 %v8224_v28, %v8211_v50  ;;  %v1831_v60 = vmul.f32 %v8224_v28, %v8212_v39  ;;  %v1887_v46 = vadd.f32 %v8232_v17, %v1871_v2 }
 0x2a9   : > { %v6912_v43 = vpack.c.bf16 %v1777_v38, %v1776_v22  ;;  %v1900_v26 = vmax.f32 %v1886_v6, 0.0  ;;  %v1872_v19 = vadd.f32 %v1858_v7, %v1842_v12  ;;  %4983 = vmatmul.mubr.msk.bf16.gmra.mrb[84].mxu1 %vm2434_vm2, %v8236_v52  ;;  %v1860_v4 = vmul.f32 %v8229_v24, %v6515_v37 }
 0x2aa   : > { %v1873_v1 = vadd.f32 %v1859_v63, %v1843_v41  ;;  %v1844_v36 = vadd.f32 %v1830_v31, %v8237_v55  ;;  %v1845_v62 = vadd.f32 %v1831_v60, %v8238_v16  ;;  %4986 = vmatprep.mubr.msk.bf16.mxu1 %vm2434_vm2, %v6721_v59  ;;  %v1901_v22 = vmax.f32 %v1887_v46, 0.0  ;;  %v8239_v60 = vld [vmem:[#allocation76_spill] sm:$0xff]  ;;  %v8240_v55 = vld [vmem:[#allocation77_spill] sm:$0xff] }
 0x2ab   : > { %8235 = vst [vmem:[#allocation63_spill] sm:$0xff] %v6912_v43  ;;  %v1888_v38 = vadd.f32 %v8232_v17, %v1872_v19  ;;  %v1861_v7 = vmul.f32 %v8229_v24, %v6530_v34  ;;  %v1832_v2 = vmul.f32 %v8224_v28, %v6564_v30  ;;  %v1833_v11 = vmul.f32 %v8224_v28, %v6577_v13 }
 0x2ac   : > { %v1889_v6 = vadd.f32 %v8232_v17, %v1873_v1  ;;  %v1874_v12 = vadd.f32 %v1860_v4, %v1844_v36  ;;  %v1862_v41 = vmul.f32 %v8229_v24, %v6560_v14  ;;  %v6933_v63 = vpack.c.bf16 %v1901_v22, %v1900_v26 }
 0x2ad   : > { %v1902_v59 = vmax.f32 %v1888_v38, 0.0  ;;  %v1875_v31 = vadd.f32 %v1861_v7, %v1845_v62  ;;  %v1846_v46 = vadd.f32 %v1832_v2, %v8239_v60  ;;  %v1847_v16 = vadd.f32 %v1833_v11, %v8240_v55 }
 0x2ae   : > { %v1903_v19 = vmax.f32 %v1889_v6, 0.0  ;;  %v1890_v52 = vadd.f32 %v8232_v17, %v1874_v12  ;;  %v1863_v1 = vmul.f32 %v8229_v24, %v6571_v20  ;;  %v1834_v43 = vmul.f32 %v8224_v28, %v6605_v40  ;;  %v8242_v12 = vld [vmem:[#allocation87_spill] sm:$0xff] }
 0x2af   : > { %v1891_v36 = vadd.f32 %v8232_v17, %v1875_v31  ;;  %v1876_v4 = vadd.f32 %v1862_v41, %v1846_v46  ;;  %v1835_v26 = vmul.f32 %v8224_v28, %v6619_v51  ;;  %v1864_v7 = vmul.f32 %v8229_v24, %v6597_v44  ;;  %v8243_v31 = vld [vmem:[#allocation88_spill] sm:$0xff] }
 0x2b0   : > { %v6945_v62 = vpack.c.bf16 %v1903_v19, %v1902_v59  ;;  %v1904_v22 = vmax.f32 %v1890_v52, 0.0  ;;  %v1877_v38 = vadd.f32 %v1863_v1, %v1847_v16  ;;  %v1848_v11 = vadd.f32 %v1834_v43, %v8242_v12 }
 0x2b1   : > { %v1905_v2 = vmax.f32 %v1891_v36, 0.0  ;;  %v1892_v6 = vadd.f32 %v8232_v17, %v1876_v4  ;;  %v1849_v41 = vadd.f32 %v1835_v26, %v8243_v31  ;;  %4987 = vmatmul.mubr.msk.bf16.gmra.mrb[88].mxu1 %vm2434_vm2, %v6763_v54  ;;  %v1865_v59 = vmul.f32 %v8229_v24, %v6612_v23  ;;  %v8244_v36 = vld [vmem:[#allocation98_spill] sm:$0xff]  ;;  %v8245_v26 = vld [vmem:[#allocation99_spill] sm:$0xff] }
 0x2b2   : > { %8241 = vst [vmem:[#allocation46_spill] sm:$0xff] %v6945_v62  ;;  %v1893_v60 = vadd.f32 %v8232_v17, %v1877_v38  ;;  %v1836_v46 = vmul.f32 %v8224_v28, %v6648_v33  ;;  %v1837_v19 = vmul.f32 %v8224_v28, %v6661_v9  ;;  %4990 = vmatprep.mubr.msk.bf16.mxu1 %vm2434_vm2, %v6782_v45  ;;  %v8246_v62 = vld [vmem:[#allocation101_spill] sm:$0xff]  ;;  %v8247_v45 = vld [vmem:[#allocation104_spill] sm:$0xff] }
 0x2b3   : > { %v6963_v43 = vpack.c.bf16 %v1905_v2, %v1904_v22  ;;  %v1906_v52 = vmax.f32 %v1892_v6, 0.0  ;;  %v1878_v55 = vadd.f32 %v1864_v7, %v1848_v11  ;;  %v1866_v54 = vmul.f32 %v8229_v24, %v6642_v21  ;;  %v8248_v2 = vld [vmem:[#allocation102_spill] sm:$0xff]  ;;  %v8249_v6 = vld [vmem:[#allocation105_spill] sm:$0xff] }
 0x2b4   : > { %v1907_v16 = vmax.f32 %v1893_v60, 0.0  ;;  %v1879_v1 = vadd.f32 %v1865_v59, %v1849_v41  ;;  %v1850_v4 = vadd.f32 %v1836_v46, %v8244_v36  ;;  %v1851_v38 = vadd.f32 %v1837_v19, %v8245_v26 }
 0x2b5   : > { %v1894_v12 = vadd.f32 %v8232_v17, %v1878_v55  ;;  %v1867_v31 = vmul.f32 %v8229_v24, %v6655_v10  ;;  %v1822_v22 = vadd.f32 %v8247_v45, %v8246_v62  ;;  %v1823_v7 = vadd.f32 %v8249_v6, %v8248_v2 }
 0x2b6   : > { %v6976_v11 = vpack.c.bf16 %v1907_v16, %v1906_v52  ;;  %v1895_v60 = vadd.f32 %v8232_v17, %v1879_v1  ;;  %v1880_v41 = vadd.f32 %v1866_v54, %v1850_v4  ;;  %v1838_v59 = vmul.f32 %v8224_v28, %v6689_v61  ;;  %v8251_v1 = vld [vmem:[#allocation92_spill] sm:$0xff] }
 0x2b7   : > { %v1908_v46 = vmax.f32 %v1894_v12, 0.0  ;;  %v1881_v19 = vadd.f32 %v1867_v31, %v1851_v38  ;;  %v1839_v55 = vmul.f32 %v8224_v28, %v6703_v27  ;;  %v1868_v36 = vmul.f32 %v8229_v24, %v6681_v32 }
 0x2b8   : > { %8250 = vst [vmem:[#allocation75_spill] sm:$0xff] %v6976_v11  ;;  %v1909_v62 = vmax.f32 %v1895_v60, 0.0  ;;  %v1896_v26 = vadd.f32 %v8232_v17, %v1880_v41  ;;  %v1852_v45 = vadd.f32 %v1838_v59, %v1822_v22  ;;  %v1869_v52 = vmul.f32 %v8229_v24, %v6696_v35  ;;  %v8253_v22 = vld [vmem:[#allocation93_spill] sm:$0xff]  ;;  %v8255_v41 = vld [vmem:[#allocation40_spill] sm:$0xff] }
 0x2b9   : > { %v1897_v54 = vadd.f32 %v8232_v17, %v1881_v19  ;;  %v1853_v16 = vadd.f32 %v1839_v55, %v1823_v7  ;;  %v1962_v4 = vmul.f32 %v8251_v1, %v8223_v3  ;;  %v1963_v38 = vmul.f32 %v8251_v1, %v8225_v0  ;;  %4991 = vmatmul.mubr.msk.bf16.gmra.mrb[92].mxu1 %vm2434_vm2, %v6792_v29  ;;  %v8254_v7 = vld [vmem:[#allocation39_spill] sm:$0xff]  ;;  %v8257_v55 = vld [vmem:[#allocation81_spill] sm:$0xff] }
 0x2ba   : > { %v6995_v28 = vpack.c.bf16 %v1909_v62, %v1908_v46  ;;  %v1910_v12 = vmax.f32 %v1896_v26, 0.0  ;;  %v1882_v31 = vadd.f32 %v1868_v36, %v1852_v45  ;;  %v1992_v2 = vmul.f32 %v8253_v22, %v8228_v49  ;;  %4994 = vmatprep.mubr.msk.bf16.mxu1 %vm2434_vm2, %v6813_v42  ;;  %v8256_v46 = vld [vmem:[#allocation69_spill] sm:$0xff] }
 0x2bb   : > { %v1911_v24 = vmax.f32 %v1897_v54, 0.0  ;;  %v1883_v6 = vadd.f32 %v1869_v52, %v1853_v16  ;;  %v1976_v60 = vadd.f32 %v1962_v4, %v8254_v7  ;;  %v1977_v59 = vadd.f32 %v1963_v38, %v8255_v41  ;;  %v8259_v4 = vld [vmem:[#allocation107_spill] sm:$0xff]  ;;  %v8260_v41 = vld [vmem:[#allocation106_spill] sm:$0xff]  ;;  %v8269_v11 = vld [vmem:[#allocation57_spill] sm:$0xff] }
 0x2bc   : > { %8252 = vst [vmem:[#allocation52_spill] sm:$0xff] %v6995_v28  ;;  %v1898_v19 = vadd.f32 %v8232_v17, %v1882_v31  ;;  %v1993_v29 = vmul.f32 %v8253_v22, %v8231_v47  ;;  %v1949_v36 = vadd.f32 %v8257_v55, %v8256_v46  ;;  %v1964_v62 = vmul.f32 %v8251_v1, %v8202_v5 }
 0x2bd   : > { %v7010_v26 = vpack.c.bf16 %v1911_v24, %v1910_v12  ;;  %v1899_v42 = vadd.f32 %v8232_v17, %v1883_v6  ;;  %v2006_v45 = vadd.f32 %v1992_v2, %v1976_v60  ;;  %v1965_v52 = vmul.f32 %v8251_v1, %v8204_v58  ;;  %v8261_v24 = vld [vmem:[#allocation41_spill] sm:$0xff]  ;;  %v8262_v6 = vld [vmem:[#allocation19_spill] sm:$0xff] }
 0x2be   : > { %v1912_v54 = vmax.f32 %v1898_v19, 0.0  ;;  %v2007_v16 = vadd.f32 %v1993_v29, %v1977_v59  ;;  %v1978_v38 = vadd.f32 %v1964_v62, %v8259_v4  ;;  %v1994_v31 = vmul.f32 %v8253_v22, %v8206_v8  ;;  %v8263_v19 = vld [vmem:[#allocation43_spill] sm:$0xff] }
 0x2bf   : > { %8258 = vst [vmem:[#allocation85_spill] sm:$0xff] %v7010_v26  ;;  %v1913_v7 = vmax.f32 %v1899_v42, 0.0  ;;  %v2022_v46 = vadd.f32 %v8260_v41, %v2006_v45  ;;  %v1979_v55 = vadd.f32 %v1965_v52, %v1949_v36  ;;  %v1995_v12 = vmul.f32 %v8253_v22, %v8208_v18  ;;  %v8265_v42 = vld [vmem:[#allocation38_spill] sm:$0xff]  ;;  %v8266_v26 = vld [vmem:[#allocation20_spill] sm:$0xff] }
 0x2c0   : > { %v2023_v17 = vadd.f32 %v8260_v41, %v2007_v16  ;;  %v2008_v2 = vadd.f32 %v1994_v31, %v1978_v38  ;;  %v1920_v60 = vmul.f32 %v8262_v6, %v8261_v24  ;;  %v1921_v59 = vmul.f32 %v8262_v6, %v8263_v19  ;;  %v8267_v16 = vld [vmem:[#allocation42_spill] sm:$0xff] }
 0x2c1   : > { %v7026_v29 = vpack.c.bf16 %v1913_v7, %v1912_v54  ;;  %v2036_v62 = vmax.f32 %v2022_v46, 0.0  ;;  %v2009_v4 = vadd.f32 %v1995_v12, %v1979_v55  ;;  %v1936_v45 = vmul.f32 %v8266_v26, %v8265_v42  ;;  %4995 = vmatmul.mubr.msk.bf16.gmra.mrb[96].mxu1 %vm2434_vm2, %v6800_v15 }
 0x2c2   : > { %v2037_v36 = vmax.f32 %v2023_v17, 0.0  ;;  %v2024_v52 = vadd.f32 %v8260_v41, %v2008_v2  ;;  %v1937_v38 = vmul.f32 %v8266_v26, %v8267_v16  ;;  %v1966_v31 = vmul.f32 %v8251_v1, %v8211_v50  ;;  %4998 = vmatprep.mubr.msk.bf16.mxu1 %vm2434_vm2, %v6840_v53 }
 0x2c3   : > { %8264 = vst [vmem:[#allocation60_spill] sm:$0xff] %v7026_v29  ;;  %v2025_v54 = vadd.f32 %v8260_v41, %v2009_v4  ;;  %v1950_v7 = vadd.f32 %v1936_v45, %v1920_v60  ;;  %v1967_v46 = vmul.f32 %v8251_v1, %v8212_v39  ;;  %v1996_v15 = vmul.f32 %v8253_v22, %v6515_v37  ;;  %v8270_v4 = vld [vmem:[#allocation59_spill] sm:$0xff]  ;;  %v8271_v39 = vld [vmem:[#allocation56_spill] sm:$0xff]  ;;  %v8272_v37 = vld [vmem:[#allocation58_spill] sm:$0xff] }
 0x2c4   : > { %v7044_v55 = vpack.c.bf16 %v2037_v36, %v2036_v62  ;;  %v2038_v12 = vmax.f32 %v2024_v52, 0.0  ;;  %v1951_v17 = vadd.f32 %v1937_v38, %v1921_v59  ;;  %v1997_v2 = vmul.f32 %v8253_v22, %v6530_v34 }
 0x2c5   : > { %v2039_v29 = vmax.f32 %v2025_v54, 0.0  ;;  %v1980_v28 = vadd.f32 %v1966_v31, %v1950_v7  ;;  %v1922_v53 = vmul.f32 %v8262_v6, %v8269_v11  ;;  %v1923_v60 = vmul.f32 %v8262_v6, %v8270_v4 }
 0x2c6   : > { %8268 = vst [vmem:[#allocation66_spill] sm:$0xff] %v7044_v55  ;;  %v1981_v45 = vadd.f32 %v1967_v46, %v1951_v17  ;;  %v1938_v50 = vmul.f32 %v8266_v26, %v8271_v39  ;;  %v1939_v62 = vmul.f32 %v8266_v26, %v8272_v37  ;;  %v1968_v59 = vmul.f32 %v8251_v1, %v6564_v30  ;;  %v8274_v37 = vld [vmem:[#allocation70_spill] sm:$0xff] }
 0x2c7   : > { %v7058_v36 = vpack.c.bf16 %v2039_v29, %v2038_v12  ;;  %v2010_v52 = vadd.f32 %v1996_v15, %v1980_v28  ;;  %v1969_v38 = vmul.f32 %v8251_v1, %v6577_v13  ;;  %v1998_v31 = vmul.f32 %v8253_v22, %v6560_v14  ;;  %v8275_v29 = vld [vmem:[#allocation72_spill] sm:$0xff] }
 0x2c8   : > { %v2011_v54 = vadd.f32 %v1997_v2, %v1981_v45  ;;  %v1952_v7 = vadd.f32 %v1938_v50, %v1922_v53  ;;  %v1953_v46 = vadd.f32 %v1939_v62, %v1923_v60  ;;  %v1999_v17 = vmul.f32 %v8253_v22, %v6571_v20  ;;  %v8276_v15 = vld [vmem:[#allocation68_spill] sm:$0xff]  ;;  %v8277_v60 = vld [vmem:[#allocation71_spill] sm:$0xff] }
 0x2c9   : > { %8273 = vst [vmem:[#allocation73_spill] sm:$0xff] %v7058_v36  ;;  %v2026_v55 = vadd.f32 %v8260_v41, %v2010_v52  ;;  %v1924_v30 = vmul.f32 %v8262_v6, %v8274_v37  ;;  %v1925_v28 = vmul.f32 %v8262_v6, %v8275_v29  ;;  %v1940_v12 = vmul.f32 %v8266_v26, %v8276_v15 }
 0x2ca   : > { %4999 = vmatmul.mubr.msk.bf16.gmra.mrb[100].mxu1 %vm2434_vm2, %v6855_v48  ;;  %v2027_v50 = vadd.f32 %v8260_v41, %v2011_v54  ;;  %v1982_v2 = vadd.f32 %v1968_v59, %v1952_v7  ;;  %v1983_v53 = vadd.f32 %v1969_v38, %v1953_v46  ;;  %v1941_v45 = vmul.f32 %v8266_v26, %v8277_v60 }
 0x2cb   : > { %5002 = vmatprep.mubr.msk.bf16.mxu1 %vm2434_vm2, %v6864_v57  ;;  %v2040_v62 = vmax.f32 %v2026_v55, 0.0  ;;  %v1954_v52 = vadd.f32 %v1940_v12, %v1924_v30  ;;  %v1970_v36 = vmul.f32 %v8251_v1, %v6605_v40  ;;  %v1971_v15 = vmul.f32 %v8251_v1, %v6619_v51  ;;  %v8278_v57 = vld [vmem:[#allocation82_spill] sm:$0xff] }
 0x2cc   : > { %v2041_v29 = vmax.f32 %v2027_v50, 0.0  ;;  %v2012_v48 = vadd.f32 %v1998_v31, %v1982_v2  ;;  %v2013_v37 = vadd.f32 %v1999_v17, %v1983_v53  ;;  %v1955_v54 = vadd.f32 %v1941_v45, %v1925_v28  ;;  %v8280_v17 = vld [vmem:[#allocation84_spill] sm:$0xff]  ;;  %v8282_v53 = vld [vmem:[#allocation83_spill] sm:$0xff] }
 0x2cd   : > { %v1984_v59 = vadd.f32 %v1970_v36, %v1954_v52  ;;  %v2000_v38 = vmul.f32 %v8253_v22, %v6597_v44  ;;  %v2001_v7 = vmul.f32 %v8253_v22, %v6612_v23  ;;  %v1926_v30 = vmul.f32 %v8262_v6, %v8278_v57  ;;  %v8281_v28 = vld [vmem:[#allocation80_spill] sm:$0xff] }
 0x2ce   : > { %v7090_v55 = vpack.c.bf16 %v2041_v29, %v2040_v62  ;;  %v2028_v46 = vadd.f32 %v8260_v41, %v2012_v48  ;;  %v2029_v12 = vadd.f32 %v8260_v41, %v2013_v37  ;;  %v1985_v50 = vadd.f32 %v1971_v15, %v1955_v54 }
 0x2cf   : > { %v2014_v31 = vadd.f32 %v2000_v38, %v1984_v59  ;;  %v1927_v36 = vmul.f32 %v8262_v6, %v8280_v17  ;;  %v1942_v2 = vmul.f32 %v8266_v26, %v8281_v28  ;;  %v1943_v45 = vmul.f32 %v8266_v26, %v8282_v53 }
 0x2d0   : > { %8279 = vst [vmem:[#allocation78_spill] sm:$0xff] %v7090_v55  ;;  %v2042_v52 = vmax.f32 %v2028_v46, 0.0  ;;  %v2043_v29 = vmax.f32 %v2029_v12, 0.0  ;;  %v2015_v62 = vadd.f32 %v2001_v7, %v1985_v50  ;;  %v1972_v48 = vmul.f32 %v8251_v1, %v6648_v33 }
 0x2d1   : > { %v2030_v37 = vadd.f32 %v8260_v41, %v2014_v31  ;;  %v1956_v15 = vadd.f32 %v1942_v2, %v1926_v30  ;;  %v1957_v54 = vadd.f32 %v1943_v45, %v1927_v36  ;;  %v1973_v59 = vmul.f32 %v8251_v1, %v6661_v9  ;;  %v8284_v36 = vld [vmem:[#allocation94_spill] sm:$0xff]  ;;  %v8285_v45 = vld [vmem:[#allocation96_spill] sm:$0xff] }
 0x2d2   : > { %5003 = vmatmul.mubr.msk.bf16.gmra.mrb[104].mxu1 %vm2434_vm2, %v6885_v25  ;;  %v7113_v38 = vpack.c.bf16 %v2043_v29, %v2042_v52  ;;  %v2031_v7 = vadd.f32 %v8260_v41, %v2015_v62  ;;  %v2002_v46 = vmul.f32 %v8253_v22, %v6642_v21  ;;  %v2003_v30 = vmul.f32 %v8253_v22, %v6655_v10  ;;  %v8286_v29 = vld [vmem:[#allocation91_spill] sm:$0xff] }
 0x2d3   : > { %5006 = vmatprep.mubr.msk.bf16.mxu1 %vm2434_vm2, %v6897_v56  ;;  %v2044_v12 = vmax.f32 %v2030_v37, 0.0  ;;  %v1986_v50 = vadd.f32 %v1972_v48, %v1956_v15  ;;  %v1987_v31 = vadd.f32 %v1973_v59, %v1957_v54  ;;  %v1928_v2 = vmul.f32 %v8262_v6, %v8284_v36 }
 0x2d4   : > { %8283 = vst [vmem:[#allocation89_spill] sm:$0xff] %v7113_v38  ;;  %v2045_v25 = vmax.f32 %v2031_v7, 0.0  ;;  %v1929_v52 = vmul.f32 %v8262_v6, %v8285_v45  ;;  %v1944_v62 = vmul.f32 %v8266_v26, %v8286_v29  ;;  %v8287_v38 = vld [vmem:[#allocation95_spill] sm:$0xff]  ;;  %v1974_v48 = vmul.f32 %v8251_v1, %v6689_v61 }
 0x2d5   : > { %v1945_v55 = vmul.f32 %v8266_v26, %v8287_v38  ;;  %v2016_v56 = vadd.f32 %v2002_v46, %v1986_v50  ;;  %v2017_v37 = vadd.f32 %v2003_v30, %v1987_v31  ;;  %v1975_v15 = vmul.f32 %v8251_v1, %v6703_v27  ;;  %v8289_v27 = vld [vmem:[#allocation21_spill] sm:$0xff] }
 0x2d6   : > { %v7138_v54 = vpack.c.bf16 %v2045_v25, %v2044_v12  ;;  %v1958_v6 = vadd.f32 %v1944_v62, %v1928_v2  ;;  %v2004_v7 = vmul.f32 %v8253_v22, %v6681_v32  ;;  %v2005_v30 = vmul.f32 %v8253_v22, %v6696_v35  ;;  %v8290_v2 = vld [vmem:[#allocation23_spill] sm:$0xff] }
 0x2d7   : > { %v1959_v59 = vadd.f32 %v1945_v55, %v1929_v52  ;;  %v2032_v26 = vadd.f32 %v8260_v41, %v2016_v56  ;;  %v2033_v46 = vadd.f32 %v8260_v41, %v2017_v37  ;;  %v7147_v50 = vstv %s7100_s8  ;;  %v8291_v37 = vld [vmem:[#allocation63_spill] sm:$0xff]  ;;  %s7616_s8 = sld [smem:[#allocation6 + $0x3]] }
 0x2d8   : > { %8288 = vst [vmem:[#allocation112_spill] sm:$0xff] %v7138_v54  ;;  %v1988_v1 = vadd.f32 %v1974_v48, %v1958_v6  ;;  %v2052_v12 = vmul.f32 %v7147_v50, %v8289_v27  ;;  %v2053_v55 = vmul.f32 %v7147_v50, %v8290_v2  ;;  %v7154_v62 = vstv %s7107_s9  ;;  %s7618_s9 = sld [smem:[#allocation6 + $0x80]] }
 0x2d9   : > { %v1989_v31 = vadd.f32 %v1975_v15, %v1959_v59  ;;  %v2046_v25 = vmax.f32 %v2032_v26, 0.0  ;;  %v2047_v52 = vmax.f32 %v2033_v46, 0.0  ;;  %v7157_v56 = vstv %s7109_s10  ;;  %v8292_v15 = vld [vmem:[#allocation16_spill] sm:$0xff]  ;;  %v8293_v59 = vld [vmem:[#allocation22_spill] sm:$0xff]  ;;  %s7722_s10 = sld [smem:[#allocation6 + $0x201]] }
 0x2da   : > { %5007 = vmatmul.mubr.msk.bf16.gmra.mrb[108].mxu1 %vm2434_vm2, %v8291_v37  ;;  %v2018_v22 = vadd.f32 %v2004_v7, %v1988_v1  ;;  %v2068_v6 = vmul.f32 %v7154_v62, %v8292_v15  ;;  %v2069_v54 = vmul.f32 %v7154_v62, %v8293_v59  ;;  %v2098_v46 = vmul.f32 %v7157_v56, %v8223_v3 }
 0x2db   : > { %v2019_v48 = vadd.f32 %v2005_v30, %v1989_v31  ;;  %5010 = vmatprep.mubr.msk.bf16.mxu1 %vm2434_vm2, %v6933_v63  ;;  %v7167_v26 = vpack.c.bf16 %v2047_v52, %v2046_v25  ;;  %v2099_v37 = vmul.f32 %v7157_v56, %v8225_v0  ;;  %v7174_v2 = vstv %s7124_s12  ;;  %v8295_v52 = vld [vmem:[#allocation25_spill] sm:$0xff]  ;;  %s7728_s12 = sld [smem:[#allocation6 + $0x202]] }
 0x2dc   : > { %v2034_v7 = vadd.f32 %v8260_v41, %v2018_v22  ;;  %v2082_v1 = vadd.f32 %v2068_v6, %v2052_v12  ;;  %v2083_v31 = vadd.f32 %v2069_v54, %v2053_v55  ;;  %v2128_v59 = vmul.f32 %v7174_v2, %v8228_v49  ;;  %v8296_v22 = vld [vmem:[#allocation27_spill] sm:$0xff]  ;;  %v8297_v12 = vld [vmem:[#allocation24_spill] sm:$0xff]  ;;  %v8298_v55 = vld [vmem:[#allocation26_spill] sm:$0xff] }
 0x2dd   : > { %8294 = vst [vmem:[#allocation111_spill] sm:$0xff] %v7167_v26  ;;  %v2035_v30 = vadd.f32 %v8260_v41, %v2019_v48  ;;  %v2129_v63 = vmul.f32 %v7174_v2, %v8231_v47  ;;  %v7183_v25 = vstv %s7136_s21  ;;  %v2054_v26 = vmul.f32 %v7147_v50, %v8295_v52  ;;  %s7629_s21 = sld [smem:[#allocation6 + $0x81]] }
 0x2de   : > { %v2048_v0 = vmax.f32 %v2034_v7, 0.0  ;;  %v2112_v15 = vadd.f32 %v2098_v46, %v2082_v1  ;;  %v2113_v27 = vadd.f32 %v2099_v37, %v2083_v31  ;;  %v2055_v41 = vmul.f32 %v7147_v50, %v8296_v22  ;;  %v8300_v31 = vld [vmem:[#allocation46_spill] sm:$0xff] }
 0x2df   : > { %v2049_v3 = vmax.f32 %v2035_v30, 0.0  ;;  %v2070_v54 = vmul.f32 %v7154_v62, %v8297_v12  ;;  %v2071_v48 = vmul.f32 %v7154_v62, %v8298_v55  ;;  %v2100_v6 = vmul.f32 %v7157_v56, %v8202_v5 }
 0x2e0   : > { %v2142_v49 = vadd.f32 %v2128_v59, %v2112_v15  ;;  %v2143_v52 = vadd.f32 %v2129_v63, %v2113_v27  ;;  %v2101_v46 = vmul.f32 %v7157_v56, %v8204_v58  ;;  %v2130_v30 = vmul.f32 %v7174_v2, %v8206_v8 }
 0x2e1   : > { %v7195_v47 = vpack.c.bf16 %v2049_v3, %v2048_v0  ;;  %v2084_v37 = vadd.f32 %v2070_v54, %v2054_v26  ;;  %v2085_v7 = vadd.f32 %v2071_v48, %v2055_v41  ;;  %v2131_v1 = vmul.f32 %v7174_v2, %v8208_v18  ;;  %v8302_v48 = vld [vmem:[#allocation32_spill] sm:$0xff] }
 0x2e2   : > { %5011 = vmatmul.mubr.msk.bf16.gmra.mrb[112].mxu1 %vm2434_vm2, %v8300_v31  ;;  %v2158_v5 = vadd.f32 %v7183_v25, %v2142_v49  ;;  %v2159_v3 = vadd.f32 %v7183_v25, %v2143_v52  ;;  %v2056_v27 = vmul.f32 %v7147_v50, %v8261_v24  ;;  %v2057_v0 = vmul.f32 %v7147_v50, %v8263_v19  ;;  %v8301_v52 = vld [vmem:[#allocation29_spill] sm:$0xff] }
 0x2e3   : > { %8299 = vst [vmem:[#allocation113_spill] sm:$0xff] %v7195_v47  ;;  %5014 = vmatprep.mubr.msk.bf16.mxu1 %vm2434_vm2, %v6963_v43  ;;  %v2114_v15 = vadd.f32 %v2100_v6, %v2084_v37  ;;  %v2115_v59 = vadd.f32 %v2101_v46, %v2085_v7  ;;  %v2072_v26 = vmul.f32 %v7154_v62, %v8265_v42  ;;  %v8304_v46 = vld [vmem:[#allocation28_spill] sm:$0xff] }
 0x2e4   : > { %v2073_v63 = vmul.f32 %v7154_v62, %v8267_v16  ;;  %v2172_v49 = vmax.f32 %v2158_v5, 0.0  ;;  %v2173_v41 = vmax.f32 %v2159_v3, 0.0  ;;  %v2102_v54 = vmul.f32 %v7157_v56, %v8301_v52 }
 0x2e5   : > { %v2103_v31 = vmul.f32 %v7157_v56, %v8302_v48  ;;  %v2144_v47 = vadd.f32 %v2130_v30, %v2114_v15  ;;  %v2145_v19 = vadd.f32 %v2131_v1, %v2115_v59  ;;  %v2086_v24 = vadd.f32 %v2072_v26, %v2056_v27  ;;  %v8306_v59 = vld [vmem:[#allocation44_spill] sm:$0xff] }
 0x2e6   : > { %v2087_v43 = vadd.f32 %v2073_v63, %v2057_v0  ;;  %v7221_v6 = vpack.c.bf16 %v2173_v41, %v2172_v49  ;;  %v2132_v37 = vmul.f32 %v7174_v2, %v8304_v46  ;;  %v2133_v7 = vmul.f32 %v7174_v2, %v6530_v34  ;;  %v8305_v0 = vld [vmem:[#allocation58_spill] sm:$0xff] }
 0x2e7   : > { %v2058_v5 = vmul.f32 %v7147_v50, %v8269_v11  ;;  %v2160_v3 = vadd.f32 %v7183_v25, %v2144_v47  ;;  %v2161_v52 = vadd.f32 %v7183_v25, %v2145_v19  ;;  %v2116_v48 = vadd.f32 %v2102_v54, %v2086_v24 }
 0x2e8   : > { %8303 = vst [vmem:[#allocation17_spill] sm:$0xff] %v7221_v6  ;;  %v2117_v30 = vadd.f32 %v2103_v31, %v2087_v43  ;;  %v2059_v1 = vmul.f32 %v7147_v50, %v8270_v4  ;;  %v2074_v27 = vmul.f32 %v7154_v62, %v8271_v39  ;;  %v2075_v15 = vmul.f32 %v7154_v62, %v8305_v0  ;;  %v8307_v6 = vld [vmem:[#allocation75_spill] sm:$0xff]  ;;  %v8308_v43 = vld [vmem:[#allocation52_spill] sm:$0xff] }
 0x2e9   : > { %v2104_v26 = vmul.f32 %v7157_v56, %v8306_v59  ;;  %v2174_v63 = vmax.f32 %v2160_v3, 0.0  ;;  %v2175_v49 = vmax.f32 %v2161_v52, 0.0  ;;  %v2146_v41 = vadd.f32 %v2132_v37, %v2116_v48 }
 0x2ea   : > { %v2147_v47 = vadd.f32 %v2133_v7, %v2117_v30  ;;  %5015 = vmatmul.mubr.msk.bf16.gmra.mrb[116].mxu1 %vm2434_vm2, %v8307_v6  ;;  %v2088_v24 = vadd.f32 %v2074_v27, %v2058_v5  ;;  %v2089_v19 = vadd.f32 %v2075_v15, %v2059_v1  ;;  %v2105_v54 = vmul.f32 %v7157_v56, %v6577_v13  ;;  %v8310_v5 = vld [vmem:[#allocation70_spill] sm:$0xff]  ;;  %v8311_v30 = vld [vmem:[#allocation72_spill] sm:$0xff] }
 0x2eb   : > { %v2134_v31 = vmul.f32 %v7174_v2, %v6560_v14  ;;  %5018 = vmatprep.mubr.msk.bf16.mxu1 %vm2434_vm2, %v8308_v43  ;;  %v7247_v0 = vpack.c.bf16 %v2175_v49, %v2174_v63  ;;  %v2162_v52 = vadd.f32 %v7183_v25, %v2146_v41  ;;  %v2135_v6 = vmul.f32 %v7174_v2, %v6571_v20  ;;  %v8312_v43 = vld [vmem:[#allocation68_spill] sm:$0xff] }
 0x2ec   : > { %v2163_v48 = vadd.f32 %v7183_v25, %v2147_v47  ;;  %v2118_v37 = vadd.f32 %v2104_v26, %v2088_v24  ;;  %v2119_v7 = vadd.f32 %v2105_v54, %v2089_v19  ;;  %v2060_v3 = vmul.f32 %v7147_v50, %v8310_v5 }
 0x2ed   : > { %8309 = vst [vmem:[#allocation14_spill] sm:$0xff] %v7247_v0  ;;  %v2061_v1 = vmul.f32 %v7147_v50, %v8311_v30  ;;  %v2176_v27 = vmax.f32 %v2162_v52, 0.0  ;;  %v2076_v63 = vmul.f32 %v7154_v62, %v8312_v43  ;;  %v2077_v49 = vmul.f32 %v7154_v62, %v8277_v60 }
 0x2ee   : > { %v2177_v15 = vmax.f32 %v2163_v48, 0.0  ;;  %v2148_v41 = vadd.f32 %v2134_v31, %v2118_v37  ;;  %v2149_v47 = vadd.f32 %v2135_v6, %v2119_v7  ;;  %v2106_v26 = vmul.f32 %v7157_v56, %v6605_v40 }
 0x2ef   : > { %v2107_v24 = vmul.f32 %v7157_v56, %v6619_v51  ;;  %v2090_v54 = vadd.f32 %v2076_v63, %v2060_v3  ;;  %v2091_v0 = vadd.f32 %v2077_v49, %v2061_v1  ;;  %v2136_v52 = vmul.f32 %v7174_v2, %v6597_v44  ;;  %v8314_v1 = vld [vmem:[#allocation85_spill] sm:$0xff] }
 0x2f0   : > { %v7265_v19 = vpack.c.bf16 %v2177_v15, %v2176_v27  ;;  %v2164_v48 = vadd.f32 %v7183_v25, %v2148_v41  ;;  %v2165_v43 = vadd.f32 %v7183_v25, %v2149_v47  ;;  %v2137_v31 = vmul.f32 %v7174_v2, %v6612_v23 }
 0x2f1   : > { %v2062_v6 = vmul.f32 %v7147_v50, %v8278_v57  ;;  %v2120_v37 = vadd.f32 %v2106_v26, %v2090_v54  ;;  %v2121_v7 = vadd.f32 %v2107_v24, %v2091_v0  ;;  %v2063_v27 = vmul.f32 %v7147_v50, %v8280_v17  ;;  %v8315_v0 = vld [vmem:[#allocation60_spill] sm:$0xff] }
 0x2f2   : > { %8313 = vst [vmem:[#allocation116_spill] sm:$0xff] %v7265_v19  ;;  %v2078_v3 = vmul.f32 %v7154_v62, %v8281_v28  ;;  %5019 = vmatmul.mubr.msk.bf16.gmra.mrb[120].mxu1 %vm2434_vm2, %v8314_v1  ;;  %v2178_v15 = vmax.f32 %v2164_v48, 0.0  ;;  %v2179_v63 = vmax.f32 %v2165_v43, 0.0  ;;  %v2079_v49 = vmul.f32 %v7154_v62, %v8282_v53 }
 0x2f3   : > { %v2108_v41 = vmul.f32 %v7157_v56, %v6648_v33  ;;  %5022 = vmatprep.mubr.msk.bf16.mxu1 %vm2434_vm2, %v8315_v0  ;;  %v2150_v47 = vadd.f32 %v2136_v52, %v2120_v37  ;;  %v2151_v26 = vadd.f32 %v2137_v31, %v2121_v7  ;;  %v2109_v54 = vmul.f32 %v7157_v56, %v6661_v9 }
 0x2f4   : > { %v2092_v24 = vadd.f32 %v2078_v3, %v2062_v6  ;;  %v7293_v43 = vpack.c.bf16 %v2179_v63, %v2178_v15  ;;  %v2093_v48 = vadd.f32 %v2079_v49, %v2063_v27  ;;  %v2138_v1 = vmul.f32 %v7174_v2, %v6642_v21 }
 0x2f5   : > { %v2139_v19 = vmul.f32 %v7174_v2, %v6655_v10  ;;  %v2166_v52 = vadd.f32 %v7183_v25, %v2150_v47  ;;  %v2167_v31 = vadd.f32 %v7183_v25, %v2151_v26  ;;  %v2064_v37 = vmul.f32 %v7147_v50, %v8284_v36 }
 0x2f6   : > { %8316 = vst [vmem:[#allocation31_spill] sm:$0xff] %v7293_v43  ;;  %v2122_v6 = vadd.f32 %v2108_v41, %v2092_v24  ;;  %v2123_v7 = vadd.f32 %v2109_v54, %v2093_v48  ;;  %v2065_v27 = vmul.f32 %v7147_v50, %v8285_v45  ;;  %v2080_v3 = vmul.f32 %v7154_v62, %v8286_v29  ;;  %v8317_v54 = vld [vmem:[#allocation62_spill] sm:$0xff] }
 0x2f7   : > { %v2081_v15 = vmul.f32 %v7154_v62, %v8287_v38  ;;  %v2180_v63 = vmax.f32 %v2166_v52, 0.0  ;;  %v2181_v49 = vmax.f32 %v2167_v31, 0.0  ;;  %v2110_v0 = vmul.f32 %v7157_v56, %v6689_v61  ;;  %v8319_v52 = vld [vmem:[#allocation66_spill] sm:$0xff]  ;;  %v8328_v61 = vld [vmem:[#allocation109_spill] sm:$0xff] }
 0x2f8   : > { %v2152_v41 = vadd.f32 %v2138_v1, %v2122_v6  ;;  %v2153_v47 = vadd.f32 %v2139_v19, %v2123_v7  ;;  %v2094_v26 = vadd.f32 %v2080_v3, %v2064_v37  ;;  %v2111_v50 = vmul.f32 %v7157_v56, %v8317_v54  ;;  %v8320_v37 = vld [vmem:[#allocation73_spill] sm:$0xff] }
 0x2f9   : > { %v2095_v24 = vadd.f32 %v2081_v15, %v2065_v27  ;;  %v7319_v48 = vpack.c.bf16 %v2181_v49, %v2180_v63  ;;  %v2140_v62 = vmul.f32 %v7174_v2, %v6681_v32  ;;  %v2141_v1 = vmul.f32 %v7174_v2, %v6696_v35  ;;  %v8321_v27 = vld [vmem:[#allocation21_spill] sm:$0xff]  ;;  %v8322_v2 = vld [vmem:[#allocation23_spill] sm:$0xff] }
 0x2fa   : > { %v2168_v43 = vadd.f32 %v7183_v25, %v2152_v41  ;;  %5023 = vmatmul.mubr.msk.bf16.gmra.mrb[124].mxu1 %vm2434_vm2, %v8319_v52  ;;  %v2169_v19 = vadd.f32 %v7183_v25, %v2153_v47  ;;  %v2124_v31 = vadd.f32 %v2110_v0, %v2094_v26  ;;  %v7330_v6 = vstv %s7285_s13  ;;  %v8323_v52 = vld [vmem:[#allocation16_spill] sm:$0xff]  ;;  %v8324_v26 = vld [vmem:[#allocation22_spill] sm:$0xff]  ;;  %s7644_s13 = sld [smem:[#allocation6 + $0x82]] }
 0x2fb   : > { %8318 = vst [vmem:[#allocation114_spill] sm:$0xff] %v7319_v48  ;;  %v2125_v56 = vadd.f32 %v2111_v50, %v2095_v24  ;;  %5026 = vmatprep.mubr.msk.bf16.mxu1 %vm2434_vm2, %v8320_v37  ;;  %v2188_v3 = vmul.f32 %v7330_v6, %v8321_v27  ;;  %v2189_v15 = vmul.f32 %v7330_v6, %v8322_v2  ;;  %v7339_v63 = vstv %s7291_s17  ;;  %v8327_v48 = vld [vmem:[#allocation103_spill] sm:$0xff]  ;;  %s7658_s17 = sld [smem:[#allocation6 + $0x83]] }
 0x2fc   : > { %v2182_v7 = vmax.f32 %v2168_v43, 0.0  ;;  %v2183_v49 = vmax.f32 %v2169_v19, 0.0  ;;  %v2154_v41 = vadd.f32 %v2140_v62, %v2124_v31  ;;  %v2204_v0 = vmul.f32 %v7339_v63, %v8323_v52  ;;  %v8325_v31 = vld [vmem:[#allocation108_spill] sm:$0xff]  ;;  %v8326_v52 = vld [vmem:[#allocation110_spill] sm:$0xff] }
 0x2fd   : > { %v2155_v47 = vadd.f32 %v2141_v1, %v2125_v56  ;;  %v2205_v24 = vmul.f32 %v7339_v63, %v8324_v26  ;;  %v7346_v50 = vstv %s7299_s18  ;;  %v7349_v43 = vstv %s7305_s19  ;;  %s4568_s18 = sld [smem:[#allocation7 + $0x1]]  ;;  %s7750_s19 = sld [smem:[#allocation6 + $0x283]] }
 0x2fe   : > { %v7352_v37 = vstv %s7307_s20  ;;  %v7354_v27 = vpack.c.bf16 %v2183_v49, %v2182_v7  ;;  %v2170_v2 = vadd.f32 %v7183_v25, %v2154_v41  ;;  %v2218_v62 = vadd.f32 %v2204_v0, %v2188_v3  ;;  %v8329_v49 = vld [vmem:[#allocation25_spill] sm:$0xff]  ;;  %v8330_v0 = vld [vmem:[#allocation78_spill] sm:$0xff]  ;;  %s7757_s20 = sld [smem:[#allocation7 + $0x5]] }
 0x2ff   : > { %v2171_v19 = vadd.f32 %v7183_v25, %v2155_v47  ;;  %v2219_v1 = vadd.f32 %v2205_v24, %v2189_v15  ;;  %v2234_v56 = vmul.f32 %v7346_v50, %v8325_v31  ;;  %v2235_v26 = vmul.f32 %v7346_v50, %v8326_v52  ;;  %v8334_v52 = vld [vmem:[#allocation43_spill] sm:$0xff] }
 0x300   : > { %v2264_v35 = vmul.f32 %v7349_v43, %v8327_v48  ;;  %v2184_v32 = vmax.f32 %v2170_v2, 0.0  ;;  %v2265_v7 = vmul.f32 %v7349_v43, %v8328_v61  ;;  %v2190_v41 = vmul.f32 %v7330_v6, %v8329_v49  ;;  %v8331_v61 = vld [vmem:[#allocation115_spill] sm:$0xff] }
 0x301   : > { %v2185_v54 = vmax.f32 %v2171_v19, 0.0  ;;  %v2248_v25 = vadd.f32 %v2234_v56, %v2218_v62  ;;  %v2249_v3 = vadd.f32 %v2235_v26, %v2219_v1  ;;  %v2191_v15 = vmul.f32 %v7330_v6, %v8296_v22  ;;  %v8332_v62 = vld [vmem:[#allocation89_spill] sm:$0xff] }
 0x302   : > { %v2206_v47 = vmul.f32 %v7339_v63, %v8297_v12  ;;  %5027 = vmatmul.mubr.msk.bf16.gmra.mrb[128].mxu1 %vm2434_vm2, %v8330_v0  ;;  %v2207_v24 = vmul.f32 %v7339_v63, %v8298_v55  ;;  %v2236_v2 = vmul.f32 %v7346_v50, %v8331_v61  ;;  %v2237_v19 = vmul.f32 %v7346_v50, %v8204_v58  ;;  %v8333_v55 = vld [vmem:[#allocation41_spill] sm:$0xff] }
 0x303   : > { %v7374_v48 = vpack.c.bf16 %v2185_v54, %v2184_v32  ;;  %5030 = vmatprep.mubr.msk.bf16.mxu1 %vm2434_vm2, %v8332_v62  ;;  %v2278_v22 = vadd.f32 %v2264_v35, %v2248_v25  ;;  %v2279_v1 = vadd.f32 %v2265_v7, %v2249_v3  ;;  %v2266_v31 = vmul.f32 %v7349_v43, %v8206_v8  ;;  %v8335_v25 = vld [vmem:[#allocation29_spill] sm:$0xff]  ;;  %v8336_v3 = vld [vmem:[#allocation32_spill] sm:$0xff] }
 0x304   : > { %v2220_v12 = vadd.f32 %v2206_v47, %v2190_v41  ;;  %v2221_v32 = vadd.f32 %v2207_v24, %v2191_v15  ;;  %v2267_v54 = vmul.f32 %v7349_v43, %v8208_v18  ;;  %v2192_v56 = vmul.f32 %v7330_v6, %v8333_v55  ;;  %v8338_v55 = vld [vmem:[#allocation111_spill] sm:$0xff] }
 0x305   : > { %v2193_v26 = vmul.f32 %v7330_v6, %v8334_v52  ;;  %v2294_v58 = vadd.f32 %v7352_v37, %v2278_v22  ;;  %v2295_v49 = vadd.f32 %v7352_v37, %v2279_v1  ;;  %v2208_v7 = vmul.f32 %v7339_v63, %v8265_v42 }
 0x306   : > { %v2250_v35 = vadd.f32 %v2236_v2, %v2220_v12  ;;  %v2251_v41 = vadd.f32 %v2237_v19, %v2221_v32  ;;  %v2209_v8 = vmul.f32 %v7339_v63, %v8267_v16  ;;  %v2238_v18 = vmul.f32 %v7346_v50, %v8335_v25  ;;  %v8337_v32 = vld [vmem:[#allocation112_spill] sm:$0xff] }
 0x307   : > { %v2239_v15 = vmul.f32 %v7346_v50, %v8336_v3  ;;  %v2308_v47 = vmax.f32 %v2294_v58, 0.0  ;;  %v2309_v0 = vmax.f32 %v2295_v49, 0.0  ;;  %v2222_v61 = vadd.f32 %v2208_v7, %v2192_v56 }
 0x308   : > { %v2280_v24 = vadd.f32 %v2266_v31, %v2250_v35  ;;  %v2281_v62 = vadd.f32 %v2267_v54, %v2251_v41  ;;  %v2223_v22 = vadd.f32 %v2209_v8, %v2193_v26  ;;  %v2268_v2 = vmul.f32 %v7349_v43, %v8304_v46  ;;  %v8339_v26 = vld [vmem:[#allocation58_spill] sm:$0xff] }
 0x309   : > { %v2269_v42 = vmul.f32 %v7349_v43, %v6530_v34  ;;  %v7406_v19 = vpack.c.bf16 %v2309_v0, %v2308_v47  ;;  %v2252_v1 = vadd.f32 %v2238_v18, %v2222_v61  ;;  %v2194_v12 = vmul.f32 %v7330_v6, %v8269_v11 }
 0x30a   : > { %v2296_v16 = vadd.f32 %v7352_v37, %v2280_v24  ;;  %5031 = vmatmul.mubr.msk.bf16.gmra.mrb[132].mxu1 %vm2434_vm2, %v8337_v32  ;;  %v2297_v31 = vadd.f32 %v7352_v37, %v2281_v62  ;;  %v2253_v54 = vadd.f32 %v2239_v15, %v2223_v22  ;;  %v2195_v46 = vmul.f32 %v7330_v6, %v8270_v4  ;;  %v8340_v24 = vld [vmem:[#allocation68_spill] sm:$0xff] }
 0x30b   : > { %v2210_v34 = vmul.f32 %v7339_v63, %v8271_v39  ;;  %5034 = vmatprep.mubr.msk.bf16.mxu1 %vm2434_vm2, %v8338_v55  ;;  %v2282_v52 = vadd.f32 %v2268_v2, %v2252_v1  ;;  %v2211_v11 = vmul.f32 %v7339_v63, %v8339_v26  ;;  %v2240_v58 = vmul.f32 %v7346_v50, %v8306_v59 }
 0x30c   : > { %v2310_v56 = vmax.f32 %v2296_v16, 0.0  ;;  %v2311_v49 = vmax.f32 %v2297_v31, 0.0  ;;  %v2283_v35 = vadd.f32 %v2269_v42, %v2253_v54  ;;  %v2241_v4 = vmul.f32 %v7346_v50, %v6577_v13 }
 0x30d   : > { %v2224_v7 = vadd.f32 %v2210_v34, %v2194_v12  ;;  %v2298_v41 = vadd.f32 %v7352_v37, %v2282_v52  ;;  %v2225_v39 = vadd.f32 %v2211_v11, %v2195_v46  ;;  %v2270_v8 = vmul.f32 %v7349_v43, %v6560_v14 }
 0x30e   : > { %v2271_v25 = vmul.f32 %v7349_v43, %v6571_v20  ;;  %v7431_v18 = vpack.c.bf16 %v2311_v49, %v2310_v56  ;;  %v2299_v3 = vadd.f32 %v7352_v37, %v2283_v35  ;;  %v2196_v15 = vmul.f32 %v7330_v6, %v8310_v5 }
 0x30f   : > { %v2254_v59 = vadd.f32 %v2240_v58, %v2224_v7  ;;  %v2312_v47 = vmax.f32 %v2298_v41, 0.0  ;;  %v2255_v0 = vadd.f32 %v2241_v4, %v2225_v39  ;;  %v2197_v13 = vmul.f32 %v7330_v6, %v8311_v30  ;;  %v8341_v30 = vld [vmem:[#allocation113_spill] sm:$0xff] }
 0x310   : > { %v2212_v61 = vmul.f32 %v7339_v63, %v8340_v24  ;;  %v2313_v14 = vmax.f32 %v2299_v3, 0.0  ;;  %v2213_v20 = vmul.f32 %v7339_v63, %v8277_v60  ;;  %v2242_v22 = vmul.f32 %v7346_v50, %v6605_v40  ;;  %v8342_v40 = vld [vmem:[#allocation17_spill] sm:$0xff]  ;;  %v8344_v3 = vld [vmem:[#allocation14_spill] sm:$0xff] }
 0x311   : > { %v2284_v62 = vadd.f32 %v2270_v8, %v2254_v59  ;;  %v2285_v2 = vadd.f32 %v2271_v25, %v2255_v0  ;;  %v2243_v5 = vmul.f32 %v7346_v50, %v6619_v51  ;;  %v2272_v16 = vmul.f32 %v7349_v43, %v6597_v44  ;;  %v8343_v25 = vld [vmem:[#allocation49_spill] sm:$0xff] }
 0x312   : > { %v2226_v42 = vadd.f32 %v2212_v61, %v2196_v15  ;;  %5035 = vmatmul.mubr.msk.bf16.gmra.mrb[136].mxu1 %vm2434_vm2, %v8341_v30  ;;  %v7450_v1 = vpack.c.bf16 %v2313_v14, %v2312_v47  ;;  %v2227_v32 = vadd.f32 %v2213_v20, %v2197_v13  ;;  %v2273_v60 = vmul.f32 %v7349_v43, %v6612_v23  ;;  %v8345_v47 = vld [vmem:[#allocation62_spill] sm:$0xff]  ;;  %v8347_v13 = vld [vmem:[#allocation48_spill] sm:$0xff] }
 0x313   : > { %v2300_v12 = vadd.f32 %v7352_v37, %v2284_v62  ;;  %5038 = vmatprep.mubr.msk.bf16.mxu1 %vm2434_vm2, %v8342_v40  ;;  %v2301_v31 = vadd.f32 %v7352_v37, %v2285_v2  ;;  %v2198_v44 = vmul.f32 %v7330_v6, %v8278_v57  ;;  %v2199_v54 = vmul.f32 %v7330_v6, %v8280_v17  ;;  %v8348_v20 = vld [vmem:[#allocation36_spill] sm:$0xff] }
 0x314   : > { %v2256_v51 = vadd.f32 %v2242_v22, %v2226_v42  ;;  %v2257_v34 = vadd.f32 %v2243_v5, %v2227_v32  ;;  %v2214_v55 = vmul.f32 %v7339_v63, %v8281_v28  ;;  %v2215_v23 = vmul.f32 %v7339_v63, %v8282_v53  ;;  %v8349_v32 = vld [vmem:[#allocation31_spill] sm:$0xff] }
 0x315   : > { %v2314_v46 = vmax.f32 %v2300_v12, 0.0  ;;  %v2315_v56 = vmax.f32 %v2301_v31, 0.0  ;;  %v2244_v26 = vmul.f32 %v7346_v50, %v6648_v33  ;;  %v2245_v11 = vmul.f32 %v7346_v50, %v6661_v9 }
 0x316   : > { %v2286_v52 = vadd.f32 %v2272_v16, %v2256_v51  ;;  %v2287_v57 = vadd.f32 %v2273_v60, %v2257_v34  ;;  %v2228_v58 = vadd.f32 %v2214_v55, %v2198_v44  ;;  %v2229_v49 = vadd.f32 %v2215_v23, %v2199_v54  ;;  %v8350_v60 = vld [vmem:[#allocation114_spill] sm:$0xff] }
 0x317   : > { %v2274_v17 = vmul.f32 %v7349_v43, %v6642_v21  ;;  %v2374_v35 = vpack.c.bf16 %v2315_v56, %v2314_v46  ;;  %v2275_v53 = vmul.f32 %v7349_v43, %v6655_v10  ;;  %v2200_v7 = vmul.f32 %v7330_v6, %v8284_v36 }
 0x318   : > { %v2302_v28 = vadd.f32 %v7352_v37, %v2286_v52  ;;  %v2303_v33 = vadd.f32 %v7352_v37, %v2287_v57  ;;  %v2258_v4 = vadd.f32 %v2244_v26, %v2228_v58  ;;  %v2259_v41 = vadd.f32 %v2245_v11, %v2229_v49 }
 0x319   : > { %v2201_v9 = vmul.f32 %v7330_v6, %v8285_v45  ;;  %v2216_v21 = vmul.f32 %v7339_v63, %v8286_v29  ;;  %v2217_v8 = vmul.f32 %v7339_v63, %v8287_v38  ;;  %v2246_v10 = vmul.f32 %v7346_v50, %v8343_v25  ;;  %v8346_v45 = vld [vmem:[#allocation116_spill] sm:$0xff] }
 0x31a   : > { %v2316_v39 = vmax.f32 %v2302_v28, 0.0  ;;  %5039 = vmatmul.mubr.msk.bf16.gmra.mrb[140].mxu1 %vm2434_vm2, %v8344_v3  ;;  %v2317_v36 = vmax.f32 %v2303_v33, 0.0  ;;  %v2288_v59 = vadd.f32 %v2274_v17, %v2258_v4  ;;  %v2289_v15 = vadd.f32 %v2275_v53, %v2259_v41  ;;  %v3140_v33 = vld [vmem:[%s7917_s4] sm:$0x3] }
 0x31b   : > { %v2247_v0 = vmul.f32 %v7346_v50, %v8345_v47  ;;  %5042 = vmatprep.mubr.msk.bf16.mxu1 %vm2434_vm2, %v8346_v45  ;;  %v2230_v6 = vadd.f32 %v2216_v21, %v2200_v7  ;;  %v2231_v29 = vadd.f32 %v2217_v8, %v2201_v9  ;;  %v2276_v38 = vmul.f32 %v7349_v43, %v8347_v13 }
 0x31c   : > { %v2375_v63 = vpack.c.bf16 %v2317_v36, %v2316_v39  ;;  %v2304_v24 = vadd.f32 %v7352_v37, %v2288_v59  ;;  %v2305_v61 = vadd.f32 %v7352_v37, %v2289_v15  ;;  %v2277_v22 = vmul.f32 %v7349_v43, %v8348_v20 }
 0x31d   : > { %v2260_v14 = vadd.f32 %v2246_v10, %v2230_v6  ;;  %v2261_v62 = vadd.f32 %v2247_v0, %v2231_v29 }
 0x31e   : > { %v2318_v2 = vmax.f32 %v2304_v24, 0.0  ;;  %v2319_v50 = vmax.f32 %v2305_v61, 0.0  ;;  %v3141_v61 = vld [vmem:[%s7917_s4 + $0x2] sm:$0x3] }
 0x31f   : > { %v2290_v42 = vadd.f32 %v2276_v38, %v2260_v14  ;;  %v2291_v5 = vadd.f32 %v2277_v22, %v2261_v62 }
 0x320   : > { %v2376_v16 = vpack.c.bf16 %v2319_v50, %v2318_v2 }
 0x321   : > { %v2306_v30 = vadd.f32 %v7352_v37, %v2290_v42  ;;  %v2307_v12 = vadd.f32 %v7352_v37, %v2291_v5 }
 0x322   : > { %5043 = vmatmul.mubr.msk.bf16.gmra.mrb[144].mxu1 %vm2434_vm2, %v8349_v32 }
 0x323   : > { %5046 = vmatprep.mubr.msk.bf16.mxu1 %vm2434_vm2, %v8350_v60  ;;  %v2320_v40 = vmax.f32 %v2306_v30, 0.0  ;;  %v2321_v31 = vmax.f32 %v2307_v12, 0.0 }
 0x325   : > { %v2377_v51 = vpack.c.bf16 %v2321_v31, %v2320_v40 }
 0x32a   : > { %5047 = vmatmul.mubr.msk.bf16.gmra.mrb[148].mxu1 %vm2434_vm2, %v7354_v27  ;;  %v8351_v27 = vmov 0.0  }
 0x32b   : > { %5050 = vmatprep.mubr.msk.bf16.mxu1 %vm2434_vm2, %v7374_v48 }
 0x332   : > { %5051 = vmatmul.mubr.msk.bf16.gmra.mrb[152].mxu1 %vm2434_vm2, %v7406_v19 }
 0x333   : > { %5054 = vmatprep.mubr.msk.bf16.mxu1 %vm2434_vm2, %v7431_v18  ;;  %v4956_v43 = vpop.f32.mrb[56].mxu1 }
 0x334   : > { %v2637_v37 = vpop.f32.mrb[57].mxu1 }
 0x335   : > { %v4957_v44 = vpop.f32.mrb[58].mxu1 }
 0x336   : > { %v3085_v54 = vpack.c.bf16 %v4957_v44, %v4956_v43  ;;  %v2640_v46 = vpop.f32.mrb[59].mxu1 }
 0x337   : > { %v3084_v34 = vpack.c.bf16 %v2640_v46, %v2637_v37 }
 0x339   : > { %5067 = vmatpush3.bf16.msra.mxu0 %v3084_v34  ;;  %v3142_v34 = vld [vmem:[%s7917_s4 + $0x4] sm:$0x3] }
 0x33a   : > { %5055 = vmatmul.mubr.msk.bf16.gmra.mrb[156].mxu1 %vm2434_vm2, %v7450_v1  ;;  %5068 = vmatprep.subr.bf16.mxu0 %v8351_v27 }
 0x33b   : > { %5058 = vmatprep.mubr.msk.bf16.mxu1 %vm2434_vm2, %v2374_v35 }
 0x33d   : > { %5069 = vmatpush3.bf16.msra.mxu0 %v3085_v54 }
 0x33e   : > { %5070 = vmatprep.subr.bf16.mxu0 %v8351_v27 }
 0x342   : > { %5059 = vmatmul.mubr.msk.bf16.gmra.mrb[160].mxu1 %vm2434_vm2, %v2375_v63 }
 0x343   : > { %5062 = vmatprep.mubr.msk.bf16.mxu1 %vm2434_vm2, %v2376_v16 }
 0x344   : > { %v4960_v48 = vpop.f32.mrb[60].mxu1 }
 0x345   : > { %v2653_v19 = vpop.f32.mrb[61].mxu1 }
 0x346   : > { %v4961_v18 = vpop.f32.mrb[62].mxu1 }
 0x347   : > { %v3087_v55 = vpack.c.bf16 %v4961_v18, %v4960_v48  ;;  %v2656_v23 = vpop.f32.mrb[63].mxu1 }
 0x348   : > { %v3086_v56 = vpack.c.bf16 %v2656_v23, %v2653_v19 }
 0x34a   : > { %5063 = vmatmul.mubr.msk.bf16.gmra.mrb[164].mxu1 %vm2434_vm2, %v2377_v51  ;;  %5071 = vmatpush3.bf16.msra.mxu0 %v3086_v56 }
 0x34b   : > { %5072 = vmatprep.subr.bf16.mxu0 %v8351_v27  ;;  %5230 = vmatprep.mubr.msk.bf16.mxu1 %vm5461_vm1, %v8351_v27 }
 0x34e   : > { %5073 = vmatpush3.bf16.msra.mxu0 %v3087_v55 }
 0x34f   : > { %5074 = vmatprep.subr.bf16.mxu0 %v8351_v27 }
 0x354   : > { %v4964_v1 = vpop.f32.mrb[64].mxu1 }
 0x355   : > { %v2669_v52 = vpop.f32.mrb[65].mxu1 }
 0x356   : > { %v4965_v26 = vpop.f32.mrb[66].mxu1 }
 0x357   : > { %v3089_v11 = vpack.c.bf16 %v4965_v26, %v4964_v1  ;;  %v2672_v57 = vpop.f32.mrb[67].mxu1 }
 0x358   : > { %v3088_v58 = vpack.c.bf16 %v2672_v57, %v2669_v52 }
 0x35a   : > { %5075 = vmatpush3.bf16.msra.mxu0 %v3088_v58 }
 0x35b   : > { %5076 = vmatprep.subr.bf16.mxu0 %v8351_v27 }
 0x35c   : > { %v4968_v49 = vpop.f32.mrb[68].mxu1 }
 0x35d   : > { %v2685_v17 = vpop.f32.mrb[69].mxu1 }
 0x35e   : > { %5077 = vmatpush3.bf16.msra.mxu0 %v3089_v11  ;;  %v4969_v35 = vpop.f32.mrb[70].mxu1 }
 0x35f   : > { %5078 = vmatprep.subr.bf16.mxu0 %v8351_v27  ;;  %v3091_v28 = vpack.c.bf16 %v4969_v35, %v4968_v49  ;;  %v2688_v53 = vpop.f32.mrb[71].mxu1 }
 0x360   : > { %v3090_v7 = vpack.c.bf16 %v2688_v53, %v2685_v17 }
 0x362   : > { %5079 = vmatpush3.bf16.msra.mxu0 %v3090_v7 }
 0x363   : > { %5084 = vmatprep.subr.bf16.mxu0 %v8351_v27 }
 0x364   : > { %v4972_v4 = vpop.f32.mrb[72].mxu1 }
 0x365   : > { %v2701_v41 = vpop.f32.mrb[73].mxu1  ;;  %5081 = vmatmul.mubr.msk.bf16.vlgmr.msra.gmra.mrb[64].mxu0 %vm2434_vm2, %v3140_v33 }
 0x366   : > { %v4973_v9 = vpop.f32.mrb[74].mxu1  ;;  %5085 = vmatpush3.bf16.msra.mxu0 %v3091_v28  ;;  %5098 = vmatprep.mubr.msk.bf16.mxu0 %vm5461_vm1, %v8351_v27 }
 0x367   : > { %v3093_v39 = vpack.c.bf16 %v4973_v9, %v4972_v4  ;;  %v2704_v21 = vpop.f32.mrb[75].mxu1  ;;  %5086 = vmatprep.subr.bf16.mxu0 %v8351_v27  ;;  %v3143_v9 = vld [vmem:[%s7917_s4 + $0x6] sm:$0x3] }
 0x368   : > { %v3092_v8 = vpack.c.bf16 %v2704_v21, %v2701_v41 }
 0x36a   : > { %5087 = vmatpush3.bf16.msra.mxu0 %v3092_v8 }
 0x36b   : > { %5088 = vmatprep.subr.bf16.mxu0 %v8351_v27 }
 0x36c   : > { %v4976_v25 = vpop.f32.mrb[76].mxu1 }
 0x36d   : > { %v2717_v10 = vpop.f32.mrb[77].mxu1 }
 0x36e   : > { %v4977_v3 = vpop.f32.mrb[78].mxu1  ;;  %5089 = vmatpush3.bf16.msra.mxu0 %v3093_v39 }
 0x36f   : > { %v3095_v36 = vpack.c.bf16 %v4977_v3, %v4976_v25  ;;  %v2720_v59 = vpop.f32.mrb[79].mxu1  ;;  %5090 = vmatprep.subr.bf16.mxu0 %v8351_v27 }
 0x370   : > { %v3094_v15 = vpack.c.bf16 %v2720_v59, %v2717_v10 }
 0x372   : > { %5091 = vmatpush3.bf16.msra.mxu0 %v3094_v15 }
 0x373   : > { %5092 = vmatprep.subr.bf16.mxu0 %v8351_v27 }
 0x374   : > { %v4980_v47 = vpop.f32.mrb[80].mxu1 }
 0x375   : > { %v2733_v0 = vpop.f32.mrb[81].mxu1 }
 0x376   : > { %v4981_v45 = vpop.f32.mrb[82].mxu1  ;;  %5093 = vmatpush3.bf16.msra.mxu0 %v3095_v36 }
 0x377   : > { %v3097_v6 = vpack.c.bf16 %v4981_v45, %v4980_v47  ;;  %v2736_v29 = vpop.f32.mrb[83].mxu1  ;;  %5094 = vmatprep.subr.bf16.mxu0 %v8351_v27 }
 0x378   : > { %v3096_v13 = vpack.c.bf16 %v2736_v29, %v2733_v0 }
 0x37a   : > { %5095 = vmatpush3.bf16.msra.mxu0 %v3096_v13 }
 0x37b   : > { %5096 = vmatprep.subr.bf16.mxu0 %v8351_v27 }
 0x37c   : > { %v4984_v38 = vpop.f32.mrb[84].mxu1 }
 0x37d   : > { %v2749_v63 = vpop.f32.mrb[85].mxu1 }
 0x37e   : > { %v4985_v24 = vpop.f32.mrb[86].mxu1  ;;  %5097 = vmatpush3.bf16.msra.mxu0 %v3097_v6 }
 0x37f   : > { %v3099_v14 = vpack.c.bf16 %v4985_v24, %v4984_v38  ;;  %v2752_v62 = vpop.f32.mrb[87].mxu1  ;;  %5102 = vmatprep.subr.bf16.mxu0 %v8351_v27 }
 0x380   : > { %v3098_v20 = vpack.c.bf16 %v2752_v62, %v2749_v63 }
 0x381   : > { %5099 = vmatmul.mubr.msk.bf16.vlgmr.msra.gmra.mrb[68].mxu0 %vm2434_vm2, %v3141_v61 }
 0x382   : > { %5103 = vmatpush3.bf16.msra.mxu0 %v3098_v20  ;;  %5116 = vmatprep.mubr.msk.bf16.mxu0 %vm5461_vm1, %v8351_v27  ;;  %v3144_v20 = vld [vmem:[%s7917_s4 + $0x8] sm:$0x3] }
 0x383   : > { %5104 = vmatprep.subr.bf16.mxu0 %v8351_v27 }
 0x384   : > { %v4988_v22 = vpop.f32.mrb[88].mxu1 }
 0x385   : > { %v2765_v2 = vpop.f32.mrb[89].mxu1 }
 0x386   : > { %v4989_v50 = vpop.f32.mrb[90].mxu1  ;;  %5105 = vmatpush3.bf16.msra.mxu0 %v3099_v14 }
 0x387   : > { %v3101_v42 = vpack.c.bf16 %v4989_v50, %v4988_v22  ;;  %v2768_v5 = vpop.f32.mrb[91].mxu1  ;;  %5106 = vmatprep.subr.bf16.mxu0 %v8351_v27 }
 0x388   : > { %v3100_v16 = vpack.c.bf16 %v2768_v5, %v2765_v2 }
 0x38a   : > { %5107 = vmatpush3.bf16.msra.mxu0 %v3100_v16 }
 0x38b   : > { %5108 = vmatprep.subr.bf16.mxu0 %v8351_v27 }
 0x38c   : > { %v4992_v30 = vpop.f32.mrb[92].mxu1 }
 0x38d   : > { %v2781_v12 = vpop.f32.mrb[93].mxu1 }
 0x38e   : > { %v4993_v32 = vpop.f32.mrb[94].mxu1  ;;  %5109 = vmatpush3.bf16.msra.mxu0 %v3101_v42 }
 0x38f   : > { %v3103_v60 = vpack.c.bf16 %v4993_v32, %v4992_v30  ;;  %v2784_v40 = vpop.f32.mrb[95].mxu1  ;;  %5110 = vmatprep.subr.bf16.mxu0 %v8351_v27 }
 0x390   : > { %v3102_v31 = vpack.c.bf16 %v2784_v40, %v2781_v12 }
 0x392   : > { %5111 = vmatpush3.bf16.msra.mxu0 %v3102_v31 }
 0x393   : > { %5112 = vmatprep.subr.bf16.mxu0 %v8351_v27 }
 0x394   : > { %v4996_v51 = vpop.f32.mrb[96].mxu1 }
 0x395   : > { %v2797_v43 = vpop.f32.mrb[97].mxu1 }
 0x396   : > { %v4997_v37 = vpop.f32.mrb[98].mxu1  ;;  %5113 = vmatpush3.bf16.msra.mxu0 %v3103_v60 }
 0x397   : > { %v3105_v44 = vpack.c.bf16 %v4997_v37, %v4996_v51  ;;  %v2800_v54 = vpop.f32.mrb[99].mxu1  ;;  %5114 = vmatprep.subr.bf16.mxu0 %v8351_v27 }
 0x398   : > { %v3104_v46 = vpack.c.bf16 %v2800_v54, %v2797_v43 }
 0x39a   : > { %5115 = vmatpush3.bf16.msra.mxu0 %v3104_v46 }
 0x39b   : > { %5120 = vmatprep.subr.bf16.mxu0 %v8351_v27 }
 0x39d   : > { %v5000_v48 = vpop.f32.mrb[100].mxu1  ;;  %5117 = vmatmul.mubr.msk.bf16.vlgmr.msra.gmra.mrb[72].mxu0 %vm2434_vm2, %v3142_v34 }
 0x39e   : > { %v2813_v19 = vpop.f32.mrb[101].mxu1  ;;  %5121 = vmatpush3.bf16.msra.mxu0 %v3105_v44  ;;  %5134 = vmatprep.mubr.msk.bf16.mxu0 %vm5461_vm1, %v8351_v27 }
 0x39f   : > { %v5001_v18 = vpop.f32.mrb[102].mxu1  ;;  %5122 = vmatprep.subr.bf16.mxu0 %v8351_v27 }
 0x3a0   : > { %v3107_v55 = vpack.c.bf16 %v5001_v18, %v5000_v48  ;;  %v2816_v23 = vpop.f32.mrb[103].mxu1  ;;  %v3145_v18 = vld [vmem:[%s7917_s4 + $0xa] sm:$0x3] }
 0x3a1   : > { %v3106_v56 = vpack.c.bf16 %v2816_v23, %v2813_v19 }
 0x3a3   : > { %5123 = vmatpush3.bf16.msra.mxu0 %v3106_v56 }
 0x3a4   : > { %5124 = vmatprep.subr.bf16.mxu0 %v8351_v27 }
 0x3a5   : > { %v5004_v1 = vpop.f32.mrb[104].mxu1 }
 0x3a6   : > { %v2829_v52 = vpop.f32.mrb[105].mxu1 }
 0x3a7   : > { %v5005_v26 = vpop.f32.mrb[106].mxu1  ;;  %5125 = vmatpush3.bf16.msra.mxu0 %v3107_v55 }
 0x3a8   : > { %v3109_v11 = vpack.c.bf16 %v5005_v26, %v5004_v1  ;;  %v2832_v57 = vpop.f32.mrb[107].mxu1  ;;  %5126 = vmatprep.subr.bf16.mxu0 %v8351_v27 }
 0x3a9   : > { %v3108_v58 = vpack.c.bf16 %v2832_v57, %v2829_v52 }
 0x3ab   : > { %5127 = vmatpush3.bf16.msra.mxu0 %v3108_v58 }
 0x3ac   : > { %5128 = vmatprep.subr.bf16.mxu0 %v8351_v27 }
 0x3ad   : > { %v5008_v49 = vpop.f32.mrb[108].mxu1 }
 0x3ae   : > { %v2845_v17 = vpop.f32.mrb[109].mxu1 }
 0x3af   : > { %v5009_v35 = vpop.f32.mrb[110].mxu1  ;;  %5129 = vmatpush3.bf16.msra.mxu0 %v3109_v11 }
 0x3b0   : > { %v3111_v28 = vpack.c.bf16 %v5009_v35, %v5008_v49  ;;  %v2848_v53 = vpop.f32.mrb[111].mxu1  ;;  %5130 = vmatprep.subr.bf16.mxu0 %v8351_v27 }
 0x3b1   : > { %v3110_v7 = vpack.c.bf16 %v2848_v53, %v2845_v17 }
 0x3b3   : > { %5131 = vmatpush3.bf16.msra.mxu0 %v3110_v7 }
 0x3b4   : > { %5132 = vmatprep.subr.bf16.mxu0 %v8351_v27 }
 0x3b5   : > { %v5012_v33 = vpop.f32.mrb[112].mxu1 }
 0x3b6   : > { %v2861_v4 = vpop.f32.mrb[113].mxu1 }
 0x3b7   : > { %v5013_v41 = vpop.f32.mrb[114].mxu1  ;;  %5133 = vmatpush3.bf16.msra.mxu0 %v3111_v28 }
 0x3b8   : > { %v3113_v39 = vpack.c.bf16 %v5013_v41, %v5012_v33  ;;  %v2864_v21 = vpop.f32.mrb[115].mxu1  ;;  %5138 = vmatprep.subr.bf16.mxu0 %v8351_v27 }
 0x3b9   : > { %v3112_v8 = vpack.c.bf16 %v2864_v21, %v2861_v4 }
 0x3ba   : > { %5135 = vmatmul.mubr.msk.bf16.vlgmr.msra.gmra.mrb[76].mxu0 %vm2434_vm2, %v3143_v9 }
 0x3bb   : > { %5139 = vmatpush3.bf16.msra.mxu0 %v3112_v8  ;;  %5152 = vmatprep.mubr.msk.bf16.mxu0 %vm5461_vm1, %v8351_v27  ;;  %v5372_v8 = vld [vmem:[%s5632_s16] sm:$0xff]  }
 0x3bc   : > { %5140 = vmatprep.subr.bf16.mxu0 %v8351_v27 }
 0x3bd   : > { %v5016_v25 = vpop.f32.mrb[116].mxu1 }
 0x3be   : > { %v2877_v10 = vpop.f32.mrb[117].mxu1 }
 0x3bf   : > { %v5017_v3 = vpop.f32.mrb[118].mxu1  ;;  %5141 = vmatpush3.bf16.msra.mxu0 %v3113_v39 }
 0x3c0   : > { %v3115_v36 = vpack.c.bf16 %v5017_v3, %v5016_v25  ;;  %v2880_v59 = vpop.f32.mrb[119].mxu1  ;;  %5142 = vmatprep.subr.bf16.mxu0 %v8351_v27  ;;  %v7611_v25 = vunpack.c.l.bf16 %v5372_v8 }
 0x3c1   : > { %v3114_v15 = vpack.c.bf16 %v2880_v59, %v2877_v10  ;;  %v5373_v10 = vld [vmem:[%s5632_s16 + $0x8] sm:$0xff]  }
 0x3c2   : > { %v7614_v3 = vunpack.c.l.bf16 %v5373_v10  ;;  %v7622_v59 = vunpack.c.h.bf16 %v5373_v10 }
 0x3c3   : > { %5143 = vmatpush3.bf16.msra.mxu0 %v3114_v15  ;;  %v3146_v15 = vld [vmem:[%s7917_s4 + $0xc] sm:$0x3] }
 0x3c4   : > { %5144 = vmatprep.subr.bf16.mxu0 %v8351_v27 }
 0x3c5   : > { %v5020_v47 = vpop.f32.mrb[120].mxu1 }
 0x3c6   : > { %v2893_v0 = vpop.f32.mrb[121].mxu1 }
 0x3c7   : > { %v5021_v45 = vpop.f32.mrb[122].mxu1  ;;  %5145 = vmatpush3.bf16.msra.mxu0 %v3115_v36  ;;  %v7620_v36 = vunpack.c.h.bf16 %v5372_v8 }
 0x3c8   : > { %v3117_v6 = vpack.c.bf16 %v5021_v45, %v5020_v47  ;;  %v2896_v29 = vpop.f32.mrb[123].mxu1  ;;  %5146 = vmatprep.subr.bf16.mxu0 %v8351_v27  ;;  %v3504_v47 = vstv %s7602_s2  ;;  %s4575_s2 = sld [smem:[#allocation6 + $0x181]] }
 0x3c9   : > { %v3116_v13 = vpack.c.bf16 %v2896_v29, %v2893_v0  ;;  %v3510_v0 = vstv %s7604_s3  ;;  %v3505_v29 = vmul.f32 %v3504_v47, %v7611_v25  ;;  %s4576_s3 = sld [smem:[#allocation6 + $0x182]] }
 0x3cb   : > { %5147 = vmatpush3.bf16.msra.mxu0 %v3116_v13  ;;  %v3511_v13 = vmul.f32 %v3510_v0, %v7614_v3 }
 0x3cc   : > { %5148 = vmatprep.subr.bf16.mxu0 %v8351_v27 }
 0x3cd   : > { %v5024_v38 = vpop.f32.mrb[124].mxu1 }
 0x3ce   : > { %v2909_v63 = vpop.f32.mrb[125].mxu1 }
 0x3cf   : > { %v5025_v24 = vpop.f32.mrb[126].mxu1  ;;  %5149 = vmatpush3.bf16.msra.mxu0 %v3117_v6 }
 0x3d0   : > { %v3119_v61 = vpack.c.bf16 %v5025_v24, %v5024_v38  ;;  %v2912_v14 = vpop.f32.mrb[127].mxu1  ;;  %5150 = vmatprep.subr.bf16.mxu0 %v8351_v27  ;;  %v5374_v38 = vld [vmem:[%s5632_s16 + $0x10] sm:$0xff]  }
 0x3d1   : > { %v3118_v62 = vpack.c.bf16 %v2912_v14, %v2909_v63  ;;  %v7636_v63 = vunpack.c.l.bf16 %v5374_v38  ;;  %v7638_v24 = vunpack.c.h.bf16 %v5374_v38  ;;  %v3506_v14 = vmul.f32 %v3504_v47, %v7620_v36 }
 0x3d2   : > { %v3560_v38 = vstv %s4568_s18  ;;  %s7746_s18 = sld [smem:[#allocation6 + $0x282]] }
 0x3d3   : > { %5151 = vmatpush3.bf16.msra.mxu0 %v3118_v62  ;;  %v3512_v62 = vmul.f32 %v3510_v0, %v7622_v59 }
 0x3d4   : > { %5156 = vmatprep.subr.bf16.mxu0 %v8351_v27 }
 0x3d5   : > { %v5028_v22 = vpop.f32.mrb[128].mxu1 }
 0x3d6   : > { %v2925_v2 = vpop.f32.mrb[129].mxu1  ;;  %5153 = vmatmul.mubr.msk.bf16.vlgmr.msra.gmra.mrb[80].mxu0 %vm2434_vm2, %v3144_v20 }
 0x3d7   : > { %v5029_v50 = vpop.f32.mrb[130].mxu1  ;;  %5157 = vmatpush3.bf16.msra.mxu0 %v3119_v61  ;;  %5170 = vmatprep.mubr.msk.bf16.mxu0 %vm5461_vm1, %v8351_v27 }
 0x3d8   : > { %v3121_v42 = vpack.c.bf16 %v5029_v50, %v5028_v22  ;;  %v2928_v5 = vpop.f32.mrb[131].mxu1  ;;  %5158 = vmatprep.subr.bf16.mxu0 %v8351_v27  ;;  %v5375_v50 = vld [vmem:[%s5632_s16 + $0x18] sm:$0xff]   ;;  %s7661_s16 = sld [smem:[#allocation7]] }
 0x3d9   : > { %v3120_v16 = vpack.c.bf16 %v2928_v5, %v2925_v2  ;;  %v3518_v2 = vstv %s7608_s7  ;;  %s7705_s7 = sld [smem:[#allocation6 + $0x183]] }
 0x3db   : > { %5159 = vmatpush3.bf16.msra.mxu0 %v3120_v16  ;;  %v7651_v16 = vunpack.c.h.bf16 %v5375_v50 }
 0x3dc   : > { %5160 = vmatprep.subr.bf16.mxu0 %v8351_v27 }
 0x3dd   : > { %v5032_v30 = vpop.f32.mrb[132].mxu1 }
 0x3de   : > { %v2941_v12 = vpop.f32.mrb[133].mxu1 }
 0x3df   : > { %v5033_v32 = vpop.f32.mrb[134].mxu1  ;;  %5161 = vmatpush3.bf16.msra.mxu0 %v3121_v42  ;;  %v7649_v42 = vunpack.c.l.bf16 %v5375_v50 }
 0x3e0   : > { %v3123_v60 = vpack.c.bf16 %v5033_v32, %v5032_v30  ;;  %v2944_v40 = vpop.f32.mrb[135].mxu1  ;;  %5162 = vmatprep.subr.bf16.mxu0 %v8351_v27  ;;  %v3513_v30 = vadd.f32 %v3511_v13, %v3505_v29  ;;  %v3538_v32 = vstv %s7618_s9  ;;  %s7720_s9 = sld [smem:[#allocation6 + $0x200]] }
 0x3e1   : > { %v3122_v31 = vpack.c.bf16 %v2944_v40, %v2941_v12  ;;  %v3526_v12 = vstv %s7616_s8  ;;  %v3519_v40 = vmul.f32 %v3518_v2, %v7636_v63  ;;  %s7712_s8 = sld [smem:[#allocation7 + $0x3]] }
 0x3e3   : > { %5163 = vmatpush3.bf16.msra.mxu0 %v3122_v31  ;;  %v3520_v31 = vmul.f32 %v3518_v2, %v7638_v24 }
 0x3e4   : > { %5164 = vmatprep.subr.bf16.mxu0 %v8351_v27 }
 0x3e5   : > { %v5036_v51 = vpop.f32.mrb[136].mxu1 }
 0x3e6   : > { %v2957_v43 = vpop.f32.mrb[137].mxu1 }
 0x3e7   : > { %v5037_v37 = vpop.f32.mrb[138].mxu1  ;;  %5165 = vmatpush3.bf16.msra.mxu0 %v3123_v60  ;;  %v3514_v60 = vadd.f32 %v3512_v62, %v3506_v14 }
 0x3e8   : > { %v3125_v44 = vpack.c.bf16 %v5037_v37, %v5036_v51  ;;  %v2960_v54 = vpop.f32.mrb[139].mxu1  ;;  %5166 = vmatprep.subr.bf16.mxu0 %v8351_v27  ;;  %v3542_v51 = vstv %s7629_s21  ;;  %v3527_v37 = vmul.f32 %v3526_v12, %v7649_v42  ;;  %s7731_s21 = sld [smem:[#allocation6 + $0x203]] }
 0x3e9   : > { %v3124_v46 = vpack.c.bf16 %v2960_v54, %v2957_v43  ;;  %v3539_v54 = vmul.f32 %v3538_v32, %v7611_v25 }
 0x3eb   : > { %5167 = vmatpush3.bf16.msra.mxu0 %v3124_v46  ;;  %v3540_v46 = vmul.f32 %v3538_v32, %v7620_v36 }
 0x3ec   : > { %5168 = vmatprep.subr.bf16.mxu0 %v8351_v27 }
 0x3ed   : > { %v5040_v34 = vpop.f32.mrb[140].mxu1 }
 0x3ee   : > { %v2973_v48 = vpop.f32.mrb[141].mxu1 }
 0x3ef   : > { %v5041_v19 = vpop.f32.mrb[142].mxu1  ;;  %5169 = vmatpush3.bf16.msra.mxu0 %v3125_v44 }
 0x3f0   : > { %v3127_v55 = vpack.c.bf16 %v5041_v19, %v5040_v34  ;;  %v2976_v23 = vpop.f32.mrb[143].mxu1  ;;  %5174 = vmatprep.subr.bf16.mxu0 %v8351_v27  ;;  %v3543_v34 = vmul.f32 %v3542_v51, %v7614_v3 }
 0x3f1   : > { %v3126_v56 = vpack.c.bf16 %v2976_v23, %v2973_v48  ;;  %v3544_v48 = vmul.f32 %v3542_v51, %v7622_v59  ;;  %v3528_v23 = vmul.f32 %v3526_v12, %v7651_v16 }
 0x3f2   : > { %5171 = vmatmul.mubr.msk.bf16.vlgmr.msra.gmra.mrb[84].mxu0 %vm2434_vm2, %v3145_v18  ;;  %v3521_v18 = vadd.f32 %v3519_v40, %v3513_v30 }
 0x3f3   : > { %5175 = vmatpush3.bf16.msra.mxu0 %v3126_v56  ;;  %5188 = vmatprep.mubr.msk.bf16.mxu0 %vm5461_vm1, %v8351_v27  ;;  %v3548_v56 = vstv %s7644_s13  ;;  %s7733_s13 = sld [smem:[#allocation7 + $0x4]] }
 0x3f4   : > { %5176 = vmatprep.subr.bf16.mxu0 %v8351_v27 }
 0x3f5   : > { %v5044_v1 = vpop.f32.mrb[144].mxu1 }
 0x3f6   : > { %v2989_v52 = vpop.f32.mrb[145].mxu1 }
 0x3f7   : > { %v5045_v26 = vpop.f32.mrb[146].mxu1  ;;  %5177 = vmatpush3.bf16.msra.mxu0 %v3127_v55  ;;  %v3522_v55 = vadd.f32 %v3520_v31, %v3514_v60 }
 0x3f8   : > { %v3129_v11 = vpack.c.bf16 %v5045_v26, %v5044_v1  ;;  %v2992_v57 = vpop.f32.mrb[147].mxu1  ;;  %5178 = vmatprep.subr.bf16.mxu0 %v8351_v27 }
 0x3f9   : > { %v3128_v58 = vpack.c.bf16 %v2992_v57, %v2989_v52  ;;  %v3546_v57 = vadd.f32 %v3544_v48, %v3540_v46  ;;  %v3570_v48 = vstv %s4570_s30  ;;  %s7788_s30 = sld [smem:[#allocation6 + $0x381]] }
 0x3fb   : > { %5179 = vmatpush3.bf16.msra.mxu0 %v3128_v58  ;;  %v3549_v58 = vmul.f32 %v3548_v56, %v7636_v63 }
 0x3fc   : > { %5180 = vmatprep.subr.bf16.mxu0 %v8351_v27 }
 0x3fd   : > { %v5048_v49 = vpop.f32.mrb[148].mxu1 }
 0x3fe   : > { %v3005_v17 = vpop.f32.mrb[149].mxu1 }
 0x3ff   : > { %v5049_v35 = vpop.f32.mrb[150].mxu1  ;;  %5181 = vmatpush3.bf16.msra.mxu0 %v3129_v11  ;;  %v3545_v11 = vadd.f32 %v3543_v34, %v3539_v54  ;;  %v3566_v34 = vstv %s4569_s26  ;;  %s7785_s26 = sld [smem:[#allocation6 + $0x380]] }
 0x400   : > { %v3131_v28 = vpack.c.bf16 %v5049_v35, %v5048_v49  ;;  %v3008_v53 = vpop.f32.mrb[151].mxu1  ;;  %5182 = vmatprep.subr.bf16.mxu0 %v8351_v27  ;;  %v3550_v49 = vmul.f32 %v3548_v56, %v7638_v24  ;;  %v3530_v35 = vadd.f32 %v3528_v23, %v3522_v55  ;;  %v3571_v55 = vmul.f32 %v3570_v48, %v7614_v3 }
 0x401   : > { %v3130_v7 = vpack.c.bf16 %v3008_v53, %v3005_v17  ;;  %v3529_v17 = vadd.f32 %v3527_v37, %v3521_v18  ;;  %v3532_v53 = vstv %s7661_s16  ;;  %v3568_v18 = vmul.f32 %v3566_v34, %v7620_v36  ;;  %s7741_s16 = sld [smem:[#allocation6 + $0x281]] }
 0x402   : > { %v3534_v10 = vadd.f32 %v3532_v53, %v3530_v35  ;;  %v3572_v23 = vmul.f32 %v3570_v48, %v7622_v59  ;;  %v3576_v56 = vstv %s4571_s14  ;;  %s7793_s14 = sld [smem:[#allocation6 + $0x382]] }
 0x403   : > { %5183 = vmatpush3.bf16.msra.mxu0 %v3130_v7  ;;  %v3533_v8 = vadd.f32 %v3532_v53, %v3529_v17 }
 0x404   : > { %5184 = vmatprep.subr.bf16.mxu0 %v8351_v27  ;;  %v3536_v13 = vmax.f32 %v3534_v10, 0.0 }
 0x405   : > { %v5052_v33 = vpop.f32.mrb[152].mxu1  ;;  %v3535_v29 = vmax.f32 %v3533_v8, 0.0 }
 0x406   : > { %v3021_v4 = vpop.f32.mrb[153].mxu1 }
 0x407   : > { %v5053_v41 = vpop.f32.mrb[154].mxu1  ;;  %5185 = vmatpush3.bf16.msra.mxu0 %v3131_v28  ;;  %v3554_v28 = vstv %s7658_s17  ;;  %s7739_s17 = sld [smem:[#allocation6 + $0x280]] }
 0x408   : > { %v3133_v9 = vpack.c.bf16 %v5053_v41, %v5052_v33  ;;  %v3024_v39 = vpop.f32.mrb[155].mxu1  ;;  %5186 = vmatprep.subr.bf16.mxu0 %v8351_v27  ;;  %v3552_v41 = vadd.f32 %v3550_v49, %v3546_v57  ;;  %v3574_v57 = vadd.f32 %v3572_v23, %v3568_v18  ;;  %v3578_v49 = vmul.f32 %v3576_v56, %v7638_v24 }
 0x409   : > { %v3132_v21 = vpack.c.bf16 %v3024_v39, %v3021_v4  ;;  %v3551_v4 = vadd.f32 %v3549_v58, %v3545_v11  ;;  %v3556_v39 = vmul.f32 %v3554_v28, %v7651_v16  ;;  %v3577_v58 = vmul.f32 %v3576_v56, %v7636_v63 }
 0x40a   : > { %v3638_v23 = vstv %s7731_s21  ;;  %v3644_v56 = vstv %s7733_s13 }
 0x40b   : > { %5187 = vmatpush3.bf16.msra.mxu0 %v3132_v21 }
 0x40c   : > { %5192 = vmatprep.subr.bf16.mxu0 %v8351_v27 }
 0x40d   : > { %v5056_v45 = vpop.f32.mrb[156].mxu1 }
 0x40e   : > { %v3037_v6 = vpop.f32.mrb[157].mxu1  ;;  %5189 = vmatmul.mubr.msk.bf16.vlgmr.msra.gmra.mrb[88].mxu0 %vm2434_vm2, %v3146_v15 }
 0x40f   : > { %v5057_v61 = vpop.f32.mrb[158].mxu1  ;;  %5193 = vmatpush3.bf16.msra.mxu0 %v3133_v9  ;;  %5206 = vmatprep.mubr.msk.bf16.mxu0 %vm5461_vm1, %v8351_v27  ;;  %v3555_v9 = vmul.f32 %v3554_v28, %v7649_v42 }
 0x410   : > { %v3135_v20 = vpack.c.bf16 %v5057_v61, %v5056_v45  ;;  %v3040_v22 = vpop.f32.mrb[159].mxu1  ;;  %5194 = vmatprep.subr.bf16.mxu0 %v8351_v27  ;;  %v5367_v61 = vld [vmem:[%s7918_s5] sm:$0xff]  }
 0x411   : > { %v3134_v5 = vpack.c.bf16 %v3040_v22, %v3037_v6  ;;  %v3557_v45 = vadd.f32 %v3555_v9, %v3551_v4  ;;  %v3558_v6 = vadd.f32 %v3556_v39, %v3552_v41  ;;  %v3733_v22 = vpack.c.bf16 %v3536_v13, %v3535_v29 }
 0x412   : > { %v3598_v4 = vstv %s4575_s2  ;;  %v3604_v41 = vstv %s4576_s3 }
 0x413   : > { %5195 = vmatpush3.bf16.msra.mxu0 %v3134_v5  ;;  %v3561_v14 = vadd.f32 %v3560_v38, %v3557_v45  ;;  %v3562_v62 = vadd.f32 %v3560_v38, %v3558_v6  ;;  %v3599_v9 = vmul.f32 %v3598_v4, %v7614_v3  ;;  %v3600_v39 = vmul.f32 %v3598_v4, %v7622_v59 }
 0x414   : > { %5196 = vmatprep.subr.bf16.mxu0 %v8351_v27  ;;  %v3606_v8 = vmul.f32 %v3604_v41, %v7638_v24 }
 0x415   : > { %v5060_v43 = vpop.f32.mrb[160].mxu1  ;;  %v3563_v2 = vmax.f32 %v3561_v14, 0.0  ;;  %v3564_v50 = vmax.f32 %v3562_v62, 0.0 }
 0x416   : > { %v3053_v44 = vpop.f32.mrb[161].mxu1 }
 0x417   : > { %v5061_v19 = vpop.f32.mrb[162].mxu1  ;;  %5197 = vmatpush3.bf16.msra.mxu0 %v3135_v20  ;;  %v3147_v20 = vld [vmem:[%s7917_s4 + $0xe] sm:$0x3]  ;;  %v3734_v5 = vpack.c.bf16 %v3564_v50, %v3563_v2  ;;  %v3616_v50 = vstv %s7712_s8 }
 0x418   : > { %v3137_v1 = vpack.c.bf16 %v5061_v19, %v5060_v43  ;;  %v3056_v52 = vpop.f32.mrb[163].mxu1  ;;  %5198 = vmatprep.subr.bf16.mxu0 %v8351_v27  ;;  %v3567_v19 = vmul.f32 %v3566_v34, %v7611_v25 }
 0x419   : > { %v3136_v26 = vpack.c.bf16 %v3056_v52, %v3053_v44  ;;  %v3588_v52 = vstv %s7703_s0  ;;  %s7811_s0 = sld [smem:[#allocation7 + $0x7]] }
 0x41a   : > { %v3573_v11 = vadd.f32 %v3571_v55, %v3567_v19 }
 0x41b   : > { %5199 = vmatpush3.bf16.msra.mxu0 %v3136_v26  ;;  %v3594_v26 = vstv %s4574_s1 }
 0x41c   : > { %5200 = vmatprep.subr.bf16.mxu0 %v8351_v27  ;;  %v3595_v28 = vmul.f32 %v3594_v26, %v7611_v25  ;;  %v3596_v53 = vmul.f32 %v3594_v26, %v7620_v36  ;;  %v3639_v26 = vmul.f32 %v3638_v23, %v7649_v42 }
 0x41d   : > { %v5064_v7 = vpop.f32.mrb[164].mxu1 }
 0x41e   : > { %v3069_v33 = vpop.f32.mrb[165].mxu1  ;;  %v3601_v6 = vadd.f32 %v3599_v9, %v3595_v28  ;;  %v3602_v29 = vadd.f32 %v3600_v39, %v3596_v53  ;;  %v3660_v9 = vstv %s7746_s18 }
 0x41f   : > { %v5065_v21 = vpop.f32.mrb[166].mxu1  ;;  %5201 = vmatpush3.bf16.msra.mxu0 %v3137_v1  ;;  %v3582_v1 = vstv %s4572_s15  ;;  %s7795_s15 = sld [smem:[#allocation6 + $0x383]] }
 0x420   : > { %v3139_v15 = vpack.c.bf16 %v5065_v21, %v5064_v7  ;;  %v3072_v47 = vpop.f32.mrb[167].mxu1  ;;  %5202 = vmatprep.subr.bf16.mxu0 %v8351_v27  ;;  %v3583_v17 = vmul.f32 %v3582_v1, %v7649_v42  ;;  %v3584_v35 = vmul.f32 %v3582_v1, %v7651_v16  ;;  %v3579_v7 = vadd.f32 %v3577_v58, %v3573_v11 }
 0x421   : > { %v3138_v0 = vpack.c.bf16 %v3072_v47, %v3069_v33  ;;  %v3580_v33 = vadd.f32 %v3578_v49, %v3574_v57  ;;  %v3605_v21 = vmul.f32 %v3604_v41, %v7636_v63  ;;  %v3608_v2 = vadd.f32 %v3606_v8, %v3602_v29 }
 0x422   : > { %v3640_v11 = vmul.f32 %v3638_v23, %v7651_v16  ;;  %v3650_v49 = vstv %s7739_s17  ;;  %v3662_v8 = vmul.f32 %v3660_v9, %v7638_v24 }
 0x423   : > { %5203 = vmatpush3.bf16.msra.mxu0 %v3138_v0  ;;  %v3586_v47 = vadd.f32 %v3584_v35, %v3580_v33  ;;  %v3610_v0 = vstv %s7705_s7  ;;  %v3651_v28 = vmul.f32 %v3650_v49, %v7611_v25  ;;  %v3652_v53 = vmul.f32 %v3650_v49, %v7620_v36 }
 0x424   : > { %5204 = vmatprep.subr.bf16.mxu0 %v8351_v27  ;;  %v3611_v13 = vmul.f32 %v3610_v0, %v7649_v42  ;;  %v3612_v38 = vmul.f32 %v3610_v0, %v7651_v16 }
 0x425   : > { %v3590_v62 = vadd.f32 %v3588_v52, %v3586_v47 }
 0x427   : > { %5205 = vmatpush3.bf16.msra.mxu0 %v3139_v15  ;;  %v3585_v15 = vadd.f32 %v3583_v17, %v3579_v7  ;;  %v3654_v17 = vstv %s7741_s16 }
 0x428   : > { %5210 = vmatprep.subr.bf16.mxu0 %v5367_v61  ;;  %v3655_v7 = vmul.f32 %v3654_v17, %v7614_v3  ;;  %v3656_v41 = vmul.f32 %v3654_v17, %v7622_v59 }
 0x429   : > { %v3589_v14 = vadd.f32 %v3588_v52, %v3585_v15 }
 0x42a   : > { %5207 = vmatmul.mubr.msk.bf16.vlgmr.msra.gmra.mrb[92].mxu0 %vm2434_vm2, %v3147_v20  ;;  %v3657_v39 = vadd.f32 %v3655_v7, %v3651_v28  ;;  %v3658_v0 = vadd.f32 %v3656_v41, %v3652_v53 }
 0x42b   : > { %5211 = vmatpush3.bf16.msra.mxu0 %v5367_v61  ;;  %5212 = vmatprep.mubr.msk.bf16.mxu0 %vm516_vm0, %v3733_v22  ;;  %v3607_v22 = vadd.f32 %v3605_v21, %v3601_v6  ;;  %v3661_v21 = vmul.f32 %v3660_v9, %v7636_v63 }
 0x42c   : > { %5252 = vmatprep.subr.bf16.mxu0 %v8351_v27 }
 0x42d   : > { %v3663_v6 = vadd.f32 %v3661_v21, %v3657_v39 }
 0x432   : > { %5213 = vmatmul.mubr.msk.bf16.vlgmr.msra.gmra.mrb[96].mxu0 %vm516_vm0, %v3734_v5  ;;  %v3591_v5 = vmax.f32 %v3589_v14, 0.0 }
 0x438   : > { %v3185_v30 = vpop.f32.mrb[64].mxu0 }
 0x439   : > { %3493 = vst.msk [vmem:[%s7695_s29] sm:$0xf] %vm3492_vm3, %v3185_v30  ;;  %v5082_v12 = vpop.f32.mrb[65].mxu0  ;;  %v3592_v30 = vmax.f32 %v3590_v62, 0.0  ;;  %v3664_v62 = vadd.f32 %v3662_v8, %v3658_v0 }
 0x43a   : > { %v3188_v32 = vpop.f32.mrb[66].mxu0  ;;  %v3622_v12 = vstv %s7720_s9 }
 0x43b   : > { %v5083_v60 = vpop.f32.mrb[67].mxu0  ;;  %v3626_v32 = vstv %s7722_s10 }
 0x43c   : > { %v3613_v60 = vadd.f32 %v3611_v13, %v3607_v22  ;;  %v3672_v13 = vstv %s7757_s20 }
 0x454   : > { %v3228_v40 = vpop.f32.mrb[68].mxu0 }
 0x455   : > { %3494 = vst.msk [vmem:[%s7695_s29 + $0x4] sm:$0xf] %vm3492_vm3, %v3228_v40  ;;  %v5100_v31 = vpop.f32.mrb[69].mxu0  ;;  %v3614_v40 = vadd.f32 %v3612_v38, %v3608_v2  ;;  %v3678_v38 = vstv %s7759_s22  ;;  %s4620_s22 = sshll.u32 %s8356_s25, 6 }
 0x456   : > { %v3231_v51 = vpop.f32.mrb[70].mxu0  ;;  %v3623_v31 = vmul.f32 %v3622_v12, %v7611_v25  ;;  %v3680_v2 = vmul.f32 %v3678_v38, %v7620_v36 }
 0x457   : > { %v5101_v43 = vpop.f32.mrb[71].mxu0  ;;  %v3624_v51 = vmul.f32 %v3622_v12, %v7620_v36  ;;  %v3618_v34 = vadd.f32 %v3616_v50, %v3614_v40 }
 0x458   : > { %v3735_v43 = vpack.c.bf16 %v3592_v30, %v3591_v5  ;;  %v3688_v5 = vstv %s7768_s24 }
 0x459   : > { %v3620_v52 = vmax.f32 %v3618_v34, 0.0 }
 0x45a   : > { %5216 = vmatprep.mubr.msk.bf16.mxu0 %vm516_vm0, %v3735_v43  ;;  %v3694_v43 = vstv %s7775_s27  ;;  %s8353_s27 = sld [smem:[#allocation125_spill]] }
 0x470   : > { %v3271_v37 = vpop.f32.mrb[72].mxu0 }
 0x471   : > { %3495 = vst.msk [vmem:[%s7695_s29 + $0x8] sm:$0xf] %vm3492_vm3, %v3271_v37  ;;  %v5118_v44 = vpop.f32.mrb[73].mxu0  ;;  %v3627_v37 = vmul.f32 %v3626_v32, %v7614_v3 }
 0x472   : > { %v3274_v54 = vpop.f32.mrb[74].mxu0  ;;  %v3628_v44 = vmul.f32 %v3626_v32, %v7622_v59 }
 0x473   : > { %v5119_v46 = vpop.f32.mrb[75].mxu0  ;;  %v3632_v54 = vstv %s7728_s12  ;;  %v3629_v18 = vadd.f32 %v3627_v37, %v3623_v31  ;;  %v3689_v31 = vmul.f32 %v3688_v5, %v7636_v63 }
 0x474   : > { %v3617_v46 = vadd.f32 %v3616_v50, %v3613_v60  ;;  %v3633_v48 = vmul.f32 %v3632_v54, %v7636_v63  ;;  %v3634_v19 = vmul.f32 %v3632_v54, %v7638_v24  ;;  %v3630_v55 = vadd.f32 %v3628_v44, %v3624_v51 }
 0x475   : > { %v3682_v50 = vstv %s7766_s23  ;;  %v3690_v51 = vmul.f32 %v3688_v5, %v7638_v24 }
 0x476   : > { %v3619_v1 = vmax.f32 %v3617_v46, 0.0  ;;  %v3635_v57 = vadd.f32 %v3633_v48, %v3629_v18  ;;  %v3636_v58 = vadd.f32 %v3634_v19, %v3630_v55  ;;  %v3683_v32 = vmul.f32 %v3682_v50, %v7614_v3 }
 0x477   : > { %v3684_v60 = vmul.f32 %v3682_v50, %v7622_v59  ;;  %v3695_v46 = vmul.f32 %v3694_v43, %v7649_v42  ;;  %v3696_v48 = vmul.f32 %v3694_v43, %v7651_v16  ;;  %v3700_v19 = vstv %s7783_s28  ;;  %s7892_s28 = scalar_lea.vmem %s8353_s27, %s4620_s22 }
 0x478   : > { %v3736_v35 = vpack.c.bf16 %v3620_v52, %v3619_v1  ;;  %v3641_v33 = vadd.f32 %v3639_v26, %v3635_v57  ;;  %v3642_v4 = vadd.f32 %v3640_v11, %v3636_v58  ;;  %v3706_v18 = vstv %s7785_s26 }
 0x479   : > { %v3686_v54 = vadd.f32 %v3684_v60, %v3680_v2  ;;  %v3707_v1 = vmul.f32 %v3706_v18, %v7611_v25  ;;  %v3708_v52 = vmul.f32 %v3706_v18, %v7620_v36  ;;  %v3710_v26 = vstv %s7788_s30 }
 0x47a   : > { %5217 = vmatmul.mubr.msk.bf16.gmra.mrb[100].mxu0 %vm516_vm0, %v3736_v35  ;;  %v3645_v15 = vadd.f32 %v3644_v56, %v3641_v33  ;;  %v3646_v47 = vadd.f32 %v3644_v56, %v3642_v4  ;;  %v3716_v11 = vstv %s7793_s14  ;;  %v3722_v57 = vstv %s7795_s15 }
 0x47b   : > { %v3692_v56 = vadd.f32 %v3690_v51, %v3686_v54  ;;  %v3711_v35 = vmul.f32 %v3710_v26, %v7614_v3  ;;  %v3712_v28 = vmul.f32 %v3710_v26, %v7622_v59  ;;  %v3717_v53 = vmul.f32 %v3716_v11, %v7636_v63  ;;  %v3879_v54 = vld [vmem:[%s7919_s6 + $0x4] sm:$0xf] }
 0x47c   : > { %v3648_v14 = vmax.f32 %v3646_v47, 0.0  ;;  %v3718_v7 = vmul.f32 %v3716_v11, %v7638_v24  ;;  %v3723_v4 = vmul.f32 %v3722_v57, %v7649_v42  ;;  %v3724_v9 = vmul.f32 %v3722_v57, %v7651_v16 }
 0x47d   : > { %v3698_v17 = vadd.f32 %v3696_v48, %v3692_v56  ;;  %v3713_v33 = vadd.f32 %v3711_v35, %v3707_v1  ;;  %v3714_v41 = vadd.f32 %v3712_v28, %v3708_v52  ;;  %v3728_v24 = vstv %s7811_s0  ;;  %v3881_v52 = vld [vmem:[%s7919_s6 + $0xc] sm:$0xf] }
 0x47f   : > { %v3702_v36 = vadd.f32 %v3700_v19, %v3698_v17  ;;  %v3719_v8 = vadd.f32 %v3717_v53, %v3713_v33  ;;  %v3720_v63 = vadd.f32 %v3718_v7, %v3714_v41  ;;  %v3883_v17 = vld [vmem:[%s7919_s6 + $0x14] sm:$0xf]  ;;  %v3885_v33 = vld [vmem:[%s7919_s6 + $0x1c] sm:$0xf] }
 0x481   : > { %v3704_v3 = vmax.f32 %v3702_v36, 0.0  ;;  %v3725_v47 = vadd.f32 %v3723_v4, %v3719_v8  ;;  %v3884_v4 = vld [vmem:[%s7919_s6 + $0x18] sm:$0xf] }
 0x48d   : > { %v3314_v10 = vpop.f32.mrb[76].mxu0 }
 0x48e   : > { %3496 = vst.msk [vmem:[%s7695_s29 + $0xc] sm:$0xf] %vm3492_vm3, %v3314_v10  ;;  %v5136_v45 = vpop.f32.mrb[77].mxu0  ;;  %v3666_v10 = vstv %s7750_s19 }
 0x48f   : > { %v3317_v61 = vpop.f32.mrb[78].mxu0  ;;  %v3667_v45 = vmul.f32 %v3666_v10, %v7649_v42  ;;  %v3668_v29 = vmul.f32 %v3666_v10, %v7651_v16  ;;  %v3729_v42 = vadd.f32 %v3728_v24, %v3725_v47 }
 0x490   : > { %v5137_v20 = vpop.f32.mrb[79].mxu0  ;;  %v3647_v61 = vmax.f32 %v3645_v15, 0.0 }
 0x491   : > { %v3679_v20 = vmul.f32 %v3678_v38, %v7611_v25  ;;  %v3669_v22 = vadd.f32 %v3667_v45, %v3663_v6  ;;  %v3670_v12 = vadd.f32 %v3668_v29, %v3664_v62  ;;  %v3726_v45 = vadd.f32 %v3724_v9, %v3720_v63 }
 0x492   : > { %v3737_v30 = vpack.c.bf16 %v3648_v14, %v3647_v61  ;;  %v3731_v6 = vmax.f32 %v3729_v42, 0.0 }
 0x493   : > { %v3673_v40 = vadd.f32 %v3672_v13, %v3669_v22  ;;  %v3674_v37 = vadd.f32 %v3672_v13, %v3670_v12  ;;  %v3685_v44 = vadd.f32 %v3683_v32, %v3679_v20  ;;  %v3730_v16 = vadd.f32 %v3728_v24, %v3726_v45 }
 0x494   : > { %5220 = vmatprep.mubr.msk.bf16.mxu0 %vm516_vm0, %v3737_v30 }
 0x495   : > { %v3675_v34 = vmax.f32 %v3673_v40, 0.0  ;;  %v3676_v55 = vmax.f32 %v3674_v37, 0.0  ;;  %v3691_v23 = vadd.f32 %v3689_v31, %v3685_v44  ;;  %v3732_v29 = vmax.f32 %v3730_v16, 0.0  ;;  %v3878_v44 = vld [vmem:[%s7919_s6] sm:$0xf] }
 0x497   : > { %v3738_v58 = vpack.c.bf16 %v3676_v55, %v3675_v34  ;;  %v3697_v49 = vadd.f32 %v3695_v46, %v3691_v23  ;;  %v3740_v13 = vpack.c.bf16 %v3732_v29, %v3731_v6  ;;  %v3880_v23 = vld [vmem:[%s7919_s6 + $0x8] sm:$0xf] }
 0x499   : > { %5221 = vmatmul.mubr.msk.bf16.gmra.mrb[104].mxu0 %vm516_vm0, %v3738_v58  ;;  %v3701_v25 = vadd.f32 %v3700_v19, %v3697_v49  ;;  %v3882_v49 = vld [vmem:[%s7919_s6 + $0x10] sm:$0xf] }
 0x49b   : > { %v3703_v21 = vmax.f32 %v3701_v25, 0.0 }
 0x49d   : > { %v3739_v15 = vpack.c.bf16 %v3704_v3, %v3703_v21 }
 0x49f   : > { %5224 = vmatprep.mubr.msk.bf16.mxu0 %vm516_vm0, %v3739_v15 }
 0x4a1   : > { %5225 = vmatmul.mubr.msk.bf16.gmra.mrb[108].mxu0 %vm516_vm0, %v3740_v13 }
 0x4a2   : > { %5254 = vmatprep.mubr.msk.bf16.mxu0 %vm5461_vm1, %v8351_v27 }
 0x4a9   : > { %v3357_v39 = vpop.f32.mrb[80].mxu0 }
 0x4aa   : > { %3497 = vst.msk [vmem:[%s7695_s29 + $0x10] sm:$0xf] %vm3492_vm3, %v3357_v39  ;;  %v5154_v59 = vpop.f32.mrb[81].mxu0 }
 0x4ab   : > { %v3360_v10 = vpop.f32.mrb[82].mxu0 }
 0x4ac   : > { %v5155_v0 = vpop.f32.mrb[83].mxu0 }
 0x4c5   : > { %v3400_v38 = vpop.f32.mrb[84].mxu0 }
 0x4c6   : > { %3498 = vst.msk [vmem:[%s7695_s29 + $0x14] sm:$0xf] %vm3492_vm3, %v3400_v38  ;;  %v5172_v61 = vpop.f32.mrb[85].mxu0 }
 0x4c7   : > { %v3403_v14 = vpop.f32.mrb[86].mxu0 }
 0x4c8   : > { %v5173_v62 = vpop.f32.mrb[87].mxu0 }
 0x4e1   : > { %v3443_v20 = vpop.f32.mrb[88].mxu0 }
 0x4e2   : > { %3499 = vst.msk [vmem:[%s7695_s29 + $0x18] sm:$0xf] %vm3492_vm3, %v3443_v20  ;;  %v5190_v22 = vpop.f32.mrb[89].mxu0 }
 0x4e3   : > { %v3446_v2 = vpop.f32.mrb[90].mxu0 }
 0x4e4   : > { %v5191_v50 = vpop.f32.mrb[91].mxu0 }
 0x4fd   : > { %v3486_v5 = vpop.f32.mrb[92].mxu0 }
 0x4fe   : > { %3500 = vst.msk [vmem:[%s7695_s29 + $0x1c] sm:$0xf] %vm3492_vm3, %v3486_v5  ;;  %v5208_v30 = vpop.f32.mrb[93].mxu0 }
 0x4ff   : > { %v3489_v12 = vpop.f32.mrb[94].mxu0 }
 0x500   : > { %v5209_v32 = vpop.f32.mrb[95].mxu0 }
 0x505   : > { %v5214_v60 = vpop.f32.mrb[96].mxu0 }
 0x506   : > { %v3807_v40 = vpop.f32.mrb[97].mxu0 }
 0x507   : > { %v5215_v31 = vpop.f32.mrb[98].mxu0 }
 0x508   : > { %v3871_v51 = vpack.c.bf16 %v5215_v31, %v5214_v60  ;;  %v3810_v43 = vpop.f32.mrb[99].mxu0 }
 0x509   : > { %v3870_v37 = vpack.c.bf16 %v3810_v43, %v3807_v40 }
 0x50b   : > { %5229 = vmatpush3.bf16.msra.mxu1 %v3870_v37 }
 0x50c   : > { %5234 = vmatprep.subr.bf16.mxu1 %v8351_v27 }
 0x50e   : > { %5231 = vmatmul.mubr.msk.bf16.vlgmr.msra.gmra.mrb[168].mxu1 %vm516_vm0, %v3878_v44 }
 0x50f   : > { %5235 = vmatpush3.bf16.msra.mxu1 %v3871_v51  ;;  %5236 = vmatprep.mubr.msk.bf16.mxu1 %vm5461_vm1, %v8351_v27 }
 0x510   : > { %5240 = vmatprep.subr.bf16.mxu1 %v8351_v27 }
 0x516   : > { %5237 = vmatmul.mubr.msk.bf16.vlgmr.msra.gmra.mrb[172].mxu1 %vm516_vm0, %v3879_v54 }
 0x517   : > { %5242 = vmatprep.mubr.msk.bf16.mxu1 %vm5461_vm1, %v8351_v27 }
 0x54d   : > { %v5218_v46 = vpop.f32.mrb[100].mxu0 }
 0x54e   : > { %v3823_v34 = vpop.f32.mrb[101].mxu0 }
 0x54f   : > { %v5219_v48 = vpop.f32.mrb[102].mxu0 }
 0x550   : > { %v3873_v19 = vpack.c.bf16 %v5219_v48, %v5218_v46  ;;  %v3826_v18 = vpop.f32.mrb[103].mxu0 }
 0x551   : > { %v3872_v55 = vpack.c.bf16 %v3826_v18, %v3823_v34 }
 0x553   : > { %5241 = vmatpush3.bf16.msra.mxu1 %v3872_v55 }
 0x554   : > { %5246 = vmatprep.subr.bf16.mxu1 %v8351_v27 }
 0x556   : > { %5243 = vmatmul.mubr.msk.bf16.vlgmr.msra.gmra.mrb[176].mxu1 %vm516_vm0, %v3880_v23 }
 0x557   : > { %5247 = vmatpush3.bf16.msra.mxu1 %v3873_v19  ;;  %5248 = vmatprep.mubr.msk.bf16.mxu1 %vm5461_vm1, %v8351_v27 }
 0x558   : > { %5258 = vmatprep.subr.bf16.mxu1 %v8351_v27 }
 0x55e   : > { %5249 = vmatmul.mubr.msk.bf16.vlgmr.msra.gmra.mrb[180].mxu1 %vm516_vm0, %v3881_v52 }
 0x55f   : > { %5260 = vmatprep.mubr.msk.bf16.mxu1 %vm5461_vm1, %v8351_v27 }
 0x56c   : > { %v5222_v56 = vpop.f32.mrb[104].mxu0 }
 0x56d   : > { %v3839_v1 = vpop.f32.mrb[105].mxu0 }
 0x56e   : > { %v5223_v26 = vpop.f32.mrb[106].mxu0 }
 0x56f   : > { %v3875_v11 = vpack.c.bf16 %v5223_v26, %v5222_v56  ;;  %v3842_v57 = vpop.f32.mrb[107].mxu0 }
 0x570   : > { %v3874_v58 = vpack.c.bf16 %v3842_v57, %v3839_v1 }
 0x571   : > { %5259 = vmatpush3.bf16.msra.mxu1 %v3875_v11 }
 0x572   : > { %5253 = vmatpush3.bf16.msra.mxu0 %v3874_v58  ;;  %5270 = vmatprep.subr.bf16.mxu1 %v8351_v27 }
 0x573   : > { %5264 = vmatprep.subr.bf16.mxu0 %v8351_v27 }
 0x574   : > { %5261 = vmatmul.mubr.msk.bf16.vlgmr.msra.gmra.mrb[184].mxu1 %vm516_vm0, %v3883_v17  ;;  %v5226_v35 = vpop.f32.mrb[108].mxu0 }
 0x575   : > { %5255 = vmatmul.mubr.msk.bf16.vlgmr.msra.gmra.mrb[112].mxu0 %vm516_vm0, %v3882_v49  ;;  %5272 = vmatprep.mubr.msk.bf16.mxu1 %vm5461_vm1, %v8351_v27  ;;  %v3855_v28 = vpop.f32.mrb[109].mxu0 }
 0x576   : > { %5266 = vmatprep.mubr.msk.bf16.mxu0 %vm5461_vm1, %v8351_v27  ;;  %v5227_v53 = vpop.f32.mrb[110].mxu0 }
 0x577   : > { %v3877_v7 = vpack.c.bf16 %v5227_v53, %v5226_v35  ;;  %v3858_v25 = vpop.f32.mrb[111].mxu0 }
 0x578   : > { %v3876_v36 = vpack.c.bf16 %v3858_v25, %v3855_v28 }
 0x579   : > { %5271 = vmatpush3.bf16.msra.mxu1 %v3877_v7 }
 0x57a   : > { %5265 = vmatpush3.bf16.msra.mxu0 %v3876_v36 }
 0x57c   : > { %5273 = vmatmul.mubr.msk.bf16.vlgmr.msra.gmra.mrb[188].mxu1 %vm516_vm0, %v3885_v33 }
 0x57d   : > { %5267 = vmatmul.mubr.msk.bf16.vlgmr.msra.gmra.mrb[116].mxu0 %vm516_vm0, %v3884_v4 }
 0x5e1   : > { %v3923_v27 = vpop.f32.mrb[168].mxu1 }
 0x5e2   : > { %4231 = vst.msk [vmem:[%s7892_s28] sm:$0x7f] %vm4230_vm4, %v3923_v27  ;;  %v5232_v41 = vpop.f32.mrb[169].mxu1 }
 0x5e3   : > { %v3926_v9 = vpop.f32.mrb[170].mxu1 }
 0x5e4   : > { %v5233_v39 = vpop.f32.mrb[171].mxu1 }
 0x5e9   : > { %v3966_v21 = vpop.f32.mrb[172].mxu1 }
 0x5ea   : > { %4232 = vst.msk [vmem:[%s7892_s28 + $0x8] sm:$0x7f] %vm4230_vm4, %v3966_v21  ;;  %v5238_v3 = vpop.f32.mrb[173].mxu1 }
 0x5eb   : > { %v3969_v8 = vpop.f32.mrb[174].mxu1 }
 0x5ec   : > { %v5239_v59 = vpop.f32.mrb[175].mxu1 }
 0x629   : > { %v4009_v63 = vpop.f32.mrb[176].mxu1 }
 0x62a   : > { %4233 = vst.msk [vmem:[%s7892_s28 + $0x10] sm:$0x7f] %vm4230_vm4, %v4009_v63  ;;  %v5244_v24 = vpop.f32.mrb[177].mxu1 }
 0x62b   : > { %v4012_v10 = vpop.f32.mrb[178].mxu1 }
 0x62c   : > { %v5245_v15 = vpop.f32.mrb[179].mxu1 }
 0x631   : > { %v4052_v47 = vpop.f32.mrb[180].mxu1 }
 0x632   : > { %4234 = vst.msk [vmem:[%s7892_s28 + $0x18] sm:$0x7f] %vm4230_vm4, %v4052_v47  ;;  %v5250_v0 = vpop.f32.mrb[181].mxu1 }
 0x633   : > { %v4055_v45 = vpop.f32.mrb[182].mxu1 }
 0x634   : > { %v5251_v42 = vpop.f32.mrb[183].mxu1 }
 0x647   : > { %v4138_v13 = vpop.f32.mrb[184].mxu1 }
 0x648   : > { %v4095_v16 = vpop.f32.mrb[112].mxu0  ;;  %4236 = vst.msk [vmem:[%s7892_s28 + $0x28] sm:$0x7f] %vm4230_vm4, %v4138_v13  ;;  %v5262_v61 = vpop.f32.mrb[185].mxu1 }
 0x649   : > { %4235 = vst.msk [vmem:[%s7892_s28 + $0x20] sm:$0x7f] %vm4230_vm4, %v4095_v16  ;;  %v5256_v6 = vpop.f32.mrb[113].mxu0  ;;  %v4141_v14 = vpop.f32.mrb[186].mxu1 }
 0x64a   : > { %v4098_v29 = vpop.f32.mrb[114].mxu0  ;;  %v5263_v62 = vpop.f32.mrb[187].mxu1 }
 0x64b   : > { %v5257_v38 = vpop.f32.mrb[115].mxu0 }
 0x64f   : > { %v4224_v20 = vpop.f32.mrb[188].mxu1 }
 0x650   : > { %v4181_v22 = vpop.f32.mrb[116].mxu0  ;;  %4238 = vst.msk [vmem:[%s7892_s28 + $0x38] sm:$0x7f] %vm4230_vm4, %v4224_v20  ;;  %v5274_v2 = vpop.f32.mrb[189].mxu1 }
 0x651   : > { %4237 = vst.msk [vmem:[%s7892_s28 + $0x30] sm:$0x7f] %vm4230_vm4, %v4181_v22  ;;  %v5268_v50 = vpop.f32.mrb[117].mxu0  ;;  %v4227_v5 = vpop.f32.mrb[190].mxu1 }
 0x652   : > { %v4184_v30 = vpop.f32.mrb[118].mxu0  ;;  %v5275_v12 = vpop.f32.mrb[191].mxu1 }
 0x653   : > { %v5269_v32 = vpop.f32.mrb[119].mxu0 }
 0x654 PF: > { %s8354_s25 = sld [smem:[#allocation12_spill]] }
 0x65a   : > { %s26_s21 = sadd.s32 1, %s8354_s25  }
 0x65b   : > { %p23_p2 = scmp.ge.s32.totalorder %s26_s21, 4  }
 0x65d   :  { %25 = sbr.rel (!%p23_p2) target bundleno = 13 (0xd), region = 123 }
 0x664   :  { %4276 = vsyncpa [#allocation3], 1 }
 0x665   :  { %4278 = vsyncpa [#allocation3 + $0x1], 1 }
 0x666   :  { %4279 = vsyncpa [#allocation5], 1 }
 0x667   :  { %4280 = vsyncpa [#allocation8], 1 }

</bundles_post_ra>
